<compile_context>
chip_gen: v7x
topology: tpu7x:2x2x1
jax: 0.10.0
libtpu: 0.0.40
codegen_flags: <defaults>
</compile_context>

<pallas_src>
from functools import partial

import jax
import jax.numpy as jnp
from jax.experimental import pallas as pl
from jax.experimental.pallas import tpu as pltpu


# ------------------------------ tiling / config -----------------------------

def _round_up(n, m):
    return ((n + m - 1) // m) * m


def _pick_tile(n, prefs):
    for p in prefs:
        if n >= p and n % p == 0:
            return p
    return n  # unreachable when Np is a multiple of 512 (guaranteed by _pad_nodes)


def _tpu_config():
    """Generation-aware (vmem_limit_bytes, tm prefs, tk prefs); fallback is v7x-safe."""
    vmem_cap = 0
    try:
        vmem_cap = int(getattr(pltpu.get_tpu_info(), "vmem_capacity_bytes", 0))
    except Exception:
        pass
    if vmem_cap >= 128 * 1024 * 1024:   # v5e / v6e: 128 MiB physical VMEM -> larger tiles
        return 80 * 1024 * 1024, (1024, 512, 256, 128), (4096, 2048, 1024, 512, 256, 128)
    # v7x (64 MiB per TensorCore) or unknown backend: stay conservative
    return 48 * 1024 * 1024, (512, 256, 128), (2048, 1024, 512, 256, 128)


_VMEM_LIMIT, _TM_PREFS, _TK_PREFS = _tpu_config()


def _pad_nodes(n):
    # Multiple of 512: _pick_tile always lands on pipelined, VMEM-safe tiles and the
    # adjacency lane dim stays 128-aligned (unmasked DMA, full-width MXU feeds).
    return _round_up(max(n, 1), 512)


def _pad_feature_dim(d):
    # 128-lane alignment; dims >128 pad to 256 multiples to fill v6e/v7x 256-wide MXUs.
    return 128 if d <= 128 else _round_up(d, 256)


# ----------------------------- Pallas kernels ------------------------------

def _accumulate_neighbors(k, a_ref, xk_ref, acc_ref):
    """acc += A_cnt_tile @ x_tile  (int8 counts upcast to bf16, f32 accumulate)."""
    @pl.when(k == 0)
    def _():
        acc_ref[...] = jnp.zeros_like(acc_ref)

    # int8 -> bf16 on the VPU is free filler in this HBM-bound regime.
    acc_ref[...] += jnp.dot(a_ref[...].astype(jnp.bfloat16), xk_ref[...],
                            preferred_element_type=jnp.float32)


def _finalize_layer(acc_ref, xm_ref, invdeg_ref, wl_ref, wr_ref, b_ref, out_dtype):
    """h = relu((acc * 1/deg) @ Wl + x_self @ Wr + b), cast to out_dtype."""
    agg = (acc_ref[...] * invdeg_ref[...]).astype(jnp.bfloat16)
    h = (jnp.dot(agg, wl_ref[...], preferred_element_type=jnp.float32)
         + jnp.dot(xm_ref[...], wr_ref[...], preferred_element_type=jnp.float32)
         + b_ref[...])
    return jnp.maximum(h, 0.0).astype(out_dtype)


def sage_layer_kernel(a_ref, xk_ref, xm_ref, invdeg_ref, wl_ref, wr_ref, b_ref,
                      o_ref, acc_ref):
    """One SAGEConv + ReLU layer; output = next layer's node features (bf16 [tm, Dp])."""
    k = pl.program_id(1)                  # program_id hoisted OUT of all pl.when bodies
    k_last = pl.num_programs(1) - 1
    _accumulate_neighbors(k, a_ref, xk_ref, acc_ref)

    @pl.when(k == k_last)
    def _():
        o_ref[...] = _finalize_layer(acc_ref, xm_ref, invdeg_ref,
                                     wl_ref, wr_ref, b_ref, o_ref.dtype)


def sage_layer_pool_kernel(a_ref, xk_ref, xm_ref, invdeg_ref, wl_ref, wr_ref, b_ref,
                           p_ref, pool_ref, acc_ref):
    """Last SAGEConv + ReLU layer with global_add_pool fused into the epilogue.

    Emits a PARTIAL pool per row tile (pool_ref block indexed by the row tile), so the row
    axis stays "parallel" (v7x megacore) and no cross-tile accumulator / nested program_id
    is needed. JK='last' never reads the final layer's node features, so the [N, Dp] node
    writeback is skipped entirely; the wrapper sums the (Np//tm, G, Dp) partials.
    """
    k = pl.program_id(1)
    k_last = pl.num_programs(1) - 1
    _accumulate_neighbors(k, a_ref, xk_ref, acc_ref)

    @pl.when(k == k_last)
    def _():
        h = _finalize_layer(acc_ref, xm_ref, invdeg_ref,
                            wl_ref, wr_ref, b_ref, jnp.bfloat16)
        # segment-sum over this row tile: partial_pool = P[:, tile] @ h_tile
        pool_ref[...] = jnp.dot(p_ref[...], h, preferred_element_type=jnp.float32)


# ------------------------------ pallas_call wrappers ------------------------

def sage_layer(A_cnt, inv_deg, x, Wl, Wr, b, pool=None):
    """Run one padded SAGE layer.

    If `pool` (bf16 [G, Np]) is given, fuse global_add_pool and return the pooled
    [G, Dp] f32 features; otherwise return bf16 [Np, Dp] node features."""
    Np, Fp = x.shape
    Dp = Wl.shape[1]
    tm = _pick_tile(Np, _TM_PREFS)           # row tile (output rows of A @ x)
    tk = _pick_tile(Np, _TK_PREFS)           # contraction tile over neighbors
    grid = (Np // tm, Np // tk)              # reduction axis last

    in_specs = [
        pl.BlockSpec((tm, tk), lambda i, k: (i, k)),   # A_cnt tile (int8)
        pl.BlockSpec((tk, Fp), lambda i, k: (k, 0)),   # x  (neighbor rows, contraction)
        pl.BlockSpec((tm, Fp), lambda i, k: (i, 0)),   # x  (self rows; resident across k)
        pl.BlockSpec((tm, 1), lambda i, k: (i, 0)),    # 1/deg column (f32)
        pl.BlockSpec((Fp, Dp), lambda i, k: (0, 0)),   # Wl (resident)
        pl.BlockSpec((Fp, Dp), lambda i, k: (0, 0)),   # Wr (resident)
        pl.BlockSpec((1, Dp), lambda i, k: (0, 0)),    # bias
    ]
    scratch = [pltpu.VMEM((tm, Fp), jnp.float32)]      # f32 aggregation accumulator
    cparams = pltpu.CompilerParams(
        dimension_semantics=("parallel", "arbitrary"),
        vmem_limit_bytes=_VMEM_LIMIT)

    if pool is None:
        return pl.pallas_call(
            sage_layer_kernel,
            out_shape=jax.ShapeDtypeStruct((Np, Dp), jnp.bfloat16),
            grid_spec=pltpu.PrefetchScalarGridSpec(
                num_scalar_prefetch=0, grid=grid,
                in_specs=in_specs,
                out_specs=pl.BlockSpec((tm, Dp), lambda i, k: (i, 0)),
                scratch_shapes=scratch),
            compiler_params=cparams,
        )(A_cnt, x, x, inv_deg, Wl, Wr, b)

    G = pool.shape[0]
    n_row_tiles = Np // tm
    partials = pl.pallas_call(
        sage_layer_pool_kernel,
        out_shape=jax.ShapeDtypeStruct((n_row_tiles, G, Dp), jnp.float32),
        grid_spec=pltpu.PrefetchScalarGridSpec(
            num_scalar_prefetch=0, grid=grid,
            in_specs=in_specs + [pl.BlockSpec((G, tm), lambda i, k: (0, i))],
            out_specs=pl.BlockSpec((None, G, Dp), lambda i, k: (i, 0, 0)),
            scratch_shapes=scratch),
        compiler_params=cparams,
    )(A_cnt, x, x, inv_deg, Wl, Wr, b, pool)
    return jnp.sum(partials, axis=0)         # tiny [n_row_tiles, G, Dp] reduction


# ------------------------------ Glue (plain JAX) ---------------------------

def _pad2(a, rows, cols):
    return jnp.pad(a, ((0, rows - a.shape[0]), (0, cols - a.shape[1])))


def init_params(key, num_features, dim, num_gc_layers):
    params = []
    for i in range(num_gc_layers):
        in_dim = num_features if i == 0 else dim
        key, k1, k2, k3 = jax.random.split(key, 4)
        Wl = 0.1 * jax.random.normal(k1, (in_dim, dim), jnp.float32)  # lin_l (aggregated)
        Wr = 0.1 * jax.random.normal(k2, (in_dim, dim), jnp.float32)  # lin_r (root/self)
        b = 0.1 * jax.random.normal(k3, (1, dim), jnp.float32)        # lin_l bias
        params.append((Wl, Wr, b))
    return params


@partial(jax.jit, static_argnums=(4,))
def encoder_forward(x, edge_index, batch, params, num_graphs):
    """Encoder.forward (SAGE, use_bn=0, JK='last', global_pool='sum') -> [G, dim] f32."""
    if x is None:  # PyTorch path: x = ones((N, 1))
        x = jnp.ones((batch.shape[0], 1), jnp.float32)
    N, F = x.shape
    dim = params[-1][0].shape[1]
    Np = _pad_nodes(N)

    # Mean aggregation operands: int8 integer in-edge counts (exact up to multiplicity 127
    # per (dst, src) pair) + f32 inverse in-degree applied in-kernel.
    src, dst = edge_index[0], edge_index[1]
    counts = jnp.zeros((Np, Np), jnp.float32).at[dst, src].add(1.0)
    deg = jnp.sum(counts, axis=1, keepdims=True)
    inv_deg = 1.0 / jnp.maximum(deg, 1.0)                    # f32 [Np, 1]
    A_cnt = counts.astype(jnp.int8)                          # int8 [Np, Np] HBM stream

    # global_add_pool membership matrix P[g, i] = 1 if batch[i] == g (0/1 exact in bf16).
    # Padded node columns are zero, which also neutralizes the relu(bias) values that
    # padded rows acquire after each layer (same for padded columns of A_cnt).
    P = (batch[None, :] == jnp.arange(num_graphs)[:, None])
    P = jnp.pad(P, ((0, 0), (0, Np - N))).astype(jnp.bfloat16)

    # Node features: zero-pad rows to Np and feature dim to a lane-friendly multiple.
    h = _pad2(x, Np, _pad_feature_dim(F)).astype(jnp.bfloat16)

    pooled = None
    num_layers = len(params)
    for li, (Wl, Wr, b) in enumerate(params):
        in_dim, out_dim = Wl.shape
        Ip, Op = _pad_feature_dim(in_dim), _pad_feature_dim(out_dim)
        Wl_p = _pad2(Wl, Ip, Op).astype(jnp.bfloat16)
        Wr_p = _pad2(Wr, Ip, Op).astype(jnp.bfloat16)
        b_p = _pad2(b, 1, Op).astype(jnp.float32)
        if li == num_layers - 1:
            # JK='last': only the final layer is pooled; pool fused into its epilogue.
            pooled = sage_layer(A_cnt, inv_deg, h, Wl_p, Wr_p, b_p, pool=P)
        else:
            h = sage_layer(A_cnt, inv_deg, h, Wl_p, Wr_p, b_p)

    return pooled[:, :dim]


# ------------------------------ Reference (pure JAX, f32) --------------------

def encoder_reference(x, edge_index, batch, params, num_graphs):
    N = x.shape[0]
    src, dst = edge_index[0], edge_index[1]
    adj = jnp.zeros((N, N), jnp.float32).at[dst, src].add(1.0)
    A = adj / jnp.maximum(jnp.sum(adj, axis=1, keepdims=True), 1.0)
    P = (batch[None, :] == jnp.arange(num_graphs)[:, None]).astype(jnp.float32)
    h = x
    for Wl, Wr, b in params:
        h = jnp.maximum(A @ h @ Wl + h @ Wr + b, 0.0)
    return P @ h   # JK='last', global_add_pool


# ----------------------------------- main -----------------------------------

if __name__ == "__main__":
    num_features = 16
    dim = 32
    num_gc_layers = 3
    N = 64          # nodes
    E = 256         # edges
    G = 4           # graphs (16 nodes each)

    key = jax.random.PRNGKey(0)
    key, kx, ke = jax.random.split(key, 3)

    x = jax.random.normal(kx, (N, num_features), jnp.float32)
    edge_index = jax.random.randint(ke, (2, E), 0, N, dtype=jnp.int32)
    batch = jnp.repeat(jnp.arange(G, dtype=jnp.int32), N // G)

    params = init_params(key, num_features, dim, num_gc_layers)

    out = jax.block_until_ready(encoder_forward(x, edge_index, batch, params, G))
    ref = encoder_reference(x, edge_index, batch, params, G)

    assert out.shape == (G, dim)
    # bf16 MXU feeds (f32 accumulation) -> compare against the f32 reference with bf16 tolerance.
    assert jnp.allclose(out, ref, rtol=5e-2, atol=5e-2), (
        f"mismatch vs reference, max abs err = {float(jnp.max(jnp.abs(out - ref)))}")

    print("KERNEL_OK")
</pallas_src>

<mosaic_0001>
module attributes {stable_mosaic.version = 11 : i64} {
  func.func private @main(%arg0: i32) attributes {dimension_semantics = [#tpu.dimension_semantics<core_parallel>], iteration_bounds = array<i64: 2>, tpu.core_type = #tpu.core_type<sc_scalar_subcore>, window_params = []} {
    return
  }
}

module attributes {stable_mosaic.version = 11 : i64} {
  func.func private @main(%arg0: i32) attributes {dimension_semantics = [#tpu.dimension_semantics<core_parallel>], iteration_bounds = array<i64: 2>, tpu.core_type = #tpu.core_type<sc_scalar_subcore>, window_params = []} {
    return
  }
}

module attributes {stable_mosaic.version = 11 : i64} {
  func.func @sage_layer_kernel(%arg0: i32, %arg1: i32, %arg2: memref<512x512xi8, #tpu.memory_space<vmem>>, %arg3: memref<512x128xbf16, #tpu.memory_space<vmem>>, %arg4: memref<512x128xbf16, #tpu.memory_space<vmem>>, %arg5: memref<512x1xf32, #tpu.memory_space<vmem>>, %arg6: memref<128x128xbf16, #tpu.memory_space<vmem>>, %arg7: memref<128x128xbf16, #tpu.memory_space<vmem>>, %arg8: memref<1x128xf32, #tpu.memory_space<vmem>>, %arg9: memref<512x128xbf16, #tpu.memory_space<vmem>>, %arg10: memref<512x128xf32, #tpu.memory_space<vmem>>) attributes {dimension_semantics = [#tpu.dimension_semantics<parallel>, #tpu.dimension_semantics<arbitrary>], iteration_bounds = array<i64: 1, 1>, scalar_prefetch = 0 : i64, scratch_operands = 1 : i64, tpu.core_type = #tpu.core_type<tc>, window_params = [{transform_indices = @transform_0, window_bounds = array<i64: 512, 512>}, {transform_indices = @transform_1, window_bounds = array<i64: 512, 128>}, {transform_indices = @transform_2, window_bounds = array<i64: 512, 128>}, {transform_indices = @transform_3, window_bounds = array<i64: 512, 1>}, {pipeline_mode = #tpu.pipeline_mode<synchronous>, transform_indices = @transform_4, window_bounds = array<i64: 128, 128>}, {pipeline_mode = #tpu.pipeline_mode<synchronous>, transform_indices = @transform_5, window_bounds = array<i64: 128, 128>}, {pipeline_mode = #tpu.pipeline_mode<synchronous>, transform_indices = @transform_6, window_bounds = array<i64: 1, 128>}, {transform_indices = @transform_7, window_bounds = array<i64: 512, 128>}]} {
    %c0_i32 = arith.constant 0 : i32
    %0 = arith.cmpi eq, %arg1, %c0_i32 : i32
    %1 = arith.extui %0 : i1 to i32
    %c0_i32_0 = arith.constant 0 : i32
    %2 = arith.cmpi ne, %1, %c0_i32_0 : i32
    scf.if %2 {
      %cst_10 = arith.constant 0.000000e+00 : f32
      %13 = vector.broadcast %cst_10 : f32 to vector<512x128xf32>
      %c0_11 = arith.constant 0 : index
      %c0_12 = arith.constant 0 : index
      %14 = vector.load %arg10[%c0_11, %c0_12] : memref<512x128xf32, #tpu.memory_space<vmem>>, vector<512x128xf32>
      tpu.vector_store %arg10[%c0_11, %c0_12], %13 {strides = array<i32>} : memref<512x128xf32, #tpu.memory_space<vmem>>, vector<512x128xf32>,
    } else {
    }
    %c0 = arith.constant 0 : index
    %c0_1 = arith.constant 0 : index
    %3 = vector.load %arg10[%c0, %c0_1] : memref<512x128xf32, #tpu.memory_space<vmem>>, vector<512x128xf32>
    %c0_2 = arith.constant 0 : index
    %c0_3 = arith.constant 0 : index
    %4 = vector.load %arg2[%c0_2, %c0_3] : memref<512x512xi8, #tpu.memory_space<vmem>>, vector<512x512xi8>
    %5 = arith.sitofp %4 : vector<512x512xi8> to vector<512x512xbf16>
    %c0_4 = arith.constant 0 : index
    %c0_5 = arith.constant 0 : index
    %6 = vector.load %arg3[%c0_4, %c0_5] : memref<512x128xbf16, #tpu.memory_space<vmem>>, vector<512x128xbf16>
    %cst = arith.constant dense<0.000000e+00> : vector<512x128xf32>
    %7 = tpu.matmul %5, %6, %cst {dimension_numbers = #tpu.dot_dimension_numbers<[1], [0], [0], [1], [0, 0, 1, 1], [], []>} : vector<512x512xbf16>, vector<512x128xbf16>, vector<512x128xf32> -> vector<512x128xf32>
    %8 = arith.addf %3, %7 : vector<512x128xf32>
    %c0_6 = arith.constant 0 : index
    %c0_7 = arith.constant 0 : index
    %9 = vector.load %arg10[%c0_6, %c0_7] : memref<512x128xf32, #tpu.memory_space<vmem>>, vector<512x128xf32>
    tpu.vector_store %arg10[%c0_6, %c0_7], %8 {strides = array<i32>} : memref<512x128xf32, #tpu.memory_space<vmem>>, vector<512x128xf32>,
    %c0_i32_8 = arith.constant 0 : i32
    %10 = arith.cmpi eq, %arg1, %c0_i32_8 : i32
    %11 = arith.extui %10 : i1 to i32
    %c0_i32_9 = arith.constant 0 : i32
    %12 = arith.cmpi ne, %11, %c0_i32_9 : i32
    scf.if %12 {
      %c0_10 = arith.constant 0 : index
      %c0_11 = arith.constant 0 : index
      %13 = vector.load %arg10[%c0_10, %c0_11] : memref<512x128xf32, #tpu.memory_space<vmem>>, vector<512x128xf32>
      %c0_12 = arith.constant 0 : index
      %c0_13 = arith.constant 0 : index
      %14 = vector.load %arg5[%c0_12, %c0_13] : memref<512x1xf32, #tpu.memory_space<vmem>>, vector<512x1xf32>
      %15 = vector.broadcast %14 : vector<512x1xf32> to vector<512x128xf32>
      %16 = arith.mulf %13, %15 : vector<512x128xf32>
      %17 = arith.truncf %16 : vector<512x128xf32> to vector<512x128xbf16>
      %c0_14 = arith.constant 0 : index
      %c0_15 = arith.constant 0 : index
      %18 = vector.load %arg6[%c0_14, %c0_15] : memref<128x128xbf16, #tpu.memory_space<vmem>>, vector<128x128xbf16>
      %cst_16 = arith.constant dense<0.000000e+00> : vector<512x128xf32>
      %19 = tpu.matmul %17, %18, %cst_16 {dimension_numbers = #tpu.dot_dimension_numbers<[1], [0], [0], [1], [0, 0, 1, 1], [], []>} : vector<512x128xbf16>, vector<128x128xbf16>, vector<512x128xf32> -> vector<512x128xf32>
      %c0_17 = arith.constant 0 : index
      %c0_18 = arith.constant 0 : index
      %20 = vector.load %arg4[%c0_17, %c0_18] : memref<512x128xbf16, #tpu.memory_space<vmem>>, vector<512x128xbf16>
      %c0_19 = arith.constant 0 : index
      %c0_20 = arith.constant 0 : index
      %21 = vector.load %arg7[%c0_19, %c0_20] : memref<128x128xbf16, #tpu.memory_space<vmem>>, vector<128x128xbf16>
      %cst_21 = arith.constant dense<0.000000e+00> : vector<512x128xf32>
      %22 = tpu.matmul %20, %21, %cst_21 {dimension_numbers = #tpu.dot_dimension_numbers<[1], [0], [0], [1], [0, 0, 1, 1], [], []>} : vector<512x128xbf16>, vector<128x128xbf16>, vector<512x128xf32> -> vector<512x128xf32>
      %23 = arith.addf %19, %22 : vector<512x128xf32>
      %c0_22 = arith.constant 0 : index
      %c0_23 = arith.constant 0 : index
      %24 = vector.load %arg8[%c0_22, %c0_23] : memref<1x128xf32, #tpu.memory_space<vmem>>, vector<1x128xf32>
      %25 = vector.broadcast %24 : vector<1x128xf32> to vector<512x128xf32>
      %26 = arith.addf %23, %25 : vector<512x128xf32>
      %cst_24 = arith.constant 0.000000e+00 : f32
      %27 = vector.broadcast %cst_24 : f32 to vector<512x128xf32>
      %28 = arith.maximumf %26, %27 : vector<512x128xf32>
      %29 = arith.truncf %28 : vector<512x128xf32> to vector<512x128xbf16>
      %c0_25 = arith.constant 0 : index
      %c0_26 = arith.constant 0 : index
      %30 = vector.load %arg9[%c0_25, %c0_26] : memref<512x128xbf16, #tpu.memory_space<vmem>>, vector<512x128xbf16>
      tpu.vector_store %arg9[%c0_25, %c0_26], %29 {strides = array<i32>} : memref<512x128xbf16, #tpu.memory_space<vmem>>, vector<512x128xbf16>,
    } else {
    }
    return
  }
  func.func @transform_0(%arg0: i32, %arg1: i32) -> (i32, i32) {
    %c0_i32 = arith.constant 0 : i32
    return %arg0, %arg1 : i32, i32
  }
  func.func @transform_1(%arg0: i32, %arg1: i32) -> (i32, i32) {
    %c0_i32 = arith.constant 0 : i32
    %c0_i32_0 = arith.constant 0 : i32
    return %arg1, %c0_i32 : i32, i32
  }
  func.func @transform_2(%arg0: i32, %arg1: i32) -> (i32, i32) {
    %c0_i32 = arith.constant 0 : i32
    %c0_i32_0 = arith.constant 0 : i32
    return %arg0, %c0_i32 : i32, i32
  }
  func.func @transform_3(%arg0: i32, %arg1: i32) -> (i32, i32) {
    %c0_i32 = arith.constant 0 : i32
    %c0_i32_0 = arith.constant 0 : i32
    return %arg0, %c0_i32 : i32, i32
  }
  func.func @transform_4(%arg0: i32, %arg1: i32) -> (i32, i32) {
    %c0_i32 = arith.constant 0 : i32
    %c0_i32_0 = arith.constant 0 : i32
    %c0_i32_1 = arith.constant 0 : i32
    return %c0_i32, %c0_i32_0 : i32, i32
  }
  func.func @transform_5(%arg0: i32, %arg1: i32) -> (i32, i32) {
    %c0_i32 = arith.constant 0 : i32
    %c0_i32_0 = arith.constant 0 : i32
    %c0_i32_1 = arith.constant 0 : i32
    return %c0_i32, %c0_i32_0 : i32, i32
  }
  func.func @transform_6(%arg0: i32, %arg1: i32) -> (i32, i32) {
    %c0_i32 = arith.constant 0 : i32
    %c0_i32_0 = arith.constant 0 : i32
    %c0_i32_1 = arith.constant 0 : i32
    return %c0_i32, %c0_i32_0 : i32, i32
  }
  func.func @transform_7(%arg0: i32, %arg1: i32) -> (i32, i32) {
    %c0_i32 = arith.constant 0 : i32
    %c0_i32_0 = arith.constant 0 : i32
    return %arg0, %c0_i32 : i32, i32
  }
}

module attributes {stable_mosaic.version = 11 : i64} {
  func.func @sage_layer_pool_kernel(%arg0: i32, %arg1: i32, %arg2: memref<512x512xi8, #tpu.memory_space<vmem>>, %arg3: memref<512x128xbf16, #tpu.memory_space<vmem>>, %arg4: memref<512x128xbf16, #tpu.memory_space<vmem>>, %arg5: memref<512x1xf32, #tpu.memory_space<vmem>>, %arg6: memref<128x128xbf16, #tpu.memory_space<vmem>>, %arg7: memref<128x128xbf16, #tpu.memory_space<vmem>>, %arg8: memref<1x128xf32, #tpu.memory_space<vmem>>, %arg9: memref<4x512xbf16, #tpu.memory_space<vmem>>, %arg10: memref<1x4x128xf32, #tpu.memory_space<vmem>>, %arg11: memref<512x128xf32, #tpu.memory_space<vmem>>) attributes {dimension_semantics = [#tpu.dimension_semantics<parallel>, #tpu.dimension_semantics<arbitrary>], iteration_bounds = array<i64: 1, 1>, scalar_prefetch = 0 : i64, scratch_operands = 1 : i64, tpu.core_type = #tpu.core_type<tc>, window_params = [{transform_indices = @transform_0, window_bounds = array<i64: 512, 512>}, {transform_indices = @transform_1, window_bounds = array<i64: 512, 128>}, {transform_indices = @transform_2, window_bounds = array<i64: 512, 128>}, {transform_indices = @transform_3, window_bounds = array<i64: 512, 1>}, {pipeline_mode = #tpu.pipeline_mode<synchronous>, transform_indices = @transform_4, window_bounds = array<i64: 128, 128>}, {pipeline_mode = #tpu.pipeline_mode<synchronous>, transform_indices = @transform_5, window_bounds = array<i64: 128, 128>}, {pipeline_mode = #tpu.pipeline_mode<synchronous>, transform_indices = @transform_6, window_bounds = array<i64: 1, 128>}, {transform_indices = @transform_7, window_bounds = array<i64: 4, 512>}, {transform_indices = @transform_8, window_bounds = array<i64: 1, 4, 128>}]} {
    %c0_i32 = arith.constant 0 : i32
    %0 = arith.cmpi eq, %arg1, %c0_i32 : i32
    %1 = arith.extui %0 : i1 to i32
    %c0_i32_0 = arith.constant 0 : i32
    %2 = arith.cmpi ne, %1, %c0_i32_0 : i32
    scf.if %2 {
      %cst_10 = arith.constant 0.000000e+00 : f32
      %13 = vector.broadcast %cst_10 : f32 to vector<512x128xf32>
      %c0_11 = arith.constant 0 : index
      %c0_12 = arith.constant 0 : index
      %14 = vector.load %arg11[%c0_11, %c0_12] : memref<512x128xf32, #tpu.memory_space<vmem>>, vector<512x128xf32>
      tpu.vector_store %arg11[%c0_11, %c0_12], %13 {strides = array<i32>} : memref<512x128xf32, #tpu.memory_space<vmem>>, vector<512x128xf32>,
    } else {
    }
    %c0 = arith.constant 0 : index
    %c0_1 = arith.constant 0 : index
    %3 = vector.load %arg11[%c0, %c0_1] : memref<512x128xf32, #tpu.memory_space<vmem>>, vector<512x128xf32>
    %c0_2 = arith.constant 0 : index
    %c0_3 = arith.constant 0 : index
    %4 = vector.load %arg2[%c0_2, %c0_3] : memref<512x512xi8, #tpu.memory_space<vmem>>, vector<512x512xi8>
    %5 = arith.sitofp %4 : vector<512x512xi8> to vector<512x512xbf16>
    %c0_4 = arith.constant 0 : index
    %c0_5 = arith.constant 0 : index
    %6 = vector.load %arg3[%c0_4, %c0_5] : memref<512x128xbf16, #tpu.memory_space<vmem>>, vector<512x128xbf16>
    %cst = arith.constant dense<0.000000e+00> : vector<512x128xf32>
    %7 = tpu.matmul %5, %6, %cst {dimension_numbers = #tpu.dot_dimension_numbers<[1], [0], [0], [1], [0, 0, 1, 1], [], []>} : vector<512x512xbf16>, vector<512x128xbf16>, vector<512x128xf32> -> vector<512x128xf32>
    %8 = arith.addf %3, %7 : vector<512x128xf32>
    %c0_6 = arith.constant 0 : index
    %c0_7 = arith.constant 0 : index
    %9 = vector.load %arg11[%c0_6, %c0_7] : memref<512x128xf32, #tpu.memory_space<vmem>>, vector<512x128xf32>
    tpu.vector_store %arg11[%c0_6, %c0_7], %8 {strides = array<i32>} : memref<512x128xf32, #tpu.memory_space<vmem>>, vector<512x128xf32>,
    %c0_i32_8 = arith.constant 0 : i32
    %10 = arith.cmpi eq, %arg1, %c0_i32_8 : i32
    %11 = arith.extui %10 : i1 to i32
    %c0_i32_9 = arith.constant 0 : i32
    %12 = arith.cmpi ne, %11, %c0_i32_9 : i32
    scf.if %12 {
      %c0_10 = arith.constant 0 : index
      %c0_11 = arith.constant 0 : index
      %13 = vector.load %arg11[%c0_10, %c0_11] : memref<512x128xf32, #tpu.memory_space<vmem>>, vector<512x128xf32>
      %c0_12 = arith.constant 0 : index
      %c0_13 = arith.constant 0 : index
      %14 = vector.load %arg5[%c0_12, %c0_13] : memref<512x1xf32, #tpu.memory_space<vmem>>, vector<512x1xf32>
      %15 = vector.broadcast %14 : vector<512x1xf32> to vector<512x128xf32>
      %16 = arith.mulf %13, %15 : vector<512x128xf32>
      %17 = arith.truncf %16 : vector<512x128xf32> to vector<512x128xbf16>
      %c0_14 = arith.constant 0 : index
      %c0_15 = arith.constant 0 : index
      %18 = vector.load %arg6[%c0_14, %c0_15] : memref<128x128xbf16, #tpu.memory_space<vmem>>, vector<128x128xbf16>
      %cst_16 = arith.constant dense<0.000000e+00> : vector<512x128xf32>
      %19 = tpu.matmul %17, %18, %cst_16 {dimension_numbers = #tpu.dot_dimension_numbers<[1], [0], [0], [1], [0, 0, 1, 1], [], []>} : vector<512x128xbf16>, vector<128x128xbf16>, vector<512x128xf32> -> vector<512x128xf32>
      %c0_17 = arith.constant 0 : index
      %c0_18 = arith.constant 0 : index
      %20 = vector.load %arg4[%c0_17, %c0_18] : memref<512x128xbf16, #tpu.memory_space<vmem>>, vector<512x128xbf16>
      %c0_19 = arith.constant 0 : index
      %c0_20 = arith.constant 0 : index
      %21 = vector.load %arg7[%c0_19, %c0_20] : memref<128x128xbf16, #tpu.memory_space<vmem>>, vector<128x128xbf16>
      %cst_21 = arith.constant dense<0.000000e+00> : vector<512x128xf32>
      %22 = tpu.matmul %20, %21, %cst_21 {dimension_numbers = #tpu.dot_dimension_numbers<[1], [0], [0], [1], [0, 0, 1, 1], [], []>} : vector<512x128xbf16>, vector<128x128xbf16>, vector<512x128xf32> -> vector<512x128xf32>
      %23 = arith.addf %19, %22 : vector<512x128xf32>
      %c0_22 = arith.constant 0 : index
      %c0_23 = arith.constant 0 : index
      %24 = vector.load %arg8[%c0_22, %c0_23] : memref<1x128xf32, #tpu.memory_space<vmem>>, vector<1x128xf32>
      %25 = vector.broadcast %24 : vector<1x128xf32> to vector<512x128xf32>
      %26 = arith.addf %23, %25 : vector<512x128xf32>
      %cst_24 = arith.constant 0.000000e+00 : f32
      %27 = vector.broadcast %cst_24 : f32 to vector<512x128xf32>
      %28 = arith.maximumf %26, %27 : vector<512x128xf32>
      %29 = arith.truncf %28 : vector<512x128xf32> to vector<512x128xbf16>
      %c0_25 = arith.constant 0 : index
      %c0_26 = arith.constant 0 : index
      %30 = vector.load %arg9[%c0_25, %c0_26] : memref<4x512xbf16, #tpu.memory_space<vmem>>, vector<4x512xbf16>
      %cst_27 = arith.constant dense<0.000000e+00> : vector<4x128xf32>
      %31 = tpu.matmul %30, %29, %cst_27 {dimension_numbers = #tpu.dot_dimension_numbers<[1], [0], [0], [1], [0, 0, 1, 1], [], []>} : vector<4x512xbf16>, vector<512x128xbf16>, vector<4x128xf32> -> vector<4x128xf32>
      %c0_28 = arith.constant 0 : index
      %c0_29 = arith.constant 0 : index
      %c0_30 = arith.constant 0 : index
      %32 = vector.load %arg10[%c0_28, %c0_29, %c0_30] : memref<1x4x128xf32, #tpu.memory_space<vmem>>, vector<1x4x128xf32>
      %33 = vector.shape_cast %32 : vector<1x4x128xf32> to vector<4x128xf32>
      %34 = vector.shape_cast %31 : vector<4x128xf32> to vector<1x4x128xf32>
      tpu.vector_store %arg10[%c0_28, %c0_29, %c0_30], %34 {strides = array<i32>} : memref<1x4x128xf32, #tpu.memory_space<vmem>>, vector<1x4x128xf32>,
    } else {
    }
    return
  }
  func.func @transform_0(%arg0: i32, %arg1: i32) -> (i32, i32) {
    %c0_i32 = arith.constant 0 : i32
    return %arg0, %arg1 : i32, i32
  }
  func.func @transform_1(%arg0: i32, %arg1: i32) -> (i32, i32) {
    %c0_i32 = arith.constant 0 : i32
    %c0_i32_0 = arith.constant 0 : i32
    return %arg1, %c0_i32 : i32, i32
  }
  func.func @transform_2(%arg0: i32, %arg1: i32) -> (i32, i32) {
    %c0_i32 = arith.constant 0 : i32
    %c0_i32_0 = arith.constant 0 : i32
    return %arg0, %c0_i32 : i32, i32
  }
  func.func @transform_3(%arg0: i32, %arg1: i32) -> (i32, i32) {
    %c0_i32 = arith.constant 0 : i32
    %c0_i32_0 = arith.constant 0 : i32
    return %arg0, %c0_i32 : i32, i32
  }
  func.func @transform_4(%arg0: i32, %arg1: i32) -> (i32, i32) {
    %c0_i32 = arith.constant 0 : i32
    %c0_i32_0 = arith.constant 0 : i32
    %c0_i32_1 = arith.constant 0 : i32
    return %c0_i32, %c0_i32_0 : i32, i32
  }
  func.func @transform_5(%arg0: i32, %arg1: i32) -> (i32, i32) {
    %c0_i32 = arith.constant 0 : i32
    %c0_i32_0 = arith.constant 0 : i32
    %c0_i32_1 = arith.constant 0 : i32
    return %c0_i32, %c0_i32_0 : i32, i32
  }
  func.func @transform_6(%arg0: i32, %arg1: i32) -> (i32, i32) {
    %c0_i32 = arith.constant 0 : i32
    %c0_i32_0 = arith.constant 0 : i32
    %c0_i32_1 = arith.constant 0 : i32
    return %c0_i32, %c0_i32_0 : i32, i32
  }
  func.func @transform_7(%arg0: i32, %arg1: i32) -> (i32, i32) {
    %c0_i32 = arith.constant 0 : i32
    %c0_i32_0 = arith.constant 0 : i32
    return %c0_i32, %arg0 : i32, i32
  }
  func.func @transform_8(%arg0: i32, %arg1: i32) -> (i32, i32, i32) {
    %c0_i32 = arith.constant 0 : i32
    %c0_i32_0 = arith.constant 0 : i32
    %c0_i32_1 = arith.constant 0 : i32
    return %arg0, %c0_i32, %c0_i32_0 : i32, i32, i32
  }
}

</mosaic_0001>

<bundles_post_ra>
// kernel: encoder_forward.3
= control target key start
LH: loop header
LB: loop body
LE: loop exit
PB: predicated region body
PF: predicated region fallthrough
CT: control target
= control target key end

     0   :  { %v4196_v0 = vmov 0   ;;  %s5176_s1 = inlined_call_operand.vmem [shape: bf16[512,128], index: 1, kind: input, shape index: {}, may-alias: {1,2}]   ;;  %s5177_s0 = inlined_call_operand.vmem [shape: s8[512,512], index: 0, kind: input, shape index: {}]   ;;  %s5178_s5 = inlined_call_operand.vmem [shape: bf16[128,128], index: 5, kind: input, shape index: {}]   ;;  %s5179_s3 = inlined_call_operand.vmem [shape: f32[512,1], index: 3, kind: input, shape index: {}]   ;;  %s5180_s2 = inlined_call_operand.vmem [shape: bf16[512,128], index: 2, kind: input, shape index: {}, may-alias: {1,2}]   ;;  %s5181_s4 = inlined_call_operand.vmem [shape: bf16[128,128], index: 4, kind: input, shape index: {}]   ;;  %s5182_s6 = inlined_call_operand.vmem [shape: f32[1,128], index: 6, kind: input, shape index: {}]   ;;  %s5183_s7 = inlined_call_operand.vmem [shape: bf16[512,128], index: 7, kind: output, shape index: {}]  }
   0x1   :  { %607 = vmatprep.subr.bf16.mxu0 %v4196_v0  ;;  %v4116_v1 = vld [vmem:[%s5176_s1] sm:$0xff]   ;;  %3921 = vmatprep.subr.bf16.mxu1 %v4196_v0  ;;  %v4117_v2 = vld [vmem:[%s5176_s1 + $0x8] sm:$0xff]   ;;  %v4118_v3 = vld [vmem:[%s5176_s1 + $0x10] sm:$0xff]  }
   0x2   :  { %4114 = vset.pattern.permute.xlu0 %v4196_v0  ;;  %4115 = vset.pattern.permute.xlu1 %v4196_v0  ;;  %v4119_v4 = vld [vmem:[%s5176_s1 + $0x18] sm:$0xff]   ;;  %v4120_v5 = vld [vmem:[%s5176_s1 + $0x20] sm:$0xff]   ;;  %v4267_v6 = vld [vmem:[%s5177_s0 + $0x8] sm:$0xff] }
   0x3   :  { %608 = vmatpush1.bf16.msra.mxu0 %v4116_v1  ;;  %3937 = vmatpush1.bf16.msra.mxu1 %v4116_v1  ;;  %v224_v7 = vunpack.c.l.s8.bf16 %v4267_v6  ;;  %v4121_v8 = vld [vmem:[%s5176_s1 + $0x28] sm:$0xff]   ;;  %v4122_v9 = vld [vmem:[%s5176_s1 + $0x30] sm:$0xff]   ;;  %v4123_v10 = vld [vmem:[%s5176_s1 + $0x38] sm:$0xff]   ;;  %v228_v25 = vunpack.c.h.s8.bf16 %v4267_v6 }
   0x4   :  { %609 = vmatprep.subr.bf16.mxu0 %v4196_v0  ;;  %3922 = vmatprep.subr.bf16.mxu1 %v4196_v0  ;;  %v4124_v11 = vld [vmem:[%s5176_s1 + $0x40] sm:$0xff]   ;;  %v192_v12 = vld [vmem:[%s5177_s0 + $0x108] sm:$0xff]  ;;  %v4126_v15 = vld [vmem:[%s5176_s1 + $0x50] sm:$0xff]  }
   0x5   :  { %639 = vmatprep.mubr.bf16.mxu0 %v224_v7  ;;  %v288_v13 = vunpack.c.l.s8.bf16 %v192_v12  ;;  %v4125_v14 = vld [vmem:[%s5176_s1 + $0x48] sm:$0xff]   ;;  %v4127_v16 = vld [vmem:[%s5176_s1 + $0x58] sm:$0xff]   ;;  %v4128_v17 = vld [vmem:[%s5176_s1 + $0x60] sm:$0xff]   ;;  %v292_v27 = vunpack.c.h.s8.bf16 %v192_v12 }
   0x6   :  { %v4129_v18 = vld [vmem:[%s5176_s1 + $0x68] sm:$0xff]   ;;  %v4130_v19 = vld [vmem:[%s5176_s1 + $0x70] sm:$0xff]   ;;  %v4131_v20 = vld [vmem:[%s5176_s1 + $0x78] sm:$0xff]  }
   0x7   :  { %610 = vmatpush1.bf16.msra.mxu0 %v4117_v2  ;;  %3938 = vmatpush1.bf16.msra.mxu1 %v4117_v2  ;;  %v159_v21 = vld [vmem:[%s5177_s0] sm:$0xff]  ;;  %v4133_v28 = vld [vmem:[%s5176_s1 + $0x88] sm:$0xff]   ;;  %v4134_v34 = vld [vmem:[%s5176_s1 + $0x90] sm:$0xff]  }
   0x8   :  { %611 = vmatprep.subr.bf16.mxu0 %v4196_v0  ;;  %3923 = vmatprep.subr.bf16.mxu1 %v4196_v0  ;;  %v191_v22 = vld [vmem:[%s5177_s0 + $0x100] sm:$0xff]  ;;  %v223_v23 = vunpack.c.l.s8.bf16 %v159_v21  ;;  %v164_v29 = vld [vmem:[%s5177_s0 + $0x28] sm:$0xff]  ;;  %v227_v31 = vunpack.c.h.s8.bf16 %v159_v21  ;;  %v4135_v37 = vld [vmem:[%s5176_s1 + $0x98] sm:$0xff]  }
   0x9   :  { %767 = vmatprep.mubr.bf16.mxu1 %v288_v13  ;;  %v287_v24 = vunpack.c.l.s8.bf16 %v191_v22  ;;  %v4132_v26 = vld [vmem:[%s5176_s1 + $0x80] sm:$0xff]   ;;  %v196_v30 = vld [vmem:[%s5177_s0 + $0x128] sm:$0xff]  ;;  %v291_v32 = vunpack.c.h.s8.bf16 %v191_v22  ;;  %v232_v33 = vunpack.c.l.s8.bf16 %v164_v29  ;;  %v236_v41 = vunpack.c.h.s8.bf16 %v164_v29  ;;  %v4138_v50 = vld [vmem:[%s5176_s1 + $0xb0] sm:$0xff]  }
   0xa   :  { %v296_v35 = vunpack.c.l.s8.bf16 %v196_v30  ;;  %v163_v36 = vld [vmem:[%s5177_s0 + $0x20] sm:$0xff]  ;;  %v300_v43 = vunpack.c.h.s8.bf16 %v196_v30  ;;  %v4137_v44 = vld [vmem:[%s5176_s1 + $0xa8] sm:$0xff]   ;;  %v4139_v53 = vld [vmem:[%s5176_s1 + $0xb8] sm:$0xff]  }
   0xb   :  { %612 = vmatpush1.bf16.msra.mxu0 %v4118_v3  ;;  %3939 = vmatpush1.bf16.msra.mxu1 %v4118_v3  ;;  %v195_v38 = vld [vmem:[%s5177_s0 + $0x120] sm:$0xff]  ;;  %v231_v39 = vunpack.c.l.s8.bf16 %v163_v36  ;;  %v168_v45 = vld [vmem:[%s5177_s0 + $0x48] sm:$0xff]  ;;  %v235_v47 = vunpack.c.h.s8.bf16 %v163_v36  ;;  %v4142_v3 = vld [vmem:[%s5176_s1 + $0xd0] sm:$0xff]  }
   0xc   :  { %613 = vmatprep.subr.bf16.mxu0 %v4196_v0  ;;  %3924 = vmatprep.subr.bf16.mxu1 %v4196_v0  ;;  %v295_v40 = vunpack.c.l.s8.bf16 %v195_v38  ;;  %v4136_v42 = vld [vmem:[%s5176_s1 + $0xa0] sm:$0xff]   ;;  %v200_v46 = vld [vmem:[%s5177_s0 + $0x148] sm:$0xff]  ;;  %v299_v48 = vunpack.c.h.s8.bf16 %v195_v38  ;;  %v240_v49 = vunpack.c.l.s8.bf16 %v168_v45  ;;  %v244_v57 = vunpack.c.h.s8.bf16 %v168_v45  ;;  %v4143_v6 = vld [vmem:[%s5176_s1 + $0xd8] sm:$0xff]  }
   0xd   :  { %v304_v51 = vunpack.c.l.s8.bf16 %v200_v46  ;;  %v167_v52 = vld [vmem:[%s5177_s0 + $0x40] sm:$0xff]  ;;  %v308_v59 = vunpack.c.h.s8.bf16 %v200_v46  ;;  %v4141_v60 = vld [vmem:[%s5176_s1 + $0xc8] sm:$0xff]   ;;  %v4147_v22 = vld [vmem:[%s5176_s1 + $0xf8] sm:$0xff]  }
   0xe   :  { %v199_v54 = vld [vmem:[%s5177_s0 + $0x140] sm:$0xff]  ;;  %v239_v55 = vunpack.c.l.s8.bf16 %v167_v52  ;;  %v172_v61 = vld [vmem:[%s5177_s0 + $0x68] sm:$0xff]  ;;  %v243_v63 = vunpack.c.h.s8.bf16 %v167_v52  ;;  %v4151_v36 = vld [vmem:[%s5178_s5 + $0x18] sm:$0xff]  }
   0xf   :  { %614 = vmatpush1.bf16.msra.mxu0 %v4119_v4  ;;  %3940 = vmatpush1.bf16.msra.mxu1 %v4119_v4  ;;  %v303_v56 = vunpack.c.l.s8.bf16 %v199_v54  ;;  %v4140_v58 = vld [vmem:[%s5176_s1 + $0xc0] sm:$0xff]   ;;  %v204_v62 = vld [vmem:[%s5177_s0 + $0x168] sm:$0xff]  ;;  %v307_v1 = vunpack.c.h.s8.bf16 %v199_v54  ;;  %v248_v2 = vunpack.c.l.s8.bf16 %v172_v61  ;;  %v4154_v54 = vld [vmem:[%s5178_s5 + $0x30] sm:$0xff]  }
  0x10   :  { %615 = vmatprep.subr.bf16.mxu0 %v4196_v0  ;;  %3925 = vmatprep.subr.bf16.mxu1 %v4196_v0  ;;  %v312_v4 = vunpack.c.l.s8.bf16 %v204_v62  ;;  %v203_v7 = vld [vmem:[%s5177_s0 + $0x160] sm:$0xff]  ;;  %v316_v12 = vunpack.c.h.s8.bf16 %v204_v62  ;;  %v4145_v13 = vld [vmem:[%s5176_s1 + $0xe8] sm:$0xff]  }
  0x11   :  { %v175_v21 = vld [vmem:[%s5177_s0 + $0x80] sm:$0xff]  ;;  %v180_v29 = vld [vmem:[%s5177_s0 + $0xa8] sm:$0xff] }
  0x12   :  { %v4149_v30 = vld [vmem:[%s5178_s5 + $0x8] sm:$0xff]   ;;  %v211_v38 = vld [vmem:[%s5177_s0 + $0x1a0] sm:$0xff] }
  0x13   :  { %616 = vmatpush1.bf16.msra.mxu0 %v4120_v5  ;;  %3941 = vmatpush1.bf16.msra.mxu1 %v4120_v5  ;;  %v171_v5 = vld [vmem:[%s5177_s0 + $0x60] sm:$0xff]  ;;  %v184_v46 = vld [vmem:[%s5177_s0 + $0xc8] sm:$0xff] }
  0x14   :  { %617 = vmatprep.subr.bf16.mxu0 %v4196_v0  ;;  %3926 = vmatprep.subr.bf16.mxu1 %v4196_v0  ;;  %v1380_v45 = vld [vmem:[%s5179_s3] sm:$0xff]  ;;  %v276_v62 = vunpack.c.h.s8.bf16 %v184_v46 }
  0x15   :  { %1446 = vperm.xlu0 %4114, %v1380_v45  }
  0x17   :  { %618 = vmatpush1.bf16.msra.mxu0 %v4121_v8  ;;  %3942 = vmatpush1.bf16.msra.mxu1 %v4121_v8  ;;  %v247_v8 = vunpack.c.l.s8.bf16 %v171_v5 }
  0x18   :  { %619 = vmatprep.subr.bf16.mxu0 %v4196_v0  ;;  %3927 = vmatprep.subr.bf16.mxu1 %v4196_v0 }
  0x1b   :  { %620 = vmatpush1.bf16.msra.mxu0 %v4122_v9  ;;  %3943 = vmatpush1.bf16.msra.mxu1 %v4122_v9  ;;  %v311_v9 = vunpack.c.l.s8.bf16 %v203_v7 }
  0x1c   :  { %621 = vmatprep.subr.bf16.mxu0 %v4196_v0  ;;  %3928 = vmatprep.subr.bf16.mxu1 %v4196_v0 }
  0x1f   :  { %622 = vmatpush1.bf16.msra.mxu0 %v4123_v10  ;;  %3944 = vmatpush1.bf16.msra.mxu1 %v4123_v10  ;;  %v252_v10 = vunpack.c.h.s8.bf16 %v172_v61 }
  0x20   :  { %623 = vmatprep.subr.bf16.mxu0 %v4196_v0  ;;  %3929 = vmatprep.subr.bf16.mxu1 %v4196_v0 }
  0x23   :  { %624 = vmatpush1.bf16.msra.mxu0 %v4124_v11  ;;  %3945 = vmatpush1.bf16.msra.mxu1 %v4124_v11  ;;  %v4144_v11 = vld [vmem:[%s5176_s1 + $0xe0] sm:$0xff]  }
  0x24   :  { %625 = vmatprep.subr.bf16.mxu0 %v4196_v0  ;;  %3930 = vmatprep.subr.bf16.mxu1 %v4196_v0 }
  0x27   :  { %626 = vmatpush1.bf16.msra.mxu0 %v4125_v14  ;;  %3946 = vmatpush1.bf16.msra.mxu1 %v4125_v14  ;;  %v176_v14 = vld [vmem:[%s5177_s0 + $0x88] sm:$0xff] }
  0x28   :  { %627 = vmatprep.subr.bf16.mxu0 %v4196_v0  ;;  %3931 = vmatprep.subr.bf16.mxu1 %v4196_v0 }
  0x2b   :  { %628 = vmatpush1.bf16.msra.mxu0 %v4126_v15  ;;  %3947 = vmatpush1.bf16.msra.mxu1 %v4126_v15  ;;  %v208_v15 = vld [vmem:[%s5177_s0 + $0x188] sm:$0xff] }
  0x2c   :  { %629 = vmatprep.subr.bf16.mxu0 %v4196_v0  ;;  %3932 = vmatprep.subr.bf16.mxu1 %v4196_v0 }
  0x2f   :  { %630 = vmatpush1.bf16.msra.mxu0 %v4127_v16  ;;  %3948 = vmatpush1.bf16.msra.mxu1 %v4127_v16  ;;  %v251_v16 = vunpack.c.h.s8.bf16 %v171_v5  ;;  %v1387_v5 = vld [vmem:[%s5179_s3 + $0x38] sm:$0xff] }
  0x30   :  { %631 = vmatprep.subr.bf16.mxu0 %v4196_v0  ;;  %3933 = vmatprep.subr.bf16.mxu1 %v4196_v0 }
  0x33   :  { %632 = vmatpush1.bf16.msra.mxu0 %v4128_v17  ;;  %3949 = vmatpush1.bf16.msra.mxu1 %v4128_v17  ;;  %v315_v17 = vunpack.c.h.s8.bf16 %v203_v7 }
  0x34   :  { %633 = vmatprep.subr.bf16.mxu0 %v4196_v0  ;;  %3934 = vmatprep.subr.bf16.mxu1 %v4196_v0 }
  0x37   :  { %634 = vmatpush1.bf16.msra.mxu0 %v4129_v18  ;;  %3950 = vmatpush1.bf16.msra.mxu1 %v4129_v18  ;;  %v256_v18 = vunpack.c.l.s8.bf16 %v176_v14 }
  0x38   :  { %635 = vmatprep.subr.bf16.mxu0 %v4196_v0  ;;  %3935 = vmatprep.subr.bf16.mxu1 %v4196_v0 }
  0x3b   :  { %636 = vmatpush1.bf16.msra.mxu0 %v4130_v19  ;;  %3951 = vmatpush1.bf16.msra.mxu1 %v4130_v19  ;;  %v4146_v19 = vld [vmem:[%s5176_s1 + $0xf0] sm:$0xff]  }
  0x3c   :  { %637 = vmatprep.subr.bf16.mxu0 %v4196_v0  ;;  %3936 = vmatprep.subr.bf16.mxu1 %v4196_v0 }
  0x3f   :  { %638 = vmatpush1.bf16.msra.mxu0 %v4131_v20  ;;  %3952 = vmatpush1.bf16.msra.mxu1 %v4131_v20  ;;  %v320_v20 = vunpack.c.l.s8.bf16 %v208_v15 }
  0x40   :  { %896 = vmatprep.subr.bf16.mxu0 %v4196_v0 }
  0x42   :  { %640 = vmatmul.mubr.bf16.vlgmr.msra.gmra.mrb[0].mxu0 %v223_v23  ;;  %768 = vmatmul.mubr.bf16.vlgmr.msra.gmra.mrb[0].mxu1 %v287_v24  ;;  %v207_v23 = vld [vmem:[%s5177_s0 + $0x180] sm:$0xff]  ;;  %v255_v24 = vunpack.c.l.s8.bf16 %v175_v21 }
  0x43   :  { %897 = vmatpush1.bf16.msra.mxu0 %v4132_v26  ;;  %647 = vmatprep.mubr.bf16.mxu0 %v228_v25  ;;  %v319_v25 = vunpack.c.l.s8.bf16 %v207_v23  ;;  %v260_v26 = vunpack.c.h.s8.bf16 %v176_v14  ;;  %v1390_v14 = vld [vmem:[%s5179_s3 + $0x50] sm:$0xff] }
  0x44   :  { %898 = vmatprep.subr.bf16.mxu0 %v4196_v0  ;;  %775 = vmatprep.mubr.bf16.mxu1 %v292_v27  ;;  %v324_v27 = vunpack.c.h.s8.bf16 %v208_v15  ;;  %v1391_v15 = vld [vmem:[%s5179_s3 + $0x58] sm:$0xff] }
  0x47   :  { %899 = vmatpush1.bf16.msra.mxu0 %v4133_v28  ;;  %v4148_v28 = vld [vmem:[%s5178_s5] sm:$0xff]  }
  0x48   :  { %900 = vmatprep.subr.bf16.mxu0 %v4196_v0  ;;  %3761 = vmatprep.subr.bf16.mxu1 %v4148_v28 }
  0x49   :  { %3762 = vmatpush3.bf16.msra.mxu1 %v4148_v28 }
  0x4a   :  { %648 = vmatmul.mubr.bf16.gmra.mrb[4].mxu0 %v227_v31  ;;  %776 = vmatmul.mubr.bf16.gmra.mrb[4].mxu1 %v291_v32  ;;  %v259_v31 = vunpack.c.h.s8.bf16 %v175_v21  ;;  %v323_v32 = vunpack.c.h.s8.bf16 %v207_v23  ;;  %v1393_v21 = vld [vmem:[%s5179_s3 + $0x68] sm:$0xff]  ;;  %v1394_v23 = vld [vmem:[%s5179_s3 + $0x70] sm:$0xff] }
  0x4b   :  { %655 = vmatprep.mubr.bf16.mxu0 %v232_v33  ;;  %901 = vmatpush1.bf16.msra.mxu0 %v4134_v34  ;;  %v264_v33 = vunpack.c.l.s8.bf16 %v180_v29 }
  0x4c   :  { %902 = vmatprep.subr.bf16.mxu0 %v4196_v0  ;;  %783 = vmatprep.mubr.bf16.mxu1 %v296_v35  ;;  %v4150_v35 = vld [vmem:[%s5178_s5 + $0x10] sm:$0xff]  }
  0x4d   :  { %3763 = vmatprep.subr.bf16.mxu1 %v4149_v30 }
  0x4e   :  { %3764 = vmatpush3.bf16.msra.mxu1 %v4149_v30  ;;  %v161_v30 = vld [vmem:[%s5177_s0 + $0x10] sm:$0xff] }
  0x4f   :  { %903 = vmatpush1.bf16.msra.mxu0 %v4135_v37  ;;  %v179_v37 = vld [vmem:[%s5177_s0 + $0xa0] sm:$0xff]  ;;  %3765 = vmatprep.subr.bf16.mxu1 %v4150_v35 }
  0x50   :  { %904 = vmatprep.subr.bf16.mxu0 %v4196_v0 }
  0x52   :  { %656 = vmatmul.mubr.bf16.gmra.mrb[8].mxu0 %v231_v39  ;;  %784 = vmatmul.mubr.bf16.gmra.mrb[8].mxu1 %v295_v40  ;;  %v263_v39 = vunpack.c.l.s8.bf16 %v179_v37  ;;  %v327_v40 = vunpack.c.l.s8.bf16 %v211_v38 }
  0x53   :  { %663 = vmatprep.mubr.bf16.mxu0 %v236_v41  ;;  %905 = vmatpush1.bf16.msra.mxu0 %v4136_v42  ;;  %v268_v41 = vunpack.c.h.s8.bf16 %v180_v29 }
  0x54   :  { %906 = vmatprep.subr.bf16.mxu0 %v4196_v0  ;;  %791 = vmatprep.mubr.bf16.mxu1 %v300_v43  ;;  %v4152_v43 = vld [vmem:[%s5178_s5 + $0x20] sm:$0xff]  }
  0x55   :  { %3766 = vmatpush3.bf16.msra.mxu1 %v4150_v35  ;;  %v4157_v35 = vld [vmem:[%s5180_s2 + $0x8] sm:$0xff]  }
  0x56   :  { %3767 = vmatprep.subr.bf16.mxu1 %v4151_v36 }
  0x57   :  { %907 = vmatpush1.bf16.msra.mxu0 %v4137_v44  ;;  %v4153_v44 = vld [vmem:[%s5178_s5 + $0x28] sm:$0xff]  }
  0x58   :  { %908 = vmatprep.subr.bf16.mxu0 %v4196_v0 }
  0x59   :  { %3768 = vmatpush3.bf16.msra.mxu1 %v4151_v36 }
  0x5a   :  { %664 = vmatmul.mubr.bf16.gmra.mrb[12].mxu0 %v235_v47  ;;  %792 = vmatmul.mubr.bf16.gmra.mrb[12].mxu1 %v299_v48  ;;  %v216_v47 = vld [vmem:[%s5177_s0 + $0x1c8] sm:$0xff] }
  0x5b   :  { %671 = vmatprep.mubr.bf16.mxu0 %v240_v49  ;;  %909 = vmatpush1.bf16.msra.mxu0 %v4138_v50  ;;  %v1381_v48 = vld [vmem:[%s5179_s3 + $0x8] sm:$0xff]  ;;  %v267_v49 = vunpack.c.h.s8.bf16 %v179_v37  ;;  %v331_v50 = vunpack.c.h.s8.bf16 %v211_v38  ;;  %v336_v52 = vunpack.c.l.s8.bf16 %v216_v47  ;;  %v4158_v37 = vld [vmem:[%s5180_s2 + $0x10] sm:$0xff]  }
  0x5c   :  { %910 = vmatprep.subr.bf16.mxu0 %v4196_v0  ;;  %799 = vmatprep.mubr.bf16.mxu1 %v304_v51  ;;  %v272_v51 = vunpack.c.l.s8.bf16 %v184_v46  ;;  %v1401_v38 = vld [vmem:[%s5179_s3 + $0xa8] sm:$0xff]  ;;  %v4160_v46 = vld [vmem:[%s5180_s2 + $0x20] sm:$0xff]  }
  0x5d   :  { %3769 = vmatprep.subr.bf16.mxu1 %v4152_v43  ;;  %1451 = vperm.xlu0 %4114, %v1381_v48   ;;  %v1406_v48 = vld [vmem:[%s5179_s3 + $0xd0] sm:$0xff] }
  0x5e   :  { %3770 = vmatpush3.bf16.msra.mxu1 %v4152_v43  ;;  %v229_v43 = vunpack.c.h.s8.bf16 %v161_v30 }
  0x5f   :  { %911 = vmatpush1.bf16.msra.mxu0 %v4139_v53  ;;  %3771 = vmatprep.subr.bf16.mxu1 %v4153_v44  ;;  %v1382_v53 = vld [vmem:[%s5179_s3 + $0x10] sm:$0xff] }
  0x60   :  { %912 = vmatprep.subr.bf16.mxu0 %v4196_v0  ;;  %1456 = vperm.xlu1 %4115, %v1382_v53   ;;  %v4161_v53 = vld [vmem:[%s5180_s2 + $0x28] sm:$0xff]  }
  0x62   :  { %672 = vmatmul.mubr.bf16.gmra.mrb[16].mxu0 %v239_v55  ;;  %800 = vmatmul.mubr.bf16.gmra.mrb[16].mxu1 %v303_v56  ;;  %v4155_v55 = vld [vmem:[%s5178_s5 + $0x38] sm:$0xff]   ;;  %v183_v56 = vld [vmem:[%s5177_s0 + $0xc0] sm:$0xff] }
  0x63   :  { %679 = vmatprep.mubr.bf16.mxu0 %v244_v57  ;;  %913 = vmatpush1.bf16.msra.mxu0 %v4140_v58  ;;  %v215_v57 = vld [vmem:[%s5177_s0 + $0x1c0] sm:$0xff]  ;;  %v275_v7 = vunpack.c.h.s8.bf16 %v183_v56 }
  0x64   :  { %914 = vmatprep.subr.bf16.mxu0 %v4196_v0  ;;  %807 = vmatprep.mubr.bf16.mxu1 %v308_v59  ;;  %v1384_v58 = vld [vmem:[%s5179_s3 + $0x20] sm:$0xff]  ;;  %v1383_v59 = vld [vmem:[%s5179_s3 + $0x18] sm:$0xff]  ;;  %v335_v61 = vunpack.c.l.s8.bf16 %v215_v57 }
  0x65   :  { %3772 = vmatpush3.bf16.msra.mxu1 %v4153_v44  ;;  %1466 = vperm.xlu0 %4114, %v1384_v58   ;;  %v4159_v44 = vld [vmem:[%s5180_s2 + $0x18] sm:$0xff]  }
  0x66   :  { %3773 = vmatprep.subr.bf16.mxu1 %v4154_v54  ;;  %1461 = vperm.xlu1 %4115, %v1383_v59   ;;  %v170_v58 = vld [vmem:[%s5177_s0 + $0x58] sm:$0xff] }
  0x67   :  { %915 = vmatpush1.bf16.msra.mxu0 %v4141_v60  ;;  %v271_v60 = vunpack.c.l.s8.bf16 %v183_v56  ;;  %v1409_v56 = vld [vmem:[%s5179_s3 + $0xe8] sm:$0xff]  ;;  %v1411_v59 = vld [vmem:[%s5179_s3 + $0xf8] sm:$0xff] }
  0x68   :  { %916 = vmatprep.subr.bf16.mxu0 %v4196_v0 }
  0x69   :  { %3774 = vmatpush3.bf16.msra.mxu1 %v4154_v54 }
  0x6a   :  { %680 = vmatmul.mubr.bf16.gmra.mrb[20].mxu0 %v243_v63  ;;  %808 = vmatmul.mubr.bf16.gmra.mrb[20].mxu1 %v307_v1  ;;  %v340_v63 = vunpack.c.h.s8.bf16 %v216_v47  ;;  %v1385_v1 = vld [vmem:[%s5179_s3 + $0x28] sm:$0xff] }
  0x6b   :  { %687 = vmatprep.mubr.bf16.mxu0 %v248_v2  ;;  %917 = vmatpush1.bf16.msra.mxu0 %v4142_v3  ;;  %v188_v2 = vld [vmem:[%s5177_s0 + $0xe8] sm:$0xff] }
  0x6c   :  { %918 = vmatprep.subr.bf16.mxu0 %v4196_v0  ;;  %815 = vmatprep.mubr.bf16.mxu1 %v312_v4  ;;  %v220_v3 = vld [vmem:[%s5177_s0 + $0x1e8] sm:$0xff]  ;;  %v1386_v4 = vld [vmem:[%s5179_s3 + $0x30] sm:$0xff] }
  0x6d   :  { %3775 = vmatprep.subr.bf16.mxu1 %v4155_v55  ;;  %1471 = vperm.xlu1 %4115, %v1385_v1   ;;  %v1405_v47 = vld [vmem:[%s5179_s3 + $0xc8] sm:$0xff]  ;;  %v4164_v1 = vld [vmem:[%s5180_s2 + $0x40] sm:$0xff]  }
  0x6e   :  { %3776 = vmatpush3.bf16.msra.mxu1 %v4155_v55  ;;  %1476 = vperm.xlu0 %4114, %v1386_v4   ;;  %v4162_v55 = vld [vmem:[%s5180_s2 + $0x30] sm:$0xff]  }
  0x6f   :  { %919 = vmatpush1.bf16.msra.mxu0 %v4143_v6  ;;  %v1388_v6 = vld [vmem:[%s5179_s3 + $0x40] sm:$0xff]  ;;  %v169_v4 = vld [vmem:[%s5177_s0 + $0x50] sm:$0xff] }
  0x70   :  { %920 = vmatprep.subr.bf16.mxu0 %v4196_v0 }
  0x71   :  { %1481 = vperm.xlu1 %4115, %v1387_v5   ;;  %v1415_v5 = vld [vmem:[%s5179_s3 + $0x118] sm:$0xff] }
  0x72   :  { %688 = vmatmul.mubr.bf16.gmra.mrb[24].mxu0 %v247_v8  ;;  %816 = vmatmul.mubr.bf16.gmra.mrb[24].mxu1 %v311_v9  ;;  %v339_v8 = vunpack.c.h.s8.bf16 %v215_v57  ;;  %v280_v9 = vunpack.c.l.s8.bf16 %v188_v2  ;;  %v1410_v57 = vld [vmem:[%s5179_s3 + $0xf0] sm:$0xff] }
  0x73   :  { %695 = vmatprep.mubr.bf16.mxu0 %v252_v10  ;;  %921 = vmatpush1.bf16.msra.mxu0 %v4144_v11  ;;  %v344_v10 = vunpack.c.l.s8.bf16 %v220_v3  ;;  %v1389_v11 = vld [vmem:[%s5179_s3 + $0x48] sm:$0xff] }
  0x74   :  { %922 = vmatprep.subr.bf16.mxu0 %v4196_v0  ;;  %823 = vmatprep.mubr.bf16.mxu1 %v316_v12  ;;  %v187_v12 = vld [vmem:[%s5177_s0 + $0xe0] sm:$0xff] }
  0x75   :  { %1486 = vperm.xlu0 %4114, %v1388_v6   ;;  %1491 = vperm.xlu1 %4115, %v1389_v11   ;;  %v1416_v6 = vld [vmem:[%s5179_s3 + $0x120] sm:$0xff]  ;;  %v1417_v11 = vld [vmem:[%s5179_s3 + $0x128] sm:$0xff] }
  0x77   :  { %923 = vmatpush1.bf16.msra.mxu0 %v4145_v13  ;;  %v219_v13 = vld [vmem:[%s5177_s0 + $0x1e0] sm:$0xff] }
  0x78   :  { %924 = vmatprep.subr.bf16.mxu0 %v4196_v0  ;;  %v347_v28 = vunpack.c.h.s8.bf16 %v219_v13 }
  0x79   :  { %1496 = vperm.xlu0 %4114, %v1390_v14   ;;  %1501 = vperm.xlu1 %4115, %v1391_v15   ;;  %v1419_v14 = vld [vmem:[%s5179_s3 + $0x138] sm:$0xff]  ;;  %v1420_v15 = vld [vmem:[%s5179_s3 + $0x140] sm:$0xff] }
  0x7a   :  { %696 = vmatmul.mubr.bf16.gmra.mrb[28].mxu0 %v251_v16  ;;  %824 = vmatmul.mubr.bf16.gmra.mrb[28].mxu1 %v315_v17  ;;  %v1392_v16 = vld [vmem:[%s5179_s3 + $0x60] sm:$0xff]  ;;  %v279_v17 = vunpack.c.l.s8.bf16 %v187_v12 }
  0x7b   :  { %703 = vmatprep.mubr.bf16.mxu0 %v256_v18  ;;  %925 = vmatpush1.bf16.msra.mxu0 %v4146_v19  ;;  %v343_v18 = vunpack.c.l.s8.bf16 %v219_v13  ;;  %v284_v19 = vunpack.c.h.s8.bf16 %v188_v2  ;;  %v1413_v2 = vld [vmem:[%s5179_s3 + $0x108] sm:$0xff]  ;;  %v174_v13 = vld [vmem:[%s5177_s0 + $0x78] sm:$0xff] }
  0x7c   :  { %926 = vmatprep.subr.bf16.mxu0 %v4196_v0  ;;  %831 = vmatprep.mubr.bf16.mxu1 %v320_v20  ;;  %v212_v0 = vld [vmem:[%s5177_s0 + $0x1a8] sm:$0xff]  ;;  %v348_v20 = vunpack.c.h.s8.bf16 %v220_v3  ;;  %v1414_v3 = vld [vmem:[%s5179_s3 + $0x110] sm:$0xff] }
  0x7d   :  { %v328_v34 = vunpack.c.l.s8.bf16 %v212_v0  ;;  %v332_v42 = vunpack.c.h.s8.bf16 %v212_v0  ;;  %1506 = vperm.xlu0 %4114, %v1392_v16   ;;  %1511 = vperm.xlu1 %4115, %v1393_v21   ;;  %v1397_v0 = vld [vmem:[%s5179_s3 + $0x88] sm:$0xff]  ;;  %v245_v16 = vunpack.c.h.s8.bf16 %v169_v4  ;;  %v1422_v21 = vld [vmem:[%s5179_s3 + $0x150] sm:$0xff] }
  0x7f   :  { %927 = vmatpush1.bf16.msra.mxu0 %v4147_v22  ;;  %v162_v22 = vld [vmem:[%s5177_s0 + $0x18] sm:$0xff] }
  0x80   :  { %v226_v29 = vunpack.c.l.s8.bf16 %v162_v22  ;;  %v230_v36 = vunpack.c.h.s8.bf16 %v162_v22  ;;  %v173_v22 = vld [vmem:[%s5177_s0 + $0x70] sm:$0xff] }
  0x81   :  { %1516 = vperm.xlu0 %4114, %v1394_v23   ;;  %v1423_v23 = vld [vmem:[%s5179_s3 + $0x158] sm:$0xff] }
  0x82   :  { %704 = vmatmul.mubr.bf16.gmra.mrb[32].mxu0 %v255_v24  ;;  %832 = vmatmul.mubr.bf16.gmra.mrb[32].mxu1 %v319_v25  ;;  %v1395_v24 = vld [vmem:[%s5179_s3 + $0x78] sm:$0xff]  ;;  %v1396_v25 = vld [vmem:[%s5179_s3 + $0x80] sm:$0xff] }
  0x83   :  { %711 = vmatprep.mubr.bf16.mxu0 %v260_v26  ;;  %839 = vmatprep.mubr.bf16.mxu1 %v324_v27  ;;  %v4156_v26 = vld [vmem:[%s5180_s2] sm:$0xff]   ;;  %v283_v27 = vunpack.c.h.s8.bf16 %v187_v12  ;;  %v1418_v12 = vld [vmem:[%s5179_s3 + $0x130] sm:$0xff] }
  0x84   :  { %1521 = vperm.xlu1 %4115, %v1395_v24   ;;  %v1424_v24 = vld [vmem:[%s5179_s3 + $0x160] sm:$0xff] }
  0x85   :  { %1526 = vperm.xlu0 %4114, %v1396_v25   ;;  %v249_v25 = vunpack.c.l.s8.bf16 %v173_v22 }
  0x88   :  { %1531 = vperm.xlu1 %4115, %v1397_v0   ;;  %v1426_v0 = vld [vmem:[%s5179_s3 + $0x170] sm:$0xff] }
  0x8a   :  { %712 = vmatmul.mubr.bf16.gmra.mrb[36].mxu0 %v259_v31  ;;  %840 = vmatmul.mubr.bf16.gmra.mrb[36].mxu1 %v323_v32  ;;  %v1398_v31 = vld [vmem:[%s5179_s3 + $0x90] sm:$0xff]  ;;  %v1399_v32 = vld [vmem:[%s5179_s3 + $0x98] sm:$0xff] }
  0x8b   :  { %719 = vmatprep.mubr.bf16.mxu0 %v264_v33  ;;  %847 = vmatprep.mubr.bf16.mxu1 %v328_v34  ;;  %v1400_v33 = vld [vmem:[%s5179_s3 + $0xa0] sm:$0xff]  ;;  %v225_v34 = vunpack.c.l.s8.bf16 %v161_v30  ;;  %v178_v30 = vld [vmem:[%s5177_s0 + $0x98] sm:$0xff] }
  0x8c   :  { %1536 = vperm.xlu0 %4114, %v1398_v31   ;;  %1541 = vperm.xlu1 %4115, %v1399_v32   ;;  %v1427_v31 = vld [vmem:[%s5179_s3 + $0x178] sm:$0xff]  ;;  %v1428_v32 = vld [vmem:[%s5179_s3 + $0x180] sm:$0xff] }
  0x90   :  { %1546 = vperm.xlu0 %4114, %v1400_v33   ;;  %1551 = vperm.xlu1 %4115, %v1401_v38   ;;  %v253_v33 = vunpack.c.h.s8.bf16 %v173_v22  ;;  %v1430_v38 = vld [vmem:[%s5179_s3 + $0x190] sm:$0xff]  ;;  %v190_v22 = vld [vmem:[%s5177_s0 + $0xf8] sm:$0xff] }
  0x92   :  { %720 = vmatmul.mubr.bf16.gmra.mrb[40].mxu0 %v263_v39  ;;  %848 = vmatmul.mubr.bf16.gmra.mrb[40].mxu1 %v327_v40  ;;  %v1402_v39 = vld [vmem:[%s5179_s3 + $0xb0] sm:$0xff]  ;;  %v166_v40 = vld [vmem:[%s5177_s0 + $0x38] sm:$0xff] }
  0x93   :  { %727 = vmatprep.mubr.bf16.mxu0 %v268_v41  ;;  %855 = vmatprep.mubr.bf16.mxu1 %v332_v42  ;;  %v1403_v41 = vld [vmem:[%s5179_s3 + $0xb8] sm:$0xff]  ;;  %v1404_v42 = vld [vmem:[%s5179_s3 + $0xc0] sm:$0xff]  ;;  %v234_v45 = vunpack.c.l.s8.bf16 %v166_v40  ;;  %v238_v54 = vunpack.c.h.s8.bf16 %v166_v40 }
  0x94   :  { %1556 = vperm.xlu0 %4114, %v1402_v39   ;;  %1561 = vperm.xlu1 %4115, %v1403_v41   ;;  %v177_v39 = vld [vmem:[%s5177_s0 + $0x90] sm:$0xff]  ;;  %v1431_v40 = vld [vmem:[%s5179_s3 + $0x198] sm:$0xff]  ;;  %v1432_v41 = vld [vmem:[%s5179_s3 + $0x1a0] sm:$0xff] }
  0x98   :  { %1566 = vperm.xlu0 %4114, %v1404_v42   ;;  %1571 = vperm.xlu1 %4115, %v1405_v47   ;;  %v257_v42 = vunpack.c.l.s8.bf16 %v177_v39  ;;  %v182_v47 = vld [vmem:[%s5177_s0 + $0xb8] sm:$0xff] }
  0x9a   :  { %728 = vmatmul.mubr.bf16.gmra.mrb[44].mxu0 %v267_v49  ;;  %856 = vmatmul.mubr.bf16.gmra.mrb[44].mxu1 %v331_v50  ;;  %v165_v49 = vld [vmem:[%s5177_s0 + $0x30] sm:$0xff]  ;;  %v1407_v50 = vld [vmem:[%s5179_s3 + $0xd8] sm:$0xff] }
  0x9b   :  { %735 = vmatprep.mubr.bf16.mxu0 %v272_v51  ;;  %863 = vmatprep.mubr.bf16.mxu1 %v336_v52  ;;  %v1408_v51 = vld [vmem:[%s5179_s3 + $0xe0] sm:$0xff]  ;;  %v233_v52 = vunpack.c.l.s8.bf16 %v165_v49 }
  0x9c   :  { %1576 = vperm.xlu0 %4114, %v1406_v48   ;;  %1581 = vperm.xlu1 %4115, %v1407_v50   ;;  %v4182_v48 = vld [vmem:[%s5181_s4] sm:$0xff]   ;;  %v1435_v50 = vld [vmem:[%s5179_s3 + $0x1b8] sm:$0xff] }
  0x9d   :  { %3841 = vmatprep.subr.bf16.mxu1 %v4182_v48 }
  0xa0   :  { %1586 = vperm.xlu0 %4114, %v1408_v51   ;;  %1591 = vperm.xlu1 %4115, %v1409_v56   ;;  %v4175_v51 = vld [vmem:[%s5180_s2 + $0x98] sm:$0xff]   ;;  %v266_v56 = vunpack.c.l.s8.bf16 %v182_v47 }
  0xa2   :  { %736 = vmatmul.mubr.bf16.gmra.mrb[48].mxu0 %v271_v60  ;;  %864 = vmatmul.mubr.bf16.gmra.mrb[48].mxu1 %v335_v61  ;;  %v1412_v60 = vld [vmem:[%s5179_s3 + $0x100] sm:$0xff]  ;;  %v237_v61 = vunpack.c.h.s8.bf16 %v165_v49  ;;  %v1434_v49 = vld [vmem:[%s5179_s3 + $0x1b0] sm:$0xff] }
  0xa3   :  { %743 = vmatprep.mubr.bf16.mxu0 %v276_v62  ;;  %871 = vmatprep.mubr.bf16.mxu1 %v340_v63  ;;  %v4163_v62 = vld [vmem:[%s5180_s2 + $0x38] sm:$0xff]   ;;  %v242_v63 = vunpack.c.l.s8.bf16 %v170_v58 }
  0xa4   :  { %1596 = vperm.xlu0 %4114, %v1410_v57   ;;  %1601 = vperm.xlu1 %4115, %v1411_v59   ;;  %v1437_v57 = vld [vmem:[%s5179_s3 + $0x1c8] sm:$0xff]  ;;  %v1438_v59 = vld [vmem:[%s5179_s3 + $0x1d0] sm:$0xff] }
  0xa8   :  { %1606 = vperm.xlu0 %4114, %v1412_v60   ;;  %1611 = vperm.xlu1 %4115, %v1413_v2   ;;  %v181_v60 = vld [vmem:[%s5177_s0 + $0xb0] sm:$0xff]  ;;  %v1440_v2 = vld [vmem:[%s5179_s3 + $0x1e0] sm:$0xff] }
  0xaa   :  { %744 = vmatmul.mubr.bf16.gmra.mrb[52].mxu0 %v275_v7  ;;  %872 = vmatmul.mubr.bf16.gmra.mrb[52].mxu1 %v339_v8  ;;  %v241_v7 = vunpack.c.l.s8.bf16 %v169_v4  ;;  %v4165_v8 = vld [vmem:[%s5180_s2 + $0x48] sm:$0xff]   ;;  %v4178_v4 = vld [vmem:[%s5180_s2 + $0xb0] sm:$0xff]  }
  0xab   :  { %751 = vmatprep.mubr.bf16.mxu0 %v280_v9  ;;  %879 = vmatprep.mubr.bf16.mxu1 %v344_v10  ;;  %v246_v9 = vunpack.c.h.s8.bf16 %v170_v58  ;;  %v4166_v10 = vld [vmem:[%s5180_s2 + $0x50] sm:$0xff]  }
  0xac   :  { %1616 = vperm.xlu0 %4114, %v1414_v3   ;;  %1621 = vperm.xlu1 %4115, %v1415_v5   ;;  %v4186_v58 = vld [vmem:[%s5181_s4 + $0x10] sm:$0xff]   ;;  %v270_v3 = vunpack.c.h.s8.bf16 %v182_v47  ;;  %v1441_v5 = vld [vmem:[%s5179_s3 + $0x1e8] sm:$0xff] }
  0xad   :  { %v201_v47 = vld [vmem:[%s5177_s0 + $0x150] sm:$0xff] }
  0xb0   :  { %1626 = vperm.xlu0 %4114, %v1416_v6   ;;  %1631 = vperm.xlu1 %4115, %v1417_v11   ;;  %v4190_v6 = vld [vmem:[%s5181_s4 + $0x20] sm:$0xff]   ;;  %v4179_v11 = vld [vmem:[%s5180_s2 + $0xb8] sm:$0xff]  }
  0xb2   :  { %752 = vmatmul.mubr.bf16.gmra.mrb[56].mxu0 %v279_v17  ;;  %880 = vmatmul.mubr.bf16.gmra.mrb[56].mxu1 %v343_v18  ;;  %v4167_v17 = vld [vmem:[%s5180_s2 + $0x58] sm:$0xff]   ;;  %v250_v18 = vunpack.c.l.s8.bf16 %v174_v13 }
  0xb3   :  { %759 = vmatprep.mubr.bf16.mxu0 %v284_v19  ;;  %887 = vmatprep.mubr.bf16.mxu1 %v348_v20  ;;  %v4168_v19 = vld [vmem:[%s5180_s2 + $0x60] sm:$0xff]   ;;  %v1421_v20 = vld [vmem:[%s5179_s3 + $0x148] sm:$0xff] }
  0xb4   :  { %1636 = vperm.xlu0 %4114, %v1418_v12   ;;  %1641 = vperm.xlu1 %4115, %v1419_v14   ;;  %v4191_v12 = vld [vmem:[%s5181_s4 + $0x28] sm:$0xff]   ;;  %v4180_v14 = vld [vmem:[%s5180_s2 + $0xc0] sm:$0xff]  }
  0xb8   :  { %1646 = vperm.xlu0 %4114, %v1420_v15   ;;  %1651 = vperm.xlu1 %4115, %v1421_v20   ;;  %v4194_v15 = vld [vmem:[%s5181_s4 + $0x30] sm:$0xff]  }
  0xba   :  { %760 = vmatmul.mubr.bf16.gmra.mrb[60].mxu0 %v283_v27  ;;  %888 = vmatmul.mubr.bf16.gmra.mrb[60].mxu1 %v347_v28  ;;  %v254_v27 = vunpack.c.h.s8.bf16 %v174_v13  ;;  %v4170_v28 = vld [vmem:[%s5180_s2 + $0x70] sm:$0xff]  }
  0xbb   :  { %928 = vmatprep.mubr.bf16.mxu0 %v226_v29  ;;  %3777 = vmatprep.mubr.bf16.mxu1 %v4156_v26  ;;  %v4169_v26 = vld [vmem:[%s5180_s2 + $0x68] sm:$0xff]  }
  0xbc   :  { %1656 = vperm.xlu0 %4114, %v1422_v21   ;;  %1661 = vperm.xlu1 %4115, %v1423_v23   ;;  %v1425_v29 = vld [vmem:[%s5179_s3 + $0x168] sm:$0xff]  ;;  %v4184_v21 = vld [vmem:[%s5180_s2 + $0xd0] sm:$0xff]  }
  0xc0   :  { %1666 = vperm.xlu0 %4114, %v1424_v24   ;;  %1671 = vperm.xlu1 %4115, %v1425_v29   ;;  %v4185_v24 = vld [vmem:[%s5180_s2 + $0xd8] sm:$0xff]   ;;  %v4189_v29 = vld [vmem:[%s5180_s2 + $0xe8] sm:$0xff]  }
  0xc2   :  { %929 = vmatmul.mubr.bf16.vlgmr.msra.gmra.mrb[0].mxu0 %v225_v34  ;;  %3778 = vmatmul.mubr.bf16.vlgmr.msra.gmra.mrb[64].mxu1 %v4157_v35  ;;  %v4171_v34 = vld [vmem:[%s5180_s2 + $0x78] sm:$0xff]   ;;  %v258_v35 = vunpack.c.l.s8.bf16 %v178_v30 }
  0xc3   :  { %936 = vmatprep.mubr.bf16.mxu0 %v230_v36  ;;  %3781 = vmatprep.mubr.bf16.mxu1 %v4158_v37  ;;  %v4172_v36 = vld [vmem:[%s5180_s2 + $0x80] sm:$0xff]   ;;  %v1429_v37 = vld [vmem:[%s5179_s3 + $0x188] sm:$0xff] }
  0xc4   :  { %1676 = vperm.xlu0 %4114, %v1426_v0   ;;  %1681 = vperm.xlu1 %4115, %v1427_v31   ;;  %v286_v0 = vunpack.c.h.s8.bf16 %v190_v22  ;;  %v194_v31 = vld [vmem:[%s5177_s0 + $0x118] sm:$0xff] }
  0xc5   :  { %3842 = vmatpush3.bf16.msra.mxu1 %v4182_v48  ;;  %v305_v48 = vunpack.c.l.s8.bf16 %v201_v47 }
  0xc8   :  { %1686 = vperm.xlu0 %4114, %v1428_v32   ;;  %1691 = vperm.xlu1 %4115, %v1429_v37   ;;  %v294_v37 = vunpack.c.h.s8.bf16 %v194_v31 }
  0xca   :  { %937 = vmatmul.mubr.bf16.gmra.mrb[4].mxu0 %v229_v43  ;;  %3782 = vmatmul.mubr.bf16.gmra.mrb[68].mxu1 %v4159_v44  ;;  %v4173_v43 = vld [vmem:[%s5180_s2 + $0x88] sm:$0xff]   ;;  %v262_v44 = vunpack.c.h.s8.bf16 %v178_v30  ;;  %v4192_v30 = vld [vmem:[%s5180_s2 + $0xf0] sm:$0xff]  }
  0xcb   :  { %944 = vmatprep.mubr.bf16.mxu0 %v234_v45  ;;  %3785 = vmatprep.mubr.bf16.mxu1 %v4160_v46  ;;  %v4174_v45 = vld [vmem:[%s5180_s2 + $0x90] sm:$0xff]   ;;  %v1433_v46 = vld [vmem:[%s5179_s3 + $0x1a8] sm:$0xff] }
  0xcc   :  { %1696 = vperm.xlu0 %4114, %v1430_v38   ;;  %1701 = vperm.xlu1 %4115, %v1431_v40   ;;  %v198_v38 = vld [vmem:[%s5177_s0 + $0x138] sm:$0xff] }
  0xcd   :  { %v298_v40 = vunpack.c.l.s8.bf16 %v198_v38 }
  0xd0   :  { %1706 = vperm.xlu0 %4114, %v1432_v41   ;;  %1711 = vperm.xlu1 %4115, %v1433_v46   ;;  %v197_v41 = vld [vmem:[%s5177_s0 + $0x130] sm:$0xff] }
  0xd2   :  { %945 = vmatmul.mubr.bf16.gmra.mrb[8].mxu0 %v233_v52  ;;  %3786 = vmatmul.mubr.bf16.gmra.mrb[72].mxu1 %v4161_v53  ;;  %v4183_v52 = vld [vmem:[%s5181_s4 + $0x8] sm:$0xff]   ;;  %v1436_v53 = vld [vmem:[%s5179_s3 + $0x1c0] sm:$0xff] }
  0xd3   :  { %952 = vmatprep.mubr.bf16.mxu0 %v238_v54  ;;  %3789 = vmatprep.mubr.bf16.mxu1 %v4162_v55  ;;  %v4176_v54 = vld [vmem:[%s5180_s2 + $0xa0] sm:$0xff]   ;;  %v261_v55 = vunpack.c.h.s8.bf16 %v177_v39 }
  0xd4   :  { %1716 = vperm.xlu0 %4114, %v1434_v49   ;;  %3843 = vmatprep.subr.bf16.mxu1 %v4183_v52 }
  0xd5   :  { %1721 = vperm.xlu1 %4115, %v1435_v50   ;;  %3844 = vmatpush3.bf16.msra.mxu1 %v4183_v52  ;;  %v206_v50 = vld [vmem:[%s5177_s0 + $0x178] sm:$0xff] }
  0xd6   :  { %3845 = vmatprep.subr.bf16.mxu1 %v4186_v58  ;;  %v314_v52 = vunpack.c.l.s8.bf16 %v206_v50 }
  0xd8   :  { %1726 = vperm.xlu0 %4114, %v1436_v53   ;;  %v205_v53 = vld [vmem:[%s5177_s0 + $0x170] sm:$0xff] }
  0xd9   :  { %1731 = vperm.xlu1 %4115, %v1437_v57   ;;  %3846 = vmatpush3.bf16.msra.mxu1 %v4186_v58 }
  0xda   :  { %953 = vmatmul.mubr.bf16.gmra.mrb[12].mxu0 %v237_v61  ;;  %3790 = vmatmul.mubr.bf16.gmra.mrb[76].mxu1 %v4163_v62  ;;  %v4187_v61 = vld [vmem:[%s5181_s4 + $0x18] sm:$0xff]  }
  0xdb   :  { %960 = vmatprep.mubr.bf16.mxu0 %v242_v63  ;;  %3793 = vmatprep.mubr.bf16.mxu1 %v4164_v1  ;;  %v1439_v62 = vld [vmem:[%s5179_s3 + $0x1d8] sm:$0xff]  ;;  %v265_v63 = vunpack.c.l.s8.bf16 %v181_v60  ;;  %v4177_v1 = vld [vmem:[%s5180_s2 + $0xa8] sm:$0xff]  }
  0xdc   :  { %1736 = vperm.xlu0 %4114, %v1438_v59   ;;  %3847 = vmatprep.subr.bf16.mxu1 %v4187_v61 }
  0xdd   :  { %1741 = vperm.xlu1 %4115, %v1439_v62   ;;  %3848 = vmatpush3.bf16.msra.mxu1 %v4187_v61  ;;  %v317_v61 = vunpack.c.h.s8.bf16 %v205_v53 }
  0xde   :  { %3849 = vmatprep.subr.bf16.mxu1 %v4190_v6 }
  0xe0   :  { %1746 = vperm.xlu0 %4114, %v1440_v2  }
  0xe1   :  { %1751 = vperm.xlu1 %4115, %v1441_v5   ;;  %3850 = vmatpush3.bf16.msra.mxu1 %v4190_v6 }
  0xe2   :  { %961 = vmatmul.mubr.bf16.gmra.mrb[16].mxu0 %v241_v7  ;;  %3794 = vmatmul.mubr.bf16.gmra.mrb[80].mxu1 %v4165_v8  ;;  %v186_v7 = vld [vmem:[%s5177_s0 + $0xd8] sm:$0xff]  ;;  %v1442_v8 = vld [vmem:[%s5179_s3 + $0x1f0] sm:$0xff] }
  0xe3   :  { %968 = vmatprep.mubr.bf16.mxu0 %v246_v9  ;;  %3797 = vmatprep.mubr.bf16.mxu1 %v4166_v10  ;;  %v1443_v9 = vld [vmem:[%s5179_s3 + $0x1f8] sm:$0xff]  ;;  %v269_v10 = vunpack.c.h.s8.bf16 %v181_v60  ;;  %v274_v13 = vunpack.c.l.s8.bf16 %v186_v7  ;;  %v278_v20 = vunpack.c.h.s8.bf16 %v186_v7 }
  0xe4   :  { %1756 = vperm.xlu0 %4114, %v1442_v8   ;;  %3851 = vmatprep.subr.bf16.mxu1 %v4191_v12  ;;  %v210_v60 = vld [vmem:[%s5177_s0 + $0x198] sm:$0xff] }
  0xe5   :  { %1761 = vperm.xlu1 %4115, %v1443_v9   ;;  %3852 = vmatpush3.bf16.msra.mxu1 %v4191_v12  ;;  %v326_v7 = vunpack.c.h.s8.bf16 %v210_v60 }
  0xe6   :  { %3853 = vmatprep.subr.bf16.mxu1 %v4194_v15 }
  0xe9   :  { %3854 = vmatpush3.bf16.msra.mxu1 %v4194_v15 }
  0xea   :  { %969 = vmatmul.mubr.bf16.gmra.mrb[20].mxu0 %v245_v16  ;;  %3798 = vmatmul.mubr.bf16.gmra.mrb[84].mxu1 %v4167_v17  ;;  %v185_v16 = vld [vmem:[%s5177_s0 + $0xd0] sm:$0xff] }
  0xeb   :  { %976 = vmatprep.mubr.bf16.mxu0 %v250_v18  ;;  %3801 = vmatprep.mubr.bf16.mxu1 %v4168_v19  ;;  %v273_v17 = vunpack.c.l.s8.bf16 %v185_v16  ;;  %v4181_v18 = vld [vmem:[%s5180_s2 + $0xc8] sm:$0xff]   ;;  %v4195_v19 = vld [vmem:[%s5181_s4 + $0x38] sm:$0xff]   ;;  %v277_v23 = vunpack.c.h.s8.bf16 %v185_v16 }
  0xec   :  { %3855 = vmatprep.subr.bf16.mxu1 %v4195_v19 }
  0xed   :  { %3856 = vmatpush3.bf16.msra.mxu1 %v4195_v19 }
  0xf2   :  { %977 = vmatmul.mubr.bf16.gmra.mrb[24].mxu0 %v249_v25  ;;  %3802 = vmatmul.mubr.bf16.gmra.mrb[88].mxu1 %v4169_v26  ;;  %v282_v25 = vunpack.c.l.s8.bf16 %v190_v22  ;;  %v4188_v26 = vld [vmem:[%s5180_s2 + $0xe0] sm:$0xff]  }
  0xf3   :  { %984 = vmatprep.mubr.bf16.mxu0 %v254_v27  ;;  %3805 = vmatprep.mubr.bf16.mxu1 %v4170_v28  ;;  %v189_v27 = vld [vmem:[%s5177_s0 + $0xf0] sm:$0xff] }
  0xf4   :  { %v281_v28 = vunpack.c.l.s8.bf16 %v189_v27  ;;  %v285_v32 = vunpack.c.h.s8.bf16 %v189_v27 }
  0xfa   :  { %985 = vmatmul.mubr.bf16.gmra.mrb[28].mxu0 %v253_v33  ;;  %3806 = vmatmul.mubr.bf16.gmra.mrb[92].mxu1 %v4171_v34  ;;  %v4193_v33 = vld [vmem:[%s5180_s2 + $0xf8] sm:$0xff]   ;;  %v290_v34 = vunpack.c.l.s8.bf16 %v194_v31 }
  0xfb   :  { %992 = vmatprep.mubr.bf16.mxu0 %v258_v35  ;;  %3809 = vmatprep.mubr.bf16.mxu1 %v4172_v36  ;;  %v193_v35 = vld [vmem:[%s5177_s0 + $0x110] sm:$0xff] }
  0xfc   :  { %v289_v36 = vunpack.c.l.s8.bf16 %v193_v35  ;;  %v293_v39 = vunpack.c.h.s8.bf16 %v193_v35 }
 0x102   :  { %993 = vmatmul.mubr.bf16.gmra.mrb[32].mxu0 %v257_v42  ;;  %3810 = vmatmul.mubr.bf16.gmra.mrb[96].mxu1 %v4173_v43  ;;  %v297_v42 = vunpack.c.l.s8.bf16 %v197_v41  ;;  %v302_v43 = vunpack.c.h.s8.bf16 %v198_v38 }
 0x103   :  { %1000 = vmatprep.mubr.bf16.mxu0 %v262_v44  ;;  %3813 = vmatprep.mubr.bf16.mxu1 %v4174_v45  ;;  %v202_v44 = vld [vmem:[%s5177_s0 + $0x158] sm:$0xff]  ;;  %v301_v45 = vunpack.c.h.s8.bf16 %v197_v41  ;;  %v217_v41 = vld [vmem:[%s5177_s0 + $0x1d0] sm:$0xff] }
 0x104   :  { %v306_v46 = vunpack.c.l.s8.bf16 %v202_v44  ;;  %v310_v49 = vunpack.c.h.s8.bf16 %v202_v44 }
 0x10a   :  { %1001 = vmatmul.mubr.bf16.gmra.mrb[36].mxu0 %v261_v55  ;;  %3814 = vmatmul.mubr.bf16.gmra.mrb[100].mxu1 %v4175_v51  ;;  %v309_v51 = vunpack.c.h.s8.bf16 %v201_v47 }
 0x10b   :  { %1008 = vmatprep.mubr.bf16.mxu0 %v266_v56  ;;  %3817 = vmatprep.mubr.bf16.mxu1 %v4176_v54  ;;  %v313_v54 = vunpack.c.l.s8.bf16 %v205_v53  ;;  %v318_v56 = vunpack.c.h.s8.bf16 %v206_v50 }
 0x112   :  { %1009 = vmatmul.mubr.bf16.gmra.mrb[40].mxu0 %v265_v63  ;;  %3818 = vmatmul.mubr.bf16.gmra.mrb[104].mxu1 %v4177_v1  ;;  %v322_v63 = vunpack.c.l.s8.bf16 %v210_v60 }
 0x113   :  { %1016 = vmatprep.mubr.bf16.mxu0 %v270_v3  ;;  %3821 = vmatprep.mubr.bf16.mxu1 %v4178_v4  ;;  %v209_v4 = vld [vmem:[%s5177_s0 + $0x190] sm:$0xff] }
 0x114   :  { %v321_v5 = vunpack.c.l.s8.bf16 %v209_v4  ;;  %v325_v12 = vunpack.c.h.s8.bf16 %v209_v4 }
 0x115   :  { %v4891_v55 = vpop.f32.mrb[0].mxu1 }
 0x116   :  { %v771_v57 = vpop.f32.mrb[1].mxu1 }
 0x117   :  { %v4893_v58 = vpop.f32.mrb[2].mxu1 }
 0x118   :  { %v774_v59 = vpop.f32.mrb[3].mxu1 }
 0x119   :  { %v222_v59 = vld [vmem:[%s5177_s0 + $0x1f8] sm:$0xff] }
 0x11a   :  { %1017 = vmatmul.mubr.bf16.gmra.mrb[44].mxu0 %v269_v10  ;;  %3822 = vmatmul.mubr.bf16.gmra.mrb[108].mxu1 %v4179_v11  ;;  %v214_v11 = vld [vmem:[%s5177_s0 + $0x1b8] sm:$0xff] }
 0x11b   :  { %1024 = vmatprep.mubr.bf16.mxu0 %v274_v13  ;;  %3825 = vmatprep.mubr.bf16.mxu1 %v4180_v14  ;;  %v330_v14 = vunpack.c.l.s8.bf16 %v214_v11  ;;  %v334_v22 = vunpack.c.h.s8.bf16 %v214_v11 }
 0x11d   :  { %v4898_v62 = vpop.f32.mrb[4].mxu1 }
 0x11e   :  { %v779_v1 = vpop.f32.mrb[5].mxu1 }
 0x11f   :  { %v4900_v2 = vpop.f32.mrb[6].mxu1  ;;  %v341_v1 = vunpack.c.h.s8.bf16 %v217_v41 }
 0x120   :  { %v782_v3 = vpop.f32.mrb[7].mxu1 }
 0x122   :  { %1025 = vmatmul.mubr.bf16.gmra.mrb[48].mxu0 %v273_v17  ;;  %3826 = vmatmul.mubr.bf16.gmra.mrb[112].mxu1 %v4181_v18  ;;  %v213_v18 = vld [vmem:[%s5177_s0 + $0x1b0] sm:$0xff] }
 0x123   :  { %1032 = vmatprep.mubr.bf16.mxu0 %v278_v20  ;;  %3829 = vmatprep.mubr.bf16.mxu1 %v4184_v21  ;;  %v329_v19 = vunpack.c.l.s8.bf16 %v213_v18  ;;  %v1447_v21 = vpop.permute.xlu0 %1446 }
 0x125   :  { %v4905_v6 = vpop.f32.mrb[8].mxu1 }
 0x126   :  { %v787_v8 = vpop.f32.mrb[9].mxu1 }
 0x127   :  { %v4907_v9 = vpop.f32.mrb[10].mxu1 }
 0x128   :  { %v790_v10 = vpop.f32.mrb[11].mxu1 }
 0x12a   :  { %1033 = vmatmul.mubr.bf16.gmra.mrb[52].mxu0 %v277_v23  ;;  %3830 = vmatmul.mubr.bf16.gmra.mrb[116].mxu1 %v4185_v24 }
 0x12b   :  { %1040 = vmatprep.mubr.bf16.mxu0 %v282_v25  ;;  %3833 = vmatprep.mubr.bf16.mxu1 %v4188_v26  ;;  %v218_v26 = vld [vmem:[%s5177_s0 + $0x1d8] sm:$0xff] }
 0x12d   :  { %v4912_v13 = vpop.f32.mrb[12].mxu1 }
 0x12e   :  { %v795_v15 = vpop.f32.mrb[13].mxu1 }
 0x12f   :  { %v4914_v16 = vpop.f32.mrb[14].mxu1 }
 0x130   :  { %v798_v17 = vpop.f32.mrb[15].mxu1 }
 0x131   :  { %v221_v17 = vld [vmem:[%s5177_s0 + $0x1f0] sm:$0xff] }
 0x132   :  { %1041 = vmatmul.mubr.bf16.gmra.mrb[56].mxu0 %v281_v28  ;;  %3834 = vmatmul.mubr.bf16.gmra.mrb[120].mxu1 %v4189_v29  ;;  %v1452_v28 = vpop.permute.xlu0 %1451 }
 0x133   :  { %1048 = vmatprep.mubr.bf16.mxu0 %v286_v0  ;;  %3837 = vmatprep.mubr.bf16.mxu1 %v4192_v30  ;;  %v333_v0 = vunpack.c.h.s8.bf16 %v213_v18 }
 0x135   :  { %v4919_v20 = vpop.f32.mrb[16].mxu1 }
 0x136   :  { %v803_v23 = vpop.f32.mrb[17].mxu1  ;;  %v1467_v57 = vpop.permute.xlu0 %1466 }
 0x137   :  { %v4921_v24 = vpop.f32.mrb[18].mxu1  ;;  %v345_v23 = vunpack.c.l.s8.bf16 %v221_v17 }
 0x138   :  { %v806_v25 = vpop.f32.mrb[19].mxu1 }
 0x13a   :  { %1049 = vmatmul.mubr.bf16.gmra.mrb[60].mxu0 %v285_v32  ;;  %3838 = vmatmul.mubr.bf16.gmra.mrb[124].mxu1 %v4193_v33  ;;  %v1457_v32 = vpop.permute.xlu1 %1456  ;;  %v338_v33 = vunpack.c.l.s8.bf16 %v218_v26  ;;  %v1477_v18 = vpop.permute.xlu0 %1476 }
 0x13b   :  { %1056 = vmatprep.mubr.bf16.mxu0 %v290_v34 }
 0x13d   :  { %v4926_v30 = vpop.f32.mrb[20].mxu1 }
 0x142   :  { %1057 = vmatmul.mubr.bf16.gmra.mrb[64].mxu0 %v289_v36 }
 0x143   :  { %1064 = vmatprep.mubr.bf16.mxu0 %v294_v37  ;;  %v811_v37 = vpop.f32.mrb[21].mxu1 }
 0x144   :  { %v4928_v38 = vpop.f32.mrb[22].mxu1 }
 0x14a   :  { %1065 = vmatmul.mubr.bf16.gmra.mrb[68].mxu0 %v293_v39 }
 0x14b   :  { %1072 = vmatprep.mubr.bf16.mxu0 %v298_v40  ;;  %v814_v40 = vpop.f32.mrb[23].mxu1 }
 0x14c   :  { %v349_v40 = vunpack.c.h.s8.bf16 %v221_v17 }
 0x152   :  { %1073 = vmatmul.mubr.bf16.gmra.mrb[72].mxu0 %v297_v42 }
 0x153   :  { %1080 = vmatprep.mubr.bf16.mxu0 %v302_v43  ;;  %v1462_v43 = vpop.permute.xlu1 %1461 }
 0x157   :  { %v1472_v60 = vpop.permute.xlu1 %1471 }
 0x15a   :  { %1081 = vmatmul.mubr.bf16.gmra.mrb[76].mxu0 %v301_v45  ;;  %v337_v45 = vunpack.c.l.s8.bf16 %v217_v41 }
 0x15b   :  { %1088 = vmatprep.mubr.bf16.mxu0 %v306_v46  ;;  %v4933_v46 = vpop.f32.mrb[24].mxu1 }
 0x162   :  { %1089 = vmatmul.mubr.bf16.gmra.mrb[80].mxu0 %v305_v48  ;;  %v342_v48 = vunpack.c.h.s8.bf16 %v218_v26 }
 0x163   :  { %1096 = vmatprep.mubr.bf16.mxu0 %v310_v49  ;;  %v819_v49 = vpop.f32.mrb[25].mxu1 }
 0x164   :  { %v4935_v53 = vpop.f32.mrb[26].mxu1 }
 0x16a   :  { %1097 = vmatmul.mubr.bf16.gmra.mrb[84].mxu0 %v309_v51 }
 0x16b   :  { %1104 = vmatprep.mubr.bf16.mxu0 %v314_v52 }
 0x172   :  { %1105 = vmatmul.mubr.bf16.gmra.mrb[88].mxu0 %v313_v54  ;;  %v822_v54 = vpop.f32.mrb[27].mxu1 }
 0x173   :  { %1112 = vmatprep.mubr.bf16.mxu0 %v318_v56  ;;  %v4940_v3 = vpop.f32.mrb[28].mxu1 }
 0x17a   :  { %1113 = vmatmul.mubr.bf16.gmra.mrb[92].mxu0 %v317_v61 }
 0x17b   :  { %1120 = vmatprep.mubr.bf16.mxu0 %v322_v63 }
 0x182   :  { %1121 = vmatmul.mubr.bf16.gmra.mrb[96].mxu0 %v321_v5  ;;  %v346_v5 = vunpack.c.l.s8.bf16 %v222_v59 }
 0x183   :  { %1128 = vmatprep.mubr.bf16.mxu0 %v326_v7  ;;  %v827_v7 = vpop.f32.mrb[29].mxu1 }
 0x18a   :  { %1129 = vmatmul.mubr.bf16.gmra.mrb[100].mxu0 %v325_v12  ;;  %v4942_v12 = vpop.f32.mrb[30].mxu1 }
 0x18b   :  { %1136 = vmatprep.mubr.bf16.mxu0 %v330_v14  ;;  %v830_v14 = vpop.f32.mrb[31].mxu1 }
 0x18c   :  { %v4947_v25 = vpop.f32.mrb[32].mxu1 }
 0x192   :  { %1137 = vmatmul.mubr.bf16.gmra.mrb[104].mxu0 %v329_v19  ;;  %v1482_v19 = vpop.permute.xlu1 %1481 }
 0x193   :  { %1144 = vmatprep.mubr.bf16.mxu0 %v334_v22 }
 0x195   :  { %v930_v27 = vpop.f32.mrb[0].mxu0 }
 0x196   :  { %v932_v29 = vpop.f32.mrb[1].mxu0  ;;  %v1764_v34 = vmul.f32 %v1447_v21, %v930_v27  ;;  %v350_v27 = vunpack.c.h.s8.bf16 %v222_v59 }
 0x197   :  { %v933_v31 = vpop.f32.mrb[2].mxu0 }
 0x198   :  { %v1765_v35 = vmul.f32 %v1452_v28, %v933_v31  ;;  %v935_v36 = vpop.f32.mrb[3].mxu0  ;;  %v835_v28 = vpop.f32.mrb[33].mxu1 }
 0x199   :  { %v1492_v36 = vpop.permute.xlu1 %1491 }
 0x19a   :  { %v1828_v39 = vpack.c.bf16 %v1765_v35, %v1764_v34  ;;  %1145 = vmatmul.mubr.bf16.gmra.mrb[108].mxu0 %v333_v0  ;;  %v1487_v35 = vpop.permute.xlu0 %1486 }
 0x19b   :  { %1152 = vmatprep.mubr.bf16.mxu0 %v338_v33 }
 0x19c   :  { %3857 = vmatprep.mubr.bf16.mxu1 %v1828_v39 }
 0x19d   :  { %v938_v42 = vpop.f32.mrb[4].mxu0 }
 0x19e   :  { %v940_v44 = vpop.f32.mrb[5].mxu0  ;;  %v1766_v50 = vmul.f32 %v1457_v32, %v938_v42  ;;  %v4949_v32 = vpop.f32.mrb[34].mxu1 }
 0x19f   :  { %v941_v47 = vpop.f32.mrb[6].mxu0  ;;  %v838_v33 = vpop.f32.mrb[35].mxu1 }
 0x1a0   :  { %v1767_v51 = vmul.f32 %v1462_v43, %v941_v47  ;;  %v943_v52 = vpop.f32.mrb[7].mxu0  ;;  %v4951_v41 = vpop.f32.mrb[36].mxu1 }
 0x1a1   :  { %v843_v43 = vpop.f32.mrb[37].mxu1  ;;  %v1502_v52 = vpop.permute.xlu1 %1501 }
 0x1a2   :  { %v1829_v56 = vpack.c.bf16 %v1767_v51, %v1766_v50  ;;  %1153 = vmatmul.mubr.bf16.gmra.mrb[112].mxu0 %v337_v45  ;;  %v1497_v51 = vpop.permute.xlu0 %1496 }
 0x1a3   :  { %1160 = vmatprep.mubr.bf16.mxu0 %v342_v48  ;;  %v4953_v48 = vpop.f32.mrb[38].mxu1 }
 0x1a4   :  { %3858 = vmatmul.mubr.bf16.vlgmr.msra.gmra.mrb[64].mxu1 %v1829_v56  ;;  %v846_v49 = vpop.f32.mrb[39].mxu1 }
 0x1a5   :  { %v946_v61 = vpop.f32.mrb[8].mxu0 }
 0x1a6   :  { %v948_v63 = vpop.f32.mrb[9].mxu0  ;;  %v1768_v8 = vmul.f32 %v1467_v57, %v946_v61  ;;  %v4955_v57 = vpop.f32.mrb[40].mxu1 }
 0x1a7   :  { %v949_v4 = vpop.f32.mrb[10].mxu0 }
 0x1a8   :  { %v1769_v10 = vmul.f32 %v1472_v60, %v949_v4  ;;  %v951_v11 = vpop.f32.mrb[11].mxu0  ;;  %v851_v60 = vpop.f32.mrb[41].mxu1 }
 0x1a9   :  { %v4957_v4 = vpop.f32.mrb[42].mxu1 }
 0x1aa   :  { %v1830_v15 = vpack.c.bf16 %v1769_v10, %v1768_v8  ;;  %1161 = vmatmul.mubr.bf16.gmra.mrb[116].mxu0 %v341_v1  ;;  %v1507_v8 = vpop.permute.xlu0 %1506  ;;  %v1512_v10 = vpop.permute.xlu1 %1511 }
 0x1ab   :  { %1168 = vmatprep.mubr.bf16.mxu0 %v346_v5  ;;  %v854_v5 = vpop.f32.mrb[43].mxu1 }
 0x1ac   :  { %3861 = vmatprep.mubr.bf16.mxu1 %v1830_v15  ;;  %v4959_v15 = vpop.f32.mrb[44].mxu1 }
 0x1ad   :  { %v954_v21 = vpop.f32.mrb[12].mxu0 }
 0x1ae   :  { %v956_v22 = vpop.f32.mrb[13].mxu0  ;;  %v1770_v29 = vmul.f32 %v1477_v18, %v954_v21  ;;  %v859_v18 = vpop.f32.mrb[45].mxu1 }
 0x1af   :  { %v957_v26 = vpop.f32.mrb[14].mxu0  ;;  %v1517_v28 = vpop.permute.xlu0 %1516 }
 0x1b0   :  { %v1771_v0 = vmul.f32 %v1482_v19, %v957_v26  ;;  %v959_v31 = vpop.f32.mrb[15].mxu0 }
 0x1b2   :  { %v1831_v34 = vpack.c.bf16 %v1771_v0, %v1770_v29  ;;  %1169 = vmatmul.mubr.bf16.gmra.mrb[120].mxu0 %v345_v23  ;;  %v4961_v23 = vpop.f32.mrb[46].mxu1  ;;  %v1522_v29 = vpop.permute.xlu1 %1521 }
 0x1b3   :  { %1176 = vmatprep.mubr.bf16.mxu0 %v350_v27  ;;  %v862_v26 = vpop.f32.mrb[47].mxu1 }
 0x1b4   :  { %3862 = vmatmul.mubr.bf16.gmra.mrb[68].mxu1 %v1831_v34  ;;  %v4963_v33 = vpop.f32.mrb[48].mxu1 }
 0x1b5   :  { %v962_v37 = vpop.f32.mrb[16].mxu0 }
 0x1b6   :  { %v964_v39 = vpop.f32.mrb[17].mxu0  ;;  %v1772_v44 = vmul.f32 %v1487_v35, %v962_v37  ;;  %v867_v35 = vpop.f32.mrb[49].mxu1 }
 0x1b7   :  { %v965_v42 = vpop.f32.mrb[18].mxu0 }
 0x1b8   :  { %v1773_v45 = vmul.f32 %v1492_v36, %v965_v42  ;;  %v967_v47 = vpop.f32.mrb[19].mxu0 }
 0x1ba   :  { %v1832_v50 = vpack.c.bf16 %v1773_v45, %v1772_v44  ;;  %1177 = vmatmul.mubr.bf16.gmra.mrb[124].mxu0 %v349_v40  ;;  %v4965_v40 = vpop.f32.mrb[50].mxu1  ;;  %v1527_v44 = vpop.permute.xlu0 %1526 }
 0x1bb   :  { %v870_v42 = vpop.f32.mrb[51].mxu1  ;;  %v1532_v45 = vpop.permute.xlu1 %1531 }
 0x1bc   :  { %3865 = vmatprep.mubr.bf16.mxu1 %v1832_v50  ;;  %v4967_v50 = vpop.f32.mrb[52].mxu1 }
 0x1bd   :  { %v970_v54 = vpop.f32.mrb[20].mxu0 }
 0x1be   :  { %v972_v56 = vpop.f32.mrb[21].mxu0  ;;  %v1774_v61 = vmul.f32 %v1497_v51, %v970_v54 }
 0x1bf   :  { %v973_v59 = vpop.f32.mrb[22].mxu0  ;;  %v1542_v5 = vpop.permute.xlu1 %1541 }
 0x1c0   :  { %v1775_v63 = vmul.f32 %v1502_v52, %v973_v59  ;;  %v975_v1 = vpop.f32.mrb[23].mxu0  ;;  %v875_v52 = vpop.f32.mrb[53].mxu1 }
 0x1c1   :  { %v4969_v60 = vpop.f32.mrb[54].mxu1  ;;  %v1537_v1 = vpop.permute.xlu0 %1536 }
 0x1c2   :  { %v1833_v7 = vpack.c.bf16 %v1775_v63, %v1774_v61  ;;  %v878_v61 = vpop.f32.mrb[55].mxu1 }
 0x1c4   :  { %3866 = vmatmul.mubr.bf16.gmra.mrb[72].mxu1 %v1833_v7 }
 0x1c5   :  { %v978_v11 = vpop.f32.mrb[24].mxu0 }
 0x1c6   :  { %v980_v14 = vpop.f32.mrb[25].mxu0  ;;  %v1776_v19 = vmul.f32 %v1507_v8, %v978_v11 }
 0x1c7   :  { %v981_v17 = vpop.f32.mrb[26].mxu0 }
 0x1c8   :  { %v1777_v21 = vmul.f32 %v1512_v10, %v981_v17  ;;  %v983_v22 = vpop.f32.mrb[27].mxu0  ;;  %v4971_v10 = vpop.f32.mrb[56].mxu1 }
 0x1c9   :  { %v883_v14 = vpop.f32.mrb[57].mxu1 }
 0x1ca   :  { %v1834_v27 = vpack.c.bf16 %v1777_v21, %v1776_v19  ;;  %v4973_v21 = vpop.f32.mrb[58].mxu1 }
 0x1cb   :  { %v886_v22 = vpop.f32.mrb[59].mxu1 }
 0x1cc   :  { %3869 = vmatprep.mubr.bf16.mxu1 %v1834_v27  ;;  %v1547_v27 = vpop.permute.xlu0 %1546 }
 0x1cd   :  { %v986_v0 = vpop.f32.mrb[28].mxu0 }
 0x1ce   :  { %v988_v31 = vpop.f32.mrb[29].mxu0  ;;  %v1778_v36 = vmul.f32 %v1517_v28, %v986_v0  ;;  %v1552_v28 = vpop.permute.xlu1 %1551 }
 0x1cf   :  { %v989_v34 = vpop.f32.mrb[30].mxu0  ;;  %v4975_v31 = vpop.f32.mrb[60].mxu1 }
 0x1d0   :  { %v1779_v37 = vmul.f32 %v1522_v29, %v989_v34  ;;  %v991_v39 = vpop.f32.mrb[31].mxu0  ;;  %v891_v35 = vpop.f32.mrb[61].mxu1 }
 0x1d1   :  { %v4977_v42 = vpop.f32.mrb[62].mxu1 }
 0x1d2   :  { %v1835_v43 = vpack.c.bf16 %v1779_v37, %v1778_v36 }
 0x1d4   :  { %3870 = vmatmul.mubr.bf16.gmra.mrb[76].mxu1 %v1835_v43  ;;  %v894_v43 = vpop.f32.mrb[63].mxu1 }
 0x1d5   :  { %v994_v47 = vpop.f32.mrb[32].mxu0 }
 0x1d6   :  { %v996_v49 = vpop.f32.mrb[33].mxu0  ;;  %v1780_v54 = vmul.f32 %v1527_v44, %v994_v47  ;;  %v1557_v47 = vpop.permute.xlu0 %1556 }
 0x1d7   :  { %v997_v51 = vpop.f32.mrb[34].mxu0 }
 0x1d8   :  { %v1781_v56 = vmul.f32 %v1532_v45, %v997_v51  ;;  %v999_v59 = vpop.f32.mrb[35].mxu0  ;;  %v1562_v51 = vpop.permute.xlu1 %1561 }
 0x1da   :  { %v1836_v63 = vpack.c.bf16 %v1781_v56, %v1780_v54 }
 0x1dc   :  { %3873 = vmatprep.mubr.bf16.mxu1 %v1836_v63 }
 0x1dd   :  { %v1002_v7 = vpop.f32.mrb[36].mxu0 }
 0x1de   :  { %v1004_v8 = vpop.f32.mrb[37].mxu0  ;;  %v1782_v17 = vmul.f32 %v1537_v1, %v1002_v7  ;;  %v1567_v1 = vpop.permute.xlu0 %1566 }
 0x1df   :  { %v1005_v11 = vpop.f32.mrb[38].mxu0  ;;  %v1572_v7 = vpop.permute.xlu1 %1571 }
 0x1e0   :  { %v1783_v18 = vmul.f32 %v1542_v5, %v1005_v11  ;;  %v1007_v19 = vpop.f32.mrb[39].mxu0 }
 0x1e2   :  { %v1837_v26 = vpack.c.bf16 %v1783_v18, %v1782_v17  ;;  %v1577_v22 = vpop.permute.xlu0 %1576 }
 0x1e4   :  { %3874 = vmatmul.mubr.bf16.gmra.mrb[80].mxu1 %v1837_v26 }
 0x1e5   :  { %v1010_v29 = vpop.f32.mrb[40].mxu0 }
 0x1e6   :  { %v1012_v0 = vpop.f32.mrb[41].mxu0  ;;  %v1784_v36 = vmul.f32 %v1547_v27, %v1010_v29  ;;  %v1582_v27 = vpop.permute.xlu1 %1581 }
 0x1e7   :  { %v1013_v34 = vpop.f32.mrb[42].mxu0 }
 0x1e8   :  { %v1785_v37 = vmul.f32 %v1552_v28, %v1013_v34  ;;  %v1015_v39 = vpop.f32.mrb[43].mxu0 }
 0x1ea   :  { %v1838_v44 = vpack.c.bf16 %v1785_v37, %v1784_v36  ;;  %v1587_v37 = vpop.permute.xlu0 %1586  ;;  %v1592_v43 = vpop.permute.xlu1 %1591 }
 0x1ec   :  { %3877 = vmatprep.mubr.bf16.mxu1 %v1838_v44 }
 0x1ed   :  { %v1018_v45 = vpop.f32.mrb[44].mxu0 }
 0x1ee   :  { %v1020_v49 = vpop.f32.mrb[45].mxu0  ;;  %v1786_v54 = vmul.f32 %v1557_v47, %v1018_v45 }
 0x1ef   :  { %v1021_v52 = vpop.f32.mrb[46].mxu0 }
 0x1f0   :  { %v1787_v56 = vmul.f32 %v1562_v51, %v1021_v52  ;;  %v1023_v59 = vpop.f32.mrb[47].mxu0 }
 0x1f1   :  { %v1602_v59 = vpop.permute.xlu1 %1601 }
 0x1f2   :  { %v1839_v61 = vpack.c.bf16 %v1787_v56, %v1786_v54  ;;  %v1597_v54 = vpop.permute.xlu0 %1596 }
 0x1f4   :  { %3878 = vmatmul.mubr.bf16.gmra.mrb[84].mxu1 %v1839_v61 }
 0x1f5   :  { %v1026_v63 = vpop.f32.mrb[48].mxu0 }
 0x1f6   :  { %v1028_v5 = vpop.f32.mrb[49].mxu0  ;;  %v1788_v11 = vmul.f32 %v1567_v1, %v1026_v63 }
 0x1f7   :  { %v1029_v8 = vpop.f32.mrb[50].mxu0 }
 0x1f8   :  { %v1789_v14 = vmul.f32 %v1572_v7, %v1029_v8  ;;  %v1031_v17 = vpop.f32.mrb[51].mxu0 }
 0x1fa   :  { %v1840_v18 = vpack.c.bf16 %v1789_v14, %v1788_v11 }
 0x1fc   :  { %3881 = vmatprep.mubr.bf16.mxu1 %v1840_v18 }
 0x1fd   :  { %v1034_v19 = vpop.f32.mrb[52].mxu0 }
 0x1fe   :  { %v1036_v26 = vpop.f32.mrb[53].mxu0  ;;  %v1790_v29 = vmul.f32 %v1577_v22, %v1034_v19  ;;  %v1607_v22 = vpop.permute.xlu0 %1606 }
 0x1ff   :  { %v1037_v28 = vpop.f32.mrb[54].mxu0  ;;  %v1612_v26 = vpop.permute.xlu1 %1611 }
 0x200   :  { %v1791_v0 = vmul.f32 %v1582_v27, %v1037_v28  ;;  %v1039_v34 = vpop.f32.mrb[55].mxu0 }
 0x202   :  { %v1841_v35 = vpack.c.bf16 %v1791_v0, %v1790_v29 }
 0x204   :  { %3882 = vmatmul.mubr.bf16.gmra.mrb[88].mxu1 %v1841_v35 }
 0x205   :  { %v1042_v36 = vpop.f32.mrb[56].mxu0 }
 0x206   :  { %v1044_v39 = vpop.f32.mrb[57].mxu0  ;;  %v1792_v45 = vmul.f32 %v1587_v37, %v1042_v36 }
 0x207   :  { %v1045_v44 = vpop.f32.mrb[58].mxu0 }
 0x208   :  { %v1793_v47 = vmul.f32 %v1592_v43, %v1045_v44  ;;  %v1047_v49 = vpop.f32.mrb[59].mxu0  ;;  %v1622_v43 = vpop.permute.xlu1 %1621 }
 0x20a   :  { %v1842_v51 = vpack.c.bf16 %v1793_v47, %v1792_v45 }
 0x20c   :  { %3885 = vmatprep.mubr.bf16.mxu1 %v1842_v51 }
 0x20d   :  { %v1050_v52 = vpop.f32.mrb[60].mxu0 }
 0x20e   :  { %v1052_v56 = vpop.f32.mrb[61].mxu0  ;;  %v1794_v63 = vmul.f32 %v1597_v54, %v1050_v52 }
 0x20f   :  { %v1053_v61 = vpop.f32.mrb[62].mxu0 }
 0x210   :  { %v1795_v1 = vmul.f32 %v1602_v59, %v1053_v61  ;;  %v1055_v5 = vpop.f32.mrb[63].mxu0  ;;  %v1632_v59 = vpop.permute.xlu1 %1631 }
 0x212   :  { %v1843_v7 = vpack.c.bf16 %v1795_v1, %v1794_v63 }
 0x214   :  { %3886 = vmatmul.mubr.bf16.gmra.mrb[92].mxu1 %v1843_v7 }
 0x215   :  { %v1058_v8 = vpop.f32.mrb[64].mxu0 }
 0x216   :  { %v1059_v11 = vadd.f32 %v1058_v8, %v4891_v55  ;;  %v1060_v14 = vpop.f32.mrb[65].mxu0  ;;  %v1617_v55 = vpop.permute.xlu0 %1616 }
 0x217   :  { %v1061_v17 = vpop.f32.mrb[66].mxu0 }
 0x218   :  { %v1062_v18 = vadd.f32 %v1061_v17, %v4893_v58  ;;  %v1063_v19 = vpop.f32.mrb[67].mxu0  ;;  %v1796_v27 = vmul.f32 %v1607_v22, %v1059_v11  ;;  %v1642_v17 = vpop.permute.xlu1 %1641 }
 0x21a   :  { %v1797_v28 = vmul.f32 %v1612_v26, %v1062_v18  ;;  %v1627_v56 = vpop.permute.xlu0 %1626 }
 0x21c   :  { %v1844_v29 = vpack.c.bf16 %v1797_v28, %v1796_v27 }
 0x21d   :  { %v1066_v0 = vpop.f32.mrb[68].mxu0 }
 0x21e   :  { %v1067_v34 = vadd.f32 %v1066_v0, %v4898_v62  ;;  %v1068_v35 = vpop.f32.mrb[69].mxu0  ;;  %3889 = vmatprep.mubr.bf16.mxu1 %v1844_v29  ;;  %v1637_v14 = vpop.permute.xlu0 %1636 }
 0x21f   :  { %v1069_v36 = vpop.f32.mrb[70].mxu0 }
 0x220   :  { %v1070_v37 = vadd.f32 %v1069_v36, %v4900_v2  ;;  %v1071_v39 = vpop.f32.mrb[71].mxu0  ;;  %v1798_v44 = vmul.f32 %v1617_v55, %v1067_v34  ;;  %v1652_v34 = vpop.permute.xlu1 %1651 }
 0x222   :  { %v1799_v45 = vmul.f32 %v1622_v43, %v1070_v37  ;;  %v1647_v0 = vpop.permute.xlu0 %1646 }
 0x224   :  { %v1845_v58 = vpack.c.bf16 %v1799_v45, %v1798_v44 }
 0x225   :  { %v1074_v47 = vpop.f32.mrb[72].mxu0 }
 0x226   :  { %v1075_v49 = vadd.f32 %v1074_v47, %v4905_v6  ;;  %v1076_v51 = vpop.f32.mrb[73].mxu0  ;;  %3890 = vmatmul.mubr.bf16.gmra.mrb[96].mxu1 %v1845_v58  ;;  %v1657_v45 = vpop.permute.xlu0 %1656 }
 0x227   :  { %v1077_v52 = vpop.f32.mrb[74].mxu0  ;;  %v1662_v58 = vpop.permute.xlu1 %1661 }
 0x228   :  { %v1078_v54 = vadd.f32 %v1077_v52, %v4907_v9  ;;  %v1079_v62 = vpop.f32.mrb[75].mxu0  ;;  %v1800_v61 = vmul.f32 %v1627_v56, %v1075_v49 }
 0x22a   :  { %v1801_v63 = vmul.f32 %v1632_v59, %v1078_v54  ;;  %v1667_v59 = vpop.permute.xlu0 %1666 }
 0x22c   :  { %v1846_v2 = vpack.c.bf16 %v1801_v63, %v1800_v61  ;;  %v1672_v61 = vpop.permute.xlu1 %1671 }
 0x22d   :  { %v1082_v1 = vpop.f32.mrb[76].mxu0 }
 0x22e   :  { %v1083_v5 = vadd.f32 %v1082_v1, %v4912_v13  ;;  %v1084_v7 = vpop.f32.mrb[77].mxu0  ;;  %3893 = vmatprep.mubr.bf16.mxu1 %v1846_v2 }
 0x22f   :  { %v1085_v8 = vpop.f32.mrb[78].mxu0 }
 0x230   :  { %v1086_v11 = vadd.f32 %v1085_v8, %v4914_v16  ;;  %v1087_v6 = vpop.f32.mrb[79].mxu0  ;;  %v1802_v18 = vmul.f32 %v1637_v14, %v1083_v5  ;;  %v1682_v14 = vpop.permute.xlu1 %1681 }
 0x231   :  { %v1677_v6 = vpop.permute.xlu0 %1676 }
 0x232   :  { %v1803_v19 = vmul.f32 %v1642_v17, %v1086_v11 }
 0x234   :  { %v1847_v9 = vpack.c.bf16 %v1803_v19, %v1802_v18 }
 0x235   :  { %v1090_v22 = vpop.f32.mrb[80].mxu0 }
 0x236   :  { %v1091_v26 = vadd.f32 %v1090_v22, %v4919_v20  ;;  %v1092_v27 = vpop.f32.mrb[81].mxu0  ;;  %3894 = vmatmul.mubr.bf16.gmra.mrb[100].mxu1 %v1847_v9 }
 0x237   :  { %v1093_v28 = vpop.f32.mrb[82].mxu0 }
 0x238   :  { %v1094_v29 = vadd.f32 %v1093_v28, %v4921_v24  ;;  %v1095_v13 = vpop.f32.mrb[83].mxu0  ;;  %v1804_v35 = vmul.f32 %v1647_v0, %v1091_v26  ;;  %v1687_v28 = vpop.permute.xlu0 %1686 }
 0x23a   :  { %v1805_v36 = vmul.f32 %v1652_v34, %v1094_v29  ;;  %v1692_v29 = vpop.permute.xlu1 %1691 }
 0x23c   :  { %v1848_v16 = vpack.c.bf16 %v1805_v36, %v1804_v35 }
 0x23d   :  { %v1098_v37 = vpop.f32.mrb[84].mxu0 }
 0x23e   :  { %v1099_v39 = vadd.f32 %v1098_v37, %v4926_v30  ;;  %v1100_v55 = vpop.f32.mrb[85].mxu0  ;;  %3897 = vmatprep.mubr.bf16.mxu1 %v1848_v16 }
 0x23f   :  { %v1101_v43 = vpop.f32.mrb[86].mxu0  ;;  %v1702_v55 = vpop.permute.xlu1 %1701 }
 0x240   :  { %v1102_v44 = vadd.f32 %v1101_v43, %v4928_v38  ;;  %v1103_v20 = vpop.f32.mrb[87].mxu0  ;;  %v1806_v47 = vmul.f32 %v1657_v45, %v1099_v39  ;;  %v1697_v39 = vpop.permute.xlu0 %1696 }
 0x242   :  { %v1807_v49 = vmul.f32 %v1662_v58, %v1102_v44 }
 0x244   :  { %v1849_v24 = vpack.c.bf16 %v1807_v49, %v1806_v47 }
 0x245   :  { %v1106_v51 = vpop.f32.mrb[88].mxu0 }
 0x246   :  { %v1107_v52 = vadd.f32 %v1106_v51, %v4933_v46  ;;  %v1108_v54 = vpop.f32.mrb[89].mxu0  ;;  %3898 = vmatmul.mubr.bf16.gmra.mrb[104].mxu1 %v1849_v24  ;;  %v1707_v24 = vpop.permute.xlu0 %1706 }
 0x247   :  { %v1109_v62 = vpop.f32.mrb[90].mxu0  ;;  %v1712_v51 = vpop.permute.xlu1 %1711 }
 0x248   :  { %v1110_v56 = vadd.f32 %v1109_v62, %v4935_v53  ;;  %v1111_v30 = vpop.f32.mrb[91].mxu0  ;;  %v1808_v63 = vmul.f32 %v1667_v59, %v1107_v52 }
 0x24a   :  { %v1809_v2 = vmul.f32 %v1672_v61, %v1110_v56  ;;  %v1717_v61 = vpop.permute.xlu0 %1716 }
 0x24c   :  { %v1850_v38 = vpack.c.bf16 %v1809_v2, %v1808_v63  ;;  %v1722_v2 = vpop.permute.xlu1 %1721 }
 0x24d   :  { %v1114_v1 = vpop.f32.mrb[92].mxu0 }
 0x24e   :  { %v1115_v5 = vadd.f32 %v1114_v1, %v4940_v3  ;;  %v1116_v7 = vpop.f32.mrb[93].mxu0  ;;  %3901 = vmatprep.mubr.bf16.mxu1 %v1850_v38 }
 0x24f   :  { %v1117_v8 = vpop.f32.mrb[94].mxu0  ;;  %v5006_v7 = vld [vmem:[%s5182_s6] ss:$0 sm:$0xff] }
 0x250   :  { %v1118_v11 = vadd.f32 %v1117_v8, %v4942_v12  ;;  %v1119_v46 = vpop.f32.mrb[95].mxu0  ;;  %v1810_v17 = vmul.f32 %v1677_v6, %v1115_v5  ;;  %v1727_v8 = vpop.permute.xlu0 %1726 }
 0x252   :  { %v1811_v18 = vmul.f32 %v1682_v14, %v1118_v11 }
 0x254   :  { %v1851_v53 = vpack.c.bf16 %v1811_v18, %v1810_v17 }
 0x255   :  { %v1122_v19 = vpop.f32.mrb[96].mxu0 }
 0x256   :  { %v1123_v9 = vadd.f32 %v1122_v19, %v4947_v25  ;;  %v1124_v22 = vpop.f32.mrb[97].mxu0  ;;  %3902 = vmatmul.mubr.bf16.gmra.mrb[108].mxu1 %v1851_v53  ;;  %v1732_v53 = vpop.permute.xlu1 %1731 }
 0x257   :  { %v1125_v26 = vpop.f32.mrb[98].mxu0 }
 0x258   :  { %v1126_v27 = vadd.f32 %v1125_v26, %v4949_v32  ;;  %v1127_v3 = vpop.f32.mrb[99].mxu0  ;;  %v1812_v13 = vmul.f32 %v1687_v28, %v1123_v9 }
 0x25a   :  { %v1813_v0 = vmul.f32 %v1692_v29, %v1126_v27 }
 0x25c   :  { %v1852_v12 = vpack.c.bf16 %v1813_v0, %v1812_v13 }
 0x25d   :  { %v1130_v34 = vpop.f32.mrb[100].mxu0 }
 0x25e   :  { %v1131_v35 = vadd.f32 %v1130_v34, %v4951_v41  ;;  %v1132_v36 = vpop.f32.mrb[101].mxu0  ;;  %3905 = vmatprep.mubr.bf16.mxu1 %v1852_v12 }
 0x25f   :  { %v1133_v16 = vpop.f32.mrb[102].mxu0 }
 0x260   :  { %v1134_v37 = vadd.f32 %v1133_v16, %v4953_v48  ;;  %v1135_v25 = vpop.f32.mrb[103].mxu0  ;;  %v1814_v43 = vmul.f32 %v1697_v39, %v1131_v35 }
 0x261   :  { %v1737_v25 = vpop.permute.xlu0 %1736 }
 0x262   :  { %v1815_v44 = vmul.f32 %v1702_v55, %v1134_v37 }
 0x264   :  { %v1853_v32 = vpack.c.bf16 %v1815_v44, %v1814_v43  ;;  %v1742_v43 = vpop.permute.xlu1 %1741 }
 0x265   :  { %v1138_v20 = vpop.f32.mrb[104].mxu0 }
 0x266   :  { %v1139_v45 = vadd.f32 %v1138_v20, %v4955_v57  ;;  %v1140_v58 = vpop.f32.mrb[105].mxu0  ;;  %3906 = vmatmul.mubr.bf16.gmra.mrb[112].mxu1 %v1853_v32 }
 0x267   :  { %v1141_v47 = vpop.f32.mrb[106].mxu0 }
 0x268   :  { %v1142_v49 = vadd.f32 %v1141_v47, %v4957_v4  ;;  %v1143_v41 = vpop.f32.mrb[107].mxu0  ;;  %v1816_v52 = vmul.f32 %v1707_v24, %v1139_v45  ;;  %v1747_v45 = vpop.permute.xlu0 %1746 }
 0x26a   :  { %v1817_v54 = vmul.f32 %v1712_v51, %v1142_v49 }
 0x26c   :  { %v1854_v48 = vpack.c.bf16 %v1817_v54, %v1816_v52  ;;  %v1752_v54 = vpop.permute.xlu1 %1751 }
 0x26d   :  { %v1146_v62 = vpop.f32.mrb[108].mxu0 }
 0x26e   :  { %v1147_v56 = vadd.f32 %v1146_v62, %v4959_v15  ;;  %v1148_v30 = vpop.f32.mrb[109].mxu0  ;;  %3909 = vmatprep.mubr.bf16.mxu1 %v1854_v48 }
 0x26f   :  { %v1149_v59 = vpop.f32.mrb[110].mxu0 }
 0x270   :  { %v1150_v57 = vadd.f32 %v1149_v59, %v4961_v23  ;;  %v1151_v63 = vpop.f32.mrb[111].mxu0  ;;  %v1818_v38 = vmul.f32 %v1717_v61, %v1147_v56 }
 0x272   :  { %v1819_v1 = vmul.f32 %v1722_v2, %v1150_v57 }
 0x274   :  { %v1855_v4 = vpack.c.bf16 %v1819_v1, %v1818_v38 }
 0x275   :  { %v1154_v5 = vpop.f32.mrb[112].mxu0 }
 0x276   :  { %v1155_v15 = vadd.f32 %v1154_v5, %v4963_v33  ;;  %v1156_v11 = vpop.f32.mrb[113].mxu0  ;;  %3910 = vmatmul.mubr.bf16.gmra.mrb[116].mxu1 %v1855_v4 }
 0x277   :  { %v1157_v46 = vpop.f32.mrb[114].mxu0  ;;  %v3859_v6 = vpop.f32.mrb[64].mxu1 }
 0x278   :  { %v1158_v23 = vadd.f32 %v1157_v46, %v4965_v40  ;;  %v2831_v14 = vadd.f32 %v3859_v6, %v5006_v7  ;;  %v1159_v17 = vpop.f32.mrb[115].mxu0  ;;  %v2567_v18 = vpop.f32.mrb[65].mxu1  ;;  %v1820_v22 = vmul.f32 %v1727_v8, %v1155_v15 }
 0x279   :  { %v2829_v19 = vadd.f32 %v5006_v7, %v2567_v18  ;;  %v3860_v9 = vpop.f32.mrb[66].mxu1 }
 0x27a   :  { %v1821_v26 = vmul.f32 %v1732_v53, %v1158_v23  ;;  %v2832_v27 = vadd.f32 %v3860_v9, %v5006_v7  ;;  %v2570_v3 = vpop.f32.mrb[67].mxu1  ;;  %v2895_v28 = vmax.f32 %v2831_v14, 0.0  ;;  %v1757_v23 = vpop.permute.xlu0 %1756 }
 0x27b   :  { %v2830_v33 = vadd.f32 %v5006_v7, %v2570_v3  ;;  %v2893_v0 = vmax.f32 %v2829_v19, 0.0  ;;  %v1762_v14 = vpop.permute.xlu1 %1761 }
 0x27c   :  { %v2896_v29 = vmax.f32 %v2832_v27, 0.0  ;;  %v1856_v13 = vpack.c.bf16 %v1821_v26, %v1820_v22 }
 0x27d   :  { %v2894_v40 = vmax.f32 %v2830_v33, 0.0  ;;  %v1162_v12 = vpop.f32.mrb[116].mxu0 }
 0x27e   :  { %v3498_v34 = vpack.c.bf16 %v2896_v29, %v2895_v28  ;;  %v1163_v35 = vadd.f32 %v1162_v12, %v4967_v50  ;;  %v1164_v36 = vpop.f32.mrb[117].mxu0  ;;  %3913 = vmatprep.mubr.bf16.mxu1 %v1856_v13 }
 0x27f   :  { %v3493_v16 = vpack.c.bf16 %v2894_v40, %v2893_v0  ;;  %v1165_v37 = vpop.f32.mrb[118].mxu0 }
 0x280   :  { %3650 = vst [vmem:[%s5183_s7 + $0x8] sm:$0xff] %v3498_v34   ;;  %v1166_v39 = vadd.f32 %v1165_v37, %v4969_v60  ;;  %v1167_v55 = vpop.f32.mrb[119].mxu0  ;;  %v1822_v44 = vmul.f32 %v1737_v25, %v1163_v35 }
 0x281   :  { %3494 = vst [vmem:[%s5183_s7] sm:$0xff] %v3493_v16  }
 0x282   :  { %v1823_v32 = vmul.f32 %v1742_v43, %v1166_v39 }
 0x284   :  { %v1857_v50 = vpack.c.bf16 %v1823_v32, %v1822_v44 }
 0x285   :  { %v1170_v20 = vpop.f32.mrb[120].mxu0 }
 0x286   :  { %v1171_v58 = vadd.f32 %v1170_v20, %v4971_v10  ;;  %v1172_v47 = vpop.f32.mrb[121].mxu0  ;;  %3914 = vmatmul.mubr.bf16.gmra.mrb[120].mxu1 %v1857_v50 }
 0x287   :  { %v1173_v49 = vpop.f32.mrb[122].mxu0  ;;  %v3863_v41 = vpop.f32.mrb[68].mxu1 }
 0x288   :  { %v1174_v24 = vadd.f32 %v1173_v49, %v4973_v21  ;;  %v2835_v60 = vadd.f32 %v3863_v41, %v5006_v7  ;;  %v1175_v51 = vpop.f32.mrb[123].mxu0  ;;  %v2583_v52 = vpop.f32.mrb[69].mxu1  ;;  %v1824_v56 = vmul.f32 %v1747_v45, %v1171_v58 }
 0x289   :  { %v2833_v48 = vadd.f32 %v5006_v7, %v2583_v52  ;;  %v3864_v62 = vpop.f32.mrb[70].mxu1 }
 0x28a   :  { %v1825_v30 = vmul.f32 %v1752_v54, %v1174_v24  ;;  %v2836_v59 = vadd.f32 %v3864_v62, %v5006_v7  ;;  %v2586_v61 = vpop.f32.mrb[71].mxu1  ;;  %v2899_v57 = vmax.f32 %v2835_v60, 0.0 }
 0x28b   :  { %v2834_v10 = vadd.f32 %v5006_v7, %v2586_v61  ;;  %v2897_v38 = vmax.f32 %v2833_v48, 0.0 }
 0x28c   :  { %v2900_v63 = vmax.f32 %v2836_v59, 0.0  ;;  %v1858_v2 = vpack.c.bf16 %v1825_v30, %v1824_v56 }
 0x28d   :  { %v2898_v21 = vmax.f32 %v2834_v10, 0.0  ;;  %v1178_v1 = vpop.f32.mrb[124].mxu0 }
 0x28e   :  { %v3508_v4 = vpack.c.bf16 %v2900_v63, %v2899_v57  ;;  %v1179_v5 = vadd.f32 %v1178_v1, %v4975_v31  ;;  %v1180_v8 = vpop.f32.mrb[125].mxu0  ;;  %3917 = vmatprep.mubr.bf16.mxu1 %v1858_v2 }
 0x28f   :  { %v3503_v15 = vpack.c.bf16 %v2898_v21, %v2897_v38  ;;  %v1181_v11 = vpop.f32.mrb[126].mxu0 }
 0x290   :  { %3652 = vst [vmem:[%s5183_s7 + $0x18] sm:$0xff] %v3508_v4   ;;  %v1182_v46 = vadd.f32 %v1181_v11, %v4977_v42  ;;  %v1183_v6 = vpop.f32.mrb[127].mxu0  ;;  %v1826_v17 = vmul.f32 %v1757_v23, %v1179_v5 }
 0x291   :  { %3651 = vst [vmem:[%s5183_s7 + $0x10] sm:$0xff] %v3503_v15  }
 0x292   :  { %v1827_v18 = vmul.f32 %v1762_v14, %v1182_v46 }
 0x294   :  { %v1859_v31 = vpack.c.bf16 %v1827_v18, %v1826_v17 }
 0x296   :  { %3918 = vmatmul.mubr.bf16.gmra.mrb[124].mxu1 %v1859_v31 }
 0x297   :  { %v3867_v53 = vpop.f32.mrb[72].mxu1 }
 0x298   :  { %v2839_v19 = vadd.f32 %v3867_v53, %v5006_v7  ;;  %v2599_v9 = vpop.f32.mrb[73].mxu1 }
 0x299   :  { %v2837_v22 = vadd.f32 %v5006_v7, %v2599_v9  ;;  %v3868_v26 = vpop.f32.mrb[74].mxu1 }
 0x29a   :  { %v2840_v42 = vadd.f32 %v3868_v26, %v5006_v7  ;;  %v2602_v27 = vpop.f32.mrb[75].mxu1  ;;  %v2903_v33 = vmax.f32 %v2839_v19, 0.0 }
 0x29b   :  { %v2838_v3 = vadd.f32 %v5006_v7, %v2602_v27  ;;  %v2901_v29 = vmax.f32 %v2837_v22, 0.0 }
 0x29c   :  { %v2904_v28 = vmax.f32 %v2840_v42, 0.0 }
 0x29d   :  { %v2902_v13 = vmax.f32 %v2838_v3, 0.0 }
 0x29e   :  { %v3518_v0 = vpack.c.bf16 %v2904_v28, %v2903_v33 }
 0x29f   :  { %v3513_v40 = vpack.c.bf16 %v2902_v13, %v2901_v29 }
 0x2a0   :  { %3654 = vst [vmem:[%s5183_s7 + $0x28] sm:$0xff] %v3518_v0  }
 0x2a1   :  { %3653 = vst [vmem:[%s5183_s7 + $0x20] sm:$0xff] %v3513_v40  }
 0x2a7   :  { %v3871_v12 = vpop.f32.mrb[76].mxu1 }
 0x2a8   :  { %v2843_v34 = vadd.f32 %v3871_v12, %v5006_v7  ;;  %v2615_v35 = vpop.f32.mrb[77].mxu1 }
 0x2a9   :  { %v2841_v36 = vadd.f32 %v5006_v7, %v2615_v35  ;;  %v3872_v16 = vpop.f32.mrb[78].mxu1 }
 0x2aa   :  { %v2844_v37 = vadd.f32 %v3872_v16, %v5006_v7  ;;  %v2618_v25 = vpop.f32.mrb[79].mxu1  ;;  %v2907_v55 = vmax.f32 %v2843_v34, 0.0 }
 0x2ab   :  { %v2842_v39 = vadd.f32 %v5006_v7, %v2618_v25  ;;  %v2905_v44 = vmax.f32 %v2841_v36, 0.0 }
 0x2ac   :  { %v2908_v43 = vmax.f32 %v2844_v37, 0.0 }
 0x2ad   :  { %v2906_v32 = vmax.f32 %v2842_v39, 0.0 }
 0x2ae   :  { %v3528_v50 = vpack.c.bf16 %v2908_v43, %v2907_v55 }
 0x2af   :  { %v3523_v20 = vpack.c.bf16 %v2906_v32, %v2905_v44 }
 0x2b0   :  { %3656 = vst [vmem:[%s5183_s7 + $0x38] sm:$0xff] %v3528_v50  }
 0x2b1   :  { %3655 = vst [vmem:[%s5183_s7 + $0x30] sm:$0xff] %v3523_v20  }
 0x2b7   :  { %v3875_v45 = vpop.f32.mrb[80].mxu1 }
 0x2b8   :  { %v2847_v58 = vadd.f32 %v3875_v45, %v5006_v7  ;;  %v2631_v47 = vpop.f32.mrb[81].mxu1 }
 0x2b9   :  { %v2845_v49 = vadd.f32 %v5006_v7, %v2631_v47  ;;  %v3876_v41 = vpop.f32.mrb[82].mxu1 }
 0x2ba   :  { %v2848_v24 = vadd.f32 %v3876_v41, %v5006_v7  ;;  %v2634_v60 = vpop.f32.mrb[83].mxu1  ;;  %v2911_v52 = vmax.f32 %v2847_v58, 0.0 }
 0x2bb   :  { %v2846_v51 = vadd.f32 %v5006_v7, %v2634_v60  ;;  %v2909_v48 = vmax.f32 %v2845_v49, 0.0 }
 0x2bc   :  { %v2912_v54 = vmax.f32 %v2848_v24, 0.0 }
 0x2bd   :  { %v2910_v62 = vmax.f32 %v2846_v51, 0.0 }
 0x2be   :  { %v3538_v56 = vpack.c.bf16 %v2912_v54, %v2911_v52 }
 0x2bf   :  { %v3533_v30 = vpack.c.bf16 %v2910_v62, %v2909_v48 }
 0x2c0   :  { %3658 = vst [vmem:[%s5183_s7 + $0x48] sm:$0xff] %v3538_v56  }
 0x2c1   :  { %3657 = vst [vmem:[%s5183_s7 + $0x40] sm:$0xff] %v3533_v30  }
 0x2c7   :  { %v3879_v59 = vpop.f32.mrb[84].mxu1 }
 0x2c8   :  { %v2851_v61 = vadd.f32 %v3879_v59, %v5006_v7  ;;  %v2647_v10 = vpop.f32.mrb[85].mxu1 }
 0x2c9   :  { %v2849_v57 = vadd.f32 %v5006_v7, %v2647_v10  ;;  %v3880_v63 = vpop.f32.mrb[86].mxu1 }
 0x2ca   :  { %v2852_v2 = vadd.f32 %v3880_v63, %v5006_v7  ;;  %v2650_v38 = vpop.f32.mrb[87].mxu1  ;;  %v2915_v1 = vmax.f32 %v2851_v61, 0.0 }
 0x2cb   :  { %v2850_v21 = vadd.f32 %v5006_v7, %v2650_v38  ;;  %v2913_v5 = vmax.f32 %v2849_v57, 0.0 }
 0x2cc   :  { %v2916_v4 = vmax.f32 %v2852_v2, 0.0 }
 0x2cd   :  { %v2914_v8 = vmax.f32 %v2850_v21, 0.0 }
 0x2ce   :  { %v3548_v15 = vpack.c.bf16 %v2916_v4, %v2915_v1 }
 0x2cf   :  { %v3543_v11 = vpack.c.bf16 %v2914_v8, %v2913_v5 }
 0x2d0   :  { %3660 = vst [vmem:[%s5183_s7 + $0x58] sm:$0xff] %v3548_v15  }
 0x2d1   :  { %3659 = vst [vmem:[%s5183_s7 + $0x50] sm:$0xff] %v3543_v11  }
 0x2d7   :  { %v3883_v46 = vpop.f32.mrb[88].mxu1 }
 0x2d8   :  { %v2855_v6 = vadd.f32 %v3883_v46, %v5006_v7  ;;  %v2663_v23 = vpop.f32.mrb[89].mxu1 }
 0x2d9   :  { %v2853_v14 = vadd.f32 %v5006_v7, %v2663_v23  ;;  %v3884_v17 = vpop.f32.mrb[90].mxu1 }
 0x2da   :  { %v2856_v18 = vadd.f32 %v3884_v17, %v5006_v7  ;;  %v2666_v31 = vpop.f32.mrb[91].mxu1  ;;  %v2919_v19 = vmax.f32 %v2855_v6, 0.0 }
 0x2db   :  { %v2854_v53 = vadd.f32 %v5006_v7, %v2666_v31  ;;  %v2917_v22 = vmax.f32 %v2853_v14, 0.0 }
 0x2dc   :  { %v2920_v9 = vmax.f32 %v2856_v18, 0.0 }
 0x2dd   :  { %v2918_v26 = vmax.f32 %v2854_v53, 0.0 }
 0x2de   :  { %v3558_v42 = vpack.c.bf16 %v2920_v9, %v2919_v19 }
 0x2df   :  { %v3553_v27 = vpack.c.bf16 %v2918_v26, %v2917_v22 }
 0x2e0   :  { %3662 = vst [vmem:[%s5183_s7 + $0x68] sm:$0xff] %v3558_v42  }
 0x2e1   :  { %3661 = vst [vmem:[%s5183_s7 + $0x60] sm:$0xff] %v3553_v27  }
 0x2e7   :  { %v3887_v3 = vpop.f32.mrb[92].mxu1 }
 0x2e8   :  { %v2859_v33 = vadd.f32 %v3887_v3, %v5006_v7  ;;  %v2679_v28 = vpop.f32.mrb[93].mxu1 }
 0x2e9   :  { %v2857_v29 = vadd.f32 %v5006_v7, %v2679_v28  ;;  %v3888_v13 = vpop.f32.mrb[94].mxu1 }
 0x2ea   :  { %v2860_v0 = vadd.f32 %v3888_v13, %v5006_v7  ;;  %v2682_v40 = vpop.f32.mrb[95].mxu1  ;;  %v2923_v34 = vmax.f32 %v2859_v33, 0.0 }
 0x2eb   :  { %v2858_v12 = vadd.f32 %v5006_v7, %v2682_v40  ;;  %v2921_v36 = vmax.f32 %v2857_v29, 0.0 }
 0x2ec   :  { %v2924_v35 = vmax.f32 %v2860_v0, 0.0 }
 0x2ed   :  { %v2922_v16 = vmax.f32 %v2858_v12, 0.0 }
 0x2ee   :  { %v3568_v37 = vpack.c.bf16 %v2924_v35, %v2923_v34 }
 0x2ef   :  { %v3563_v25 = vpack.c.bf16 %v2922_v16, %v2921_v36 }
 0x2f0   :  { %3664 = vst [vmem:[%s5183_s7 + $0x78] sm:$0xff] %v3568_v37  }
 0x2f1   :  { %3663 = vst [vmem:[%s5183_s7 + $0x70] sm:$0xff] %v3563_v25  }
 0x2f9   :  { %v3891_v39 = vpop.f32.mrb[96].mxu1 }
 0x2fa   :  { %v2863_v55 = vadd.f32 %v3891_v39, %v5006_v7  ;;  %v2695_v43 = vpop.f32.mrb[97].mxu1 }
 0x2fb   :  { %v2861_v44 = vadd.f32 %v5006_v7, %v2695_v43  ;;  %v3892_v32 = vpop.f32.mrb[98].mxu1 }
 0x2fc   :  { %v2864_v50 = vadd.f32 %v3892_v32, %v5006_v7  ;;  %v2698_v20 = vpop.f32.mrb[99].mxu1  ;;  %v2927_v58 = vmax.f32 %v2863_v55, 0.0 }
 0x2fd   :  { %v2862_v45 = vadd.f32 %v5006_v7, %v2698_v20  ;;  %v2925_v49 = vmax.f32 %v2861_v44, 0.0 }
 0x2fe   :  { %v2928_v47 = vmax.f32 %v2864_v50, 0.0 }
 0x2ff   :  { %v2926_v41 = vmax.f32 %v2862_v45, 0.0 }
 0x300   :  { %v3578_v24 = vpack.c.bf16 %v2928_v47, %v2927_v58 }
 0x301   :  { %v3573_v60 = vpack.c.bf16 %v2926_v41, %v2925_v49 }
 0x302   :  { %3666 = vst [vmem:[%s5183_s7 + $0x88] sm:$0xff] %v3578_v24  }
 0x303   :  { %3665 = vst [vmem:[%s5183_s7 + $0x80] sm:$0xff] %v3573_v60  }
 0x309   :  { %v3895_v51 = vpop.f32.mrb[100].mxu1 }
 0x30a   :  { %v2867_v52 = vadd.f32 %v3895_v51, %v5006_v7  ;;  %v2711_v54 = vpop.f32.mrb[101].mxu1 }
 0x30b   :  { %v2865_v48 = vadd.f32 %v5006_v7, %v2711_v54  ;;  %v3896_v62 = vpop.f32.mrb[102].mxu1 }
 0x30c   :  { %v2868_v56 = vadd.f32 %v3896_v62, %v5006_v7  ;;  %v2714_v30 = vpop.f32.mrb[103].mxu1  ;;  %v2931_v61 = vmax.f32 %v2867_v52, 0.0 }
 0x30d   :  { %v2866_v59 = vadd.f32 %v5006_v7, %v2714_v30  ;;  %v2929_v57 = vmax.f32 %v2865_v48, 0.0 }
 0x30e   :  { %v2932_v10 = vmax.f32 %v2868_v56, 0.0 }
 0x30f   :  { %v2930_v63 = vmax.f32 %v2866_v59, 0.0 }
 0x310   :  { %v3588_v2 = vpack.c.bf16 %v2932_v10, %v2931_v61 }
 0x311   :  { %v3583_v38 = vpack.c.bf16 %v2930_v63, %v2929_v57 }
 0x312   :  { %3668 = vst [vmem:[%s5183_s7 + $0x98] sm:$0xff] %v3588_v2  }
 0x313   :  { %3667 = vst [vmem:[%s5183_s7 + $0x90] sm:$0xff] %v3583_v38  }
 0x319   :  { %v3899_v21 = vpop.f32.mrb[104].mxu1 }
 0x31a   :  { %v2871_v1 = vadd.f32 %v3899_v21, %v5006_v7  ;;  %v2727_v4 = vpop.f32.mrb[105].mxu1 }
 0x31b   :  { %v2869_v5 = vadd.f32 %v5006_v7, %v2727_v4  ;;  %v3900_v8 = vpop.f32.mrb[106].mxu1 }
 0x31c   :  { %v2872_v15 = vadd.f32 %v3900_v8, %v5006_v7  ;;  %v2730_v11 = vpop.f32.mrb[107].mxu1  ;;  %v2935_v6 = vmax.f32 %v2871_v1, 0.0 }
 0x31d   :  { %v2870_v46 = vadd.f32 %v5006_v7, %v2730_v11  ;;  %v2933_v14 = vmax.f32 %v2869_v5, 0.0 }
 0x31e   :  { %v2936_v23 = vmax.f32 %v2872_v15, 0.0 }
 0x31f   :  { %v2934_v17 = vmax.f32 %v2870_v46, 0.0 }
 0x320   :  { %v3598_v18 = vpack.c.bf16 %v2936_v23, %v2935_v6 }
 0x321   :  { %v3593_v31 = vpack.c.bf16 %v2934_v17, %v2933_v14 }
 0x322   :  { %3670 = vst [vmem:[%s5183_s7 + $0xa8] sm:$0xff] %v3598_v18  }
 0x323   :  { %3669 = vst [vmem:[%s5183_s7 + $0xa0] sm:$0xff] %v3593_v31  }
 0x329   :  { %v3903_v53 = vpop.f32.mrb[108].mxu1 }
 0x32a   :  { %v2875_v19 = vadd.f32 %v3903_v53, %v5006_v7  ;;  %v2743_v9 = vpop.f32.mrb[109].mxu1 }
 0x32b   :  { %v2873_v22 = vadd.f32 %v5006_v7, %v2743_v9  ;;  %v3904_v26 = vpop.f32.mrb[110].mxu1 }
 0x32c   :  { %v2876_v42 = vadd.f32 %v3904_v26, %v5006_v7  ;;  %v2746_v27 = vpop.f32.mrb[111].mxu1  ;;  %v2939_v33 = vmax.f32 %v2875_v19, 0.0 }
 0x32d   :  { %v2874_v3 = vadd.f32 %v5006_v7, %v2746_v27  ;;  %v2937_v29 = vmax.f32 %v2873_v22, 0.0 }
 0x32e   :  { %v2940_v28 = vmax.f32 %v2876_v42, 0.0 }
 0x32f   :  { %v2938_v13 = vmax.f32 %v2874_v3, 0.0 }
 0x330   :  { %v3608_v0 = vpack.c.bf16 %v2940_v28, %v2939_v33 }
 0x331   :  { %v3603_v40 = vpack.c.bf16 %v2938_v13, %v2937_v29 }
 0x332   :  { %3672 = vst [vmem:[%s5183_s7 + $0xb8] sm:$0xff] %v3608_v0  }
 0x333   :  { %3671 = vst [vmem:[%s5183_s7 + $0xb0] sm:$0xff] %v3603_v40  }
 0x339   :  { %v3907_v12 = vpop.f32.mrb[112].mxu1 }
 0x33a   :  { %v2879_v34 = vadd.f32 %v3907_v12, %v5006_v7  ;;  %v2759_v35 = vpop.f32.mrb[113].mxu1 }
 0x33b   :  { %v2877_v36 = vadd.f32 %v5006_v7, %v2759_v35  ;;  %v3908_v16 = vpop.f32.mrb[114].mxu1 }
 0x33c   :  { %v2880_v37 = vadd.f32 %v3908_v16, %v5006_v7  ;;  %v2762_v25 = vpop.f32.mrb[115].mxu1  ;;  %v2943_v55 = vmax.f32 %v2879_v34, 0.0 }
 0x33d   :  { %v2878_v39 = vadd.f32 %v5006_v7, %v2762_v25  ;;  %v2941_v44 = vmax.f32 %v2877_v36, 0.0 }
 0x33e   :  { %v2944_v43 = vmax.f32 %v2880_v37, 0.0 }
 0x33f   :  { %v2942_v32 = vmax.f32 %v2878_v39, 0.0 }
 0x340   :  { %v3618_v50 = vpack.c.bf16 %v2944_v43, %v2943_v55 }
 0x341   :  { %v3613_v20 = vpack.c.bf16 %v2942_v32, %v2941_v44 }
 0x342   :  { %3674 = vst [vmem:[%s5183_s7 + $0xc8] sm:$0xff] %v3618_v50  }
 0x343   :  { %3673 = vst [vmem:[%s5183_s7 + $0xc0] sm:$0xff] %v3613_v20  }
 0x349   :  { %v3911_v45 = vpop.f32.mrb[116].mxu1 }
 0x34a   :  { %v2883_v58 = vadd.f32 %v3911_v45, %v5006_v7  ;;  %v2775_v47 = vpop.f32.mrb[117].mxu1 }
 0x34b   :  { %v2881_v49 = vadd.f32 %v5006_v7, %v2775_v47  ;;  %v3912_v41 = vpop.f32.mrb[118].mxu1 }
 0x34c   :  { %v2884_v24 = vadd.f32 %v3912_v41, %v5006_v7  ;;  %v2778_v60 = vpop.f32.mrb[119].mxu1  ;;  %v2947_v52 = vmax.f32 %v2883_v58, 0.0 }
 0x34d   :  { %v2882_v51 = vadd.f32 %v5006_v7, %v2778_v60  ;;  %v2945_v48 = vmax.f32 %v2881_v49, 0.0 }
 0x34e   :  { %v2948_v54 = vmax.f32 %v2884_v24, 0.0 }
 0x34f   :  { %v2946_v62 = vmax.f32 %v2882_v51, 0.0 }
 0x350   :  { %v3628_v56 = vpack.c.bf16 %v2948_v54, %v2947_v52 }
 0x351   :  { %v3623_v30 = vpack.c.bf16 %v2946_v62, %v2945_v48 }
 0x352   :  { %3676 = vst [vmem:[%s5183_s7 + $0xd8] sm:$0xff] %v3628_v56  }
 0x353   :  { %3675 = vst [vmem:[%s5183_s7 + $0xd0] sm:$0xff] %v3623_v30  }
 0x359   :  { %v3915_v59 = vpop.f32.mrb[120].mxu1 }
 0x35a   :  { %v2887_v61 = vadd.f32 %v3915_v59, %v5006_v7  ;;  %v2791_v10 = vpop.f32.mrb[121].mxu1 }
 0x35b   :  { %v2885_v57 = vadd.f32 %v5006_v7, %v2791_v10  ;;  %v3916_v63 = vpop.f32.mrb[122].mxu1 }
 0x35c   :  { %v2888_v2 = vadd.f32 %v3916_v63, %v5006_v7  ;;  %v2794_v38 = vpop.f32.mrb[123].mxu1  ;;  %v2951_v1 = vmax.f32 %v2887_v61, 0.0 }
 0x35d   :  { %v2886_v21 = vadd.f32 %v5006_v7, %v2794_v38  ;;  %v2949_v5 = vmax.f32 %v2885_v57, 0.0 }
 0x35e   :  { %v2952_v4 = vmax.f32 %v2888_v2, 0.0 }
 0x35f   :  { %v2950_v8 = vmax.f32 %v2886_v21, 0.0 }
 0x360   :  { %v3638_v15 = vpack.c.bf16 %v2952_v4, %v2951_v1 }
 0x361   :  { %v3633_v11 = vpack.c.bf16 %v2950_v8, %v2949_v5 }
 0x362   :  { %3678 = vst [vmem:[%s5183_s7 + $0xe8] sm:$0xff] %v3638_v15  }
 0x363   :  { %3677 = vst [vmem:[%s5183_s7 + $0xe0] sm:$0xff] %v3633_v11  }
 0x369   :  { %v3919_v46 = vpop.f32.mrb[124].mxu1 }
 0x36a   :  { %v2891_v6 = vadd.f32 %v3919_v46, %v5006_v7  ;;  %v2807_v23 = vpop.f32.mrb[125].mxu1 }
 0x36b   :  { %v2889_v14 = vadd.f32 %v5006_v7, %v2807_v23  ;;  %v3920_v17 = vpop.f32.mrb[126].mxu1 }
 0x36c   :  { %v2892_v18 = vadd.f32 %v3920_v17, %v5006_v7  ;;  %v2810_v31 = vpop.f32.mrb[127].mxu1  ;;  %v2955_v19 = vmax.f32 %v2891_v6, 0.0 }
 0x36d   :  { %v2890_v53 = vadd.f32 %v5006_v7, %v2810_v31  ;;  %v2953_v22 = vmax.f32 %v2889_v14, 0.0 }
 0x36e   :  { %v2956_v9 = vmax.f32 %v2892_v18, 0.0 }
 0x36f   :  { %v2954_v26 = vmax.f32 %v2890_v53, 0.0 }
 0x370   :  { %v3648_v42 = vpack.c.bf16 %v2956_v9, %v2955_v19 }
 0x371   :  { %v3643_v27 = vpack.c.bf16 %v2954_v26, %v2953_v22 }
 0x372   :  { %3680 = vst [vmem:[%s5183_s7 + $0xf8] sm:$0xff] %v3648_v42  }
 0x373   :  { %3679 = vst [vmem:[%s5183_s7 + $0xf0] sm:$0xff] %v3643_v27  }

// kernel: encoder_forward.5
= control target key start
LH: loop header
LB: loop body
LE: loop exit
PB: predicated region body
PF: predicated region fallthrough
CT: control target
= control target key end

     0   :  { %v3784_v1 = vmov 0   ;;  %s4738_s0 = inlined_call_operand.vmem [shape: s8[512,512], index: 0, kind: input, shape index: {}]   ;;  %s4739_s1 = inlined_call_operand.vmem [shape: bf16[512,128], index: 1, kind: input, shape index: {}, may-alias: {1,2}]   ;;  %s4740_s2 = inlined_call_operand.vmem [shape: bf16[512,128], index: 2, kind: input, shape index: {}, may-alias: {1,2}]   ;;  %s4741_s3 = inlined_call_operand.vmem [shape: f32[512,1], index: 3, kind: input, shape index: {}]   ;;  %s4742_s4 = inlined_call_operand.vmem [shape: bf16[128,128], index: 4, kind: input, shape index: {}]   ;;  %s4743_s5 = inlined_call_operand.vmem [shape: bf16[128,128], index: 5, kind: input, shape index: {}]   ;;  %s4744_s6 = inlined_call_operand.vmem [shape: f32[1,128], index: 6, kind: input, shape index: {}]   ;;  %s4745_s7 = inlined_call_operand.vmem [shape: bf16[4,512], index: 7, kind: input, shape index: {}]   ;;  %s4746_s8 = inlined_call_operand.hbm [shape: f32[1,4,128], index: 8, kind: output, shape index: {}]  }
   0x1   :  { %v3679_v0 = vld [vmem:[%s4739_s1] sm:$0xff]   ;;  %611 = vmatprep.subr.bf16.mxu0 %v3784_v1  ;;  %3476 = vmatprep.subr.bf16.mxu1 %v3784_v1  ;;  %v3680_v2 = vld [vmem:[%s4739_s1 + $0x8] sm:$0xff]   ;;  %v3681_v3 = vld [vmem:[%s4739_s1 + $0x10] sm:$0xff]  }
   0x2   :  { %612 = vmatpush1.bf16.msra.mxu0 %v3679_v0  ;;  %3492 = vmatpush1.bf16.msra.mxu1 %v3679_v0  ;;  %v3682_v4 = vld [vmem:[%s4739_s1 + $0x18] sm:$0xff]   ;;  %v3683_v5 = vld [vmem:[%s4739_s1 + $0x20] sm:$0xff]   ;;  %v3862_v6 = vld [vmem:[%s4738_s0 + $0x8] sm:$0xff] }
   0x3   :  { %613 = vmatprep.subr.bf16.mxu0 %v3784_v1  ;;  %3477 = vmatprep.subr.bf16.mxu1 %v3784_v1  ;;  %v228_v7 = vunpack.c.l.s8.bf16 %v3862_v6  ;;  %v3684_v8 = vld [vmem:[%s4739_s1 + $0x28] sm:$0xff]   ;;  %v3685_v9 = vld [vmem:[%s4739_s1 + $0x30] sm:$0xff]   ;;  %v3686_v10 = vld [vmem:[%s4739_s1 + $0x38] sm:$0xff]   ;;  %v232_v22 = vunpack.c.h.s8.bf16 %v3862_v6 }
   0x4   :  { %3677 = vset.pattern.permute.xlu0 %v3784_v1  ;;  %3678 = vset.pattern.permute.xlu1 %v3784_v1  ;;  %v3687_v11 = vld [vmem:[%s4739_s1 + $0x40] sm:$0xff]   ;;  %v3688_v12 = vld [vmem:[%s4739_s1 + $0x48] sm:$0xff]   ;;  %v3689_v13 = vld [vmem:[%s4739_s1 + $0x50] sm:$0xff]  }
   0x5   :  { %643 = vmatprep.mubr.bf16.mxu0 %v228_v7  ;;  %v3690_v14 = vld [vmem:[%s4739_s1 + $0x58] sm:$0xff]   ;;  %v3691_v15 = vld [vmem:[%s4739_s1 + $0x60] sm:$0xff]   ;;  %v3692_v16 = vld [vmem:[%s4739_s1 + $0x68] sm:$0xff]  }
   0x6   :  { %614 = vmatpush1.bf16.msra.mxu0 %v3680_v2  ;;  %3493 = vmatpush1.bf16.msra.mxu1 %v3680_v2  ;;  %v3693_v17 = vld [vmem:[%s4739_s1 + $0x70] sm:$0xff]   ;;  %v3694_v18 = vld [vmem:[%s4739_s1 + $0x78] sm:$0xff]   ;;  %v163_v19 = vld [vmem:[%s4738_s0] sm:$0xff] }
   0x7   :  { %615 = vmatprep.subr.bf16.mxu0 %v3784_v1  ;;  %3478 = vmatprep.subr.bf16.mxu1 %v3784_v1  ;;  %v3695_v20 = vld [vmem:[%s4739_s1 + $0x80] sm:$0xff]   ;;  %v227_v21 = vunpack.c.l.s8.bf16 %v163_v19  ;;  %v3696_v23 = vld [vmem:[%s4739_s1 + $0x88] sm:$0xff]   ;;  %v231_v25 = vunpack.c.h.s8.bf16 %v163_v19 }
   0x8   :  { %v168_v24 = vld [vmem:[%s4738_s0 + $0x28] sm:$0xff] }
   0xa   :  { %616 = vmatpush1.bf16.msra.mxu0 %v3681_v3  ;;  %3494 = vmatpush1.bf16.msra.mxu1 %v3681_v3 }
   0xb   :  { %617 = vmatprep.subr.bf16.mxu0 %v3784_v1  ;;  %3479 = vmatprep.subr.bf16.mxu1 %v3784_v1 }
   0xe   :  { %618 = vmatpush1.bf16.msra.mxu0 %v3682_v4  ;;  %3495 = vmatpush1.bf16.msra.mxu1 %v3682_v4 }
   0xf   :  { %619 = vmatprep.subr.bf16.mxu0 %v3784_v1  ;;  %3480 = vmatprep.subr.bf16.mxu1 %v3784_v1 }
  0x12   :  { %620 = vmatpush1.bf16.msra.mxu0 %v3683_v5  ;;  %3496 = vmatpush1.bf16.msra.mxu1 %v3683_v5 }
  0x13   :  { %621 = vmatprep.subr.bf16.mxu0 %v3784_v1  ;;  %3481 = vmatprep.subr.bf16.mxu1 %v3784_v1 }
  0x16   :  { %622 = vmatpush1.bf16.msra.mxu0 %v3684_v8  ;;  %3497 = vmatpush1.bf16.msra.mxu1 %v3684_v8 }
  0x17   :  { %623 = vmatprep.subr.bf16.mxu0 %v3784_v1  ;;  %3482 = vmatprep.subr.bf16.mxu1 %v3784_v1 }
  0x1a   :  { %624 = vmatpush1.bf16.msra.mxu0 %v3685_v9  ;;  %3498 = vmatpush1.bf16.msra.mxu1 %v3685_v9 }
  0x1b   :  { %625 = vmatprep.subr.bf16.mxu0 %v3784_v1  ;;  %3483 = vmatprep.subr.bf16.mxu1 %v3784_v1 }
  0x1e   :  { %626 = vmatpush1.bf16.msra.mxu0 %v3686_v10  ;;  %3499 = vmatpush1.bf16.msra.mxu1 %v3686_v10 }
  0x1f   :  { %627 = vmatprep.subr.bf16.mxu0 %v3784_v1  ;;  %3484 = vmatprep.subr.bf16.mxu1 %v3784_v1 }
  0x22   :  { %628 = vmatpush1.bf16.msra.mxu0 %v3687_v11  ;;  %3500 = vmatpush1.bf16.msra.mxu1 %v3687_v11 }
  0x23   :  { %629 = vmatprep.subr.bf16.mxu0 %v3784_v1  ;;  %3485 = vmatprep.subr.bf16.mxu1 %v3784_v1 }
  0x26   :  { %630 = vmatpush1.bf16.msra.mxu0 %v3688_v12  ;;  %3501 = vmatpush1.bf16.msra.mxu1 %v3688_v12 }
  0x27   :  { %631 = vmatprep.subr.bf16.mxu0 %v3784_v1  ;;  %3486 = vmatprep.subr.bf16.mxu1 %v3784_v1 }
  0x2a   :  { %632 = vmatpush1.bf16.msra.mxu0 %v3689_v13  ;;  %3502 = vmatpush1.bf16.msra.mxu1 %v3689_v13 }
  0x2b   :  { %633 = vmatprep.subr.bf16.mxu0 %v3784_v1  ;;  %3487 = vmatprep.subr.bf16.mxu1 %v3784_v1 }
  0x2e   :  { %634 = vmatpush1.bf16.msra.mxu0 %v3690_v14  ;;  %3503 = vmatpush1.bf16.msra.mxu1 %v3690_v14 }
  0x2f   :  { %635 = vmatprep.subr.bf16.mxu0 %v3784_v1  ;;  %3488 = vmatprep.subr.bf16.mxu1 %v3784_v1 }
  0x32   :  { %636 = vmatpush1.bf16.msra.mxu0 %v3691_v15  ;;  %3504 = vmatpush1.bf16.msra.mxu1 %v3691_v15 }
  0x33   :  { %637 = vmatprep.subr.bf16.mxu0 %v3784_v1  ;;  %3489 = vmatprep.subr.bf16.mxu1 %v3784_v1 }
  0x36   :  { %638 = vmatpush1.bf16.msra.mxu0 %v3692_v16  ;;  %3505 = vmatpush1.bf16.msra.mxu1 %v3692_v16 }
  0x37   :  { %639 = vmatprep.subr.bf16.mxu0 %v3784_v1  ;;  %3490 = vmatprep.subr.bf16.mxu1 %v3784_v1 }
  0x3a   :  { %640 = vmatpush1.bf16.msra.mxu0 %v3693_v17  ;;  %3506 = vmatpush1.bf16.msra.mxu1 %v3693_v17 }
  0x3b   :  { %641 = vmatprep.subr.bf16.mxu0 %v3784_v1  ;;  %3491 = vmatprep.subr.bf16.mxu1 %v3784_v1 }
  0x3e   :  { %642 = vmatpush1.bf16.msra.mxu0 %v3694_v18  ;;  %3507 = vmatpush1.bf16.msra.mxu1 %v3694_v18 }
  0x3f   :  { %900 = vmatprep.subr.bf16.mxu0 %v3784_v1 }
  0x41   :  { %644 = vmatmul.mubr.bf16.vlgmr.msra.gmra.mrb[0].mxu0 %v227_v21 }
  0x42   :  { %901 = vmatpush1.bf16.msra.mxu0 %v3695_v20  ;;  %651 = vmatprep.mubr.bf16.mxu0 %v232_v22 }
  0x43   :  { %902 = vmatprep.subr.bf16.mxu0 %v3784_v1 }
  0x44   :  { %13 = vsyncpa [#allocation4], 0  ;;  %v236_v26 = vunpack.c.l.s8.bf16 %v168_v24  ;;  %v3697_v27 = vld [vmem:[%s4739_s1 + $0x90] sm:$0xff]   ;;  %v167_v28 = vld [vmem:[%s4738_s0 + $0x20] sm:$0xff]  ;;  %v240_v33 = vunpack.c.h.s8.bf16 %v168_v24 }
  0x45   :  { %v3698_v29 = vld [vmem:[%s4739_s1 + $0x98] sm:$0xff]   ;;  %v3949_v30 = vld [vmem:[%s4738_s0 + $0x128] sm:$0xff]  ;;  %v235_v31 = vunpack.c.l.s8.bf16 %v167_v28  ;;  %v3954_v32 = vld [vmem:[%s4738_s0 + $0x120] sm:$0xff]  ;;  %v239_v41 = vunpack.c.h.s8.bf16 %v167_v28 }
  0x46   :  { %903 = vmatpush1.bf16.msra.mxu0 %v3696_v23  ;;  %v3699_v34 = vld [vmem:[%s4739_s1 + $0xa0] sm:$0xff]   ;;  %v304_v35 = vunpack.c.h.s8.bf16 %v3949_v30  ;;  %v303_v36 = vunpack.c.h.s8.bf16 %v3954_v32  ;;  %v3700_v37 = vld [vmem:[%s4739_s1 + $0xa8] sm:$0xff]   ;;  %v3701_v43 = vld [vmem:[%s4739_s1 + $0xb0] sm:$0xff]  }
  0x47   :  { %904 = vmatprep.subr.bf16.mxu0 %v3784_v1  ;;  %v204_v38 = vld [vmem:[%s4738_s0 + $0x148] sm:$0xff]  ;;  %v203_v44 = vld [vmem:[%s4738_s0 + $0x140] sm:$0xff]  ;;  %v3702_v47 = vld [vmem:[%s4739_s1 + $0xb8] sm:$0xff]  }
  0x48   :  { %795 = vmatprep.mubr.bf16.mxu1 %v304_v35  ;;  %v172_v39 = vld [vmem:[%s4738_s0 + $0x48] sm:$0xff]  ;;  %v308_v40 = vunpack.c.l.s8.bf16 %v204_v38  ;;  %v307_v45 = vunpack.c.l.s8.bf16 %v203_v44  ;;  %v171_v46 = vld [vmem:[%s4738_s0 + $0x40] sm:$0xff]  ;;  %v312_v48 = vunpack.c.h.s8.bf16 %v204_v38  ;;  %v311_v52 = vunpack.c.h.s8.bf16 %v203_v44  ;;  %v3705_v59 = vld [vmem:[%s4739_s1 + $0xd0] sm:$0xff]  }
  0x49   :  { %652 = vmatmul.mubr.bf16.gmra.mrb[4].mxu0 %v231_v25  ;;  %796 = vmatmul.mubr.bf16.vlgmr.msra.gmra.mrb[0].mxu1 %v303_v36  ;;  %v244_v42 = vunpack.c.l.s8.bf16 %v172_v39  ;;  %v243_v49 = vunpack.c.l.s8.bf16 %v171_v46  ;;  %v248_v50 = vunpack.c.h.s8.bf16 %v172_v39  ;;  %v3703_v51 = vld [vmem:[%s4739_s1 + $0xc0] sm:$0xff]   ;;  %v3704_v53 = vld [vmem:[%s4739_s1 + $0xc8] sm:$0xff]   ;;  %v247_v57 = vunpack.c.h.s8.bf16 %v171_v46  ;;  %v3706_v63 = vld [vmem:[%s4739_s1 + $0xd8] sm:$0xff]  }
  0x4a   :  { %659 = vmatprep.mubr.bf16.mxu0 %v236_v26  ;;  %905 = vmatpush1.bf16.msra.mxu0 %v3697_v27  ;;  %v208_v54 = vld [vmem:[%s4738_s0 + $0x168] sm:$0xff]  ;;  %v207_v60 = vld [vmem:[%s4738_s0 + $0x160] sm:$0xff]  ;;  %v1386_v7 = vld [vmem:[%s4741_s3 + $0x10] sm:$0xff] }
  0x4b   :  { %906 = vmatprep.subr.bf16.mxu0 %v3784_v1  ;;  %803 = vmatprep.mubr.bf16.mxu1 %v308_v40  ;;  %v176_v55 = vld [vmem:[%s4738_s0 + $0x68] sm:$0xff]  ;;  %v316_v56 = vunpack.c.l.s8.bf16 %v208_v54  ;;  %v315_v61 = vunpack.c.l.s8.bf16 %v207_v60  ;;  %v175_v62 = vld [vmem:[%s4738_s0 + $0x60] sm:$0xff]  ;;  %v320_v2 = vunpack.c.h.s8.bf16 %v208_v54  ;;  %v319_v6 = vunpack.c.h.s8.bf16 %v207_v60  ;;  %v1387_v13 = vld [vmem:[%s4741_s3 + $0x18] sm:$0xff] }
  0x4c   :  { %v252_v58 = vunpack.c.l.s8.bf16 %v176_v55  ;;  %v1384_v0 = vld [vmem:[%s4741_s3] sm:$0xff]  ;;  %v251_v3 = vunpack.c.l.s8.bf16 %v175_v62  ;;  %v256_v4 = vunpack.c.h.s8.bf16 %v176_v55  ;;  %v1385_v8 = vld [vmem:[%s4741_s3 + $0x8] sm:$0xff]  ;;  %1460 = vperm.xlu1 %3678, %v1386_v7   ;;  %v255_v14 = vunpack.c.h.s8.bf16 %v175_v62  ;;  %v3709_v17 = vld [vmem:[%s4739_s1 + $0xf0] sm:$0xff]  }
  0x4d   :  { %1450 = vperm.xlu0 %3677, %v1384_v0   ;;  %v3707_v5 = vld [vmem:[%s4739_s1 + $0xe0] sm:$0xff]   ;;  %v3708_v9 = vld [vmem:[%s4739_s1 + $0xe8] sm:$0xff]   ;;  %v1390_v21 = vld [vmem:[%s4741_s3 + $0x30] sm:$0xff] }
  0x4e   :  { %907 = vmatpush1.bf16.msra.mxu0 %v3698_v29  ;;  %v212_v10 = vld [vmem:[%s4738_s0 + $0x188] sm:$0xff]  ;;  %v1388_v15 = vld [vmem:[%s4741_s3 + $0x20] sm:$0xff]  ;;  %v3710_v23 = vld [vmem:[%s4739_s1 + $0xf8] sm:$0xff]  }
  0x4f   :  { %908 = vmatprep.subr.bf16.mxu0 %v3784_v1  ;;  %v180_v11 = vld [vmem:[%s4738_s0 + $0x88] sm:$0xff]  ;;  %v324_v12 = vunpack.c.l.s8.bf16 %v212_v10  ;;  %v211_v18 = vld [vmem:[%s4738_s0 + $0x180] sm:$0xff]  ;;  %v328_v24 = vunpack.c.h.s8.bf16 %v212_v10  ;;  %v1391_v25 = vld [vmem:[%s4741_s3 + $0x38] sm:$0xff] }
  0x50   :  { %v260_v16 = vunpack.c.l.s8.bf16 %v180_v11  ;;  %1465 = vperm.xlu1 %3678, %v1387_v13   ;;  %v323_v19 = vunpack.c.l.s8.bf16 %v211_v18  ;;  %v1389_v20 = vld [vmem:[%s4741_s3 + $0x28] sm:$0xff]  ;;  %v179_v22 = vld [vmem:[%s4738_s0 + $0x80] sm:$0xff]  ;;  %v264_v28 = vunpack.c.h.s8.bf16 %v180_v11  ;;  %v327_v29 = vunpack.c.h.s8.bf16 %v211_v18  ;;  %v1395_v36 = vld [vmem:[%s4741_s3 + $0x58] sm:$0xff] }
  0x51   :  { %660 = vmatmul.mubr.bf16.gmra.mrb[8].mxu0 %v235_v31  ;;  %804 = vmatmul.mubr.bf16.gmra.mrb[4].mxu1 %v307_v45  ;;  %v259_v26 = vunpack.c.l.s8.bf16 %v179_v22  ;;  %v1392_v27 = vld [vmem:[%s4741_s3 + $0x40] sm:$0xff]  ;;  %v1394_v31 = vld [vmem:[%s4741_s3 + $0x50] sm:$0xff]  ;;  %v1399_v46 = vld [vmem:[%s4741_s3 + $0x78] sm:$0xff] }
  0x52   :  { %667 = vmatprep.mubr.bf16.mxu0 %v240_v33  ;;  %909 = vmatpush1.bf16.msra.mxu0 %v3699_v34  ;;  %v216_v33 = vld [vmem:[%s4738_s0 + $0x1a8] sm:$0xff]  ;;  %v1396_v38 = vld [vmem:[%s4741_s3 + $0x60] sm:$0xff]  ;;  %v1406_v0 = vld [vmem:[%s4741_s3 + $0xb0] sm:$0xff] }
  0x53   :  { %910 = vmatprep.subr.bf16.mxu0 %v3784_v1  ;;  %811 = vmatprep.mubr.bf16.mxu1 %v312_v48  ;;  %v184_v34 = vld [vmem:[%s4738_s0 + $0xa8] sm:$0xff]  ;;  %v332_v35 = vunpack.c.l.s8.bf16 %v216_v33  ;;  %v215_v40 = vld [vmem:[%s4738_s0 + $0x1a0] sm:$0xff]  ;;  %v336_v45 = vunpack.c.h.s8.bf16 %v216_v33  ;;  %v3713_v10 = vld [vmem:[%s4743_s5 + $0x10] sm:$0xff]  }
  0x54   :  { %1455 = vperm.xlu0 %3677, %v1385_v8   ;;  %1475 = vperm.xlu1 %3678, %v1389_v20   ;;  %v268_v39 = vunpack.c.l.s8.bf16 %v184_v34  ;;  %v183_v44 = vld [vmem:[%s4738_s0 + $0xa0] sm:$0xff]  ;;  %v188_v54 = vld [vmem:[%s4738_s0 + $0xc8] sm:$0xff]  ;;  %v3714_v13 = vld [vmem:[%s4743_s5 + $0x18] sm:$0xff]  }
  0x55   :  { %v1400_v48 = vld [vmem:[%s4741_s3 + $0x80] sm:$0xff]  ;;  %v280_v8 = vunpack.c.h.s8.bf16 %v188_v54  ;;  %v1409_v11 = vld [vmem:[%s4741_s3 + $0xc8] sm:$0xff] }
  0x56   :  { %911 = vmatpush1.bf16.msra.mxu0 %v3700_v37  ;;  %v263_v37 = vunpack.c.h.s8.bf16 %v179_v22  ;;  %v219_v60 = vld [vmem:[%s4738_s0 + $0x1c0] sm:$0xff] }
  0x57   :  { %912 = vmatprep.subr.bf16.mxu0 %v3784_v1  ;;  %v3711_v62 = vld [vmem:[%s4743_s5] sm:$0xff]  }
  0x58   :  { %1470 = vperm.xlu0 %3677, %v1388_v15   ;;  %1485 = vperm.xlu1 %3678, %v1391_v25   ;;  %v1408_v7 = vld [vmem:[%s4741_s3 + $0xc0] sm:$0xff]  ;;  %v224_v15 = vld [vmem:[%s4738_s0 + $0x1e8] sm:$0xff]  ;;  %v1414_v25 = vld [vmem:[%s4741_s3 + $0xf0] sm:$0xff] }
  0x59   :  { %668 = vmatmul.mubr.bf16.gmra.mrb[12].mxu0 %v239_v41  ;;  %812 = vmatmul.mubr.bf16.gmra.mrb[8].mxu1 %v311_v52  ;;  %v331_v41 = vunpack.c.l.s8.bf16 %v215_v40  ;;  %v1402_v52 = vld [vmem:[%s4741_s3 + $0x90] sm:$0xff] }
  0x5a   :  { %675 = vmatprep.mubr.bf16.mxu0 %v244_v42  ;;  %913 = vmatpush1.bf16.msra.mxu0 %v3701_v43  ;;  %v1397_v42 = vld [vmem:[%s4741_s3 + $0x68] sm:$0xff]  ;;  %v1398_v43 = vld [vmem:[%s4741_s3 + $0x70] sm:$0xff] }
  0x5b   :  { %914 = vmatprep.subr.bf16.mxu0 %v3784_v1  ;;  %819 = vmatprep.mubr.bf16.mxu1 %v316_v56  ;;  %v1403_v56 = vld [vmem:[%s4741_s3 + $0x98] sm:$0xff] }
  0x5c   :  { %1480 = vperm.xlu0 %3677, %v1390_v21   ;;  %3316 = vmatprep.subr.bf16.mxu1 %v3711_v62  ;;  %v223_v21 = vld [vmem:[%s4738_s0 + $0x1e0] sm:$0xff] }
  0x5d   :  { %3317 = vmatpush3.bf16.msra.mxu1 %v3711_v62  ;;  %v347_v22 = vunpack.c.l.s8.bf16 %v223_v21  ;;  %v3724_v62 = vld [vmem:[%s4740_s2 + $0x28] sm:$0xff]  }
  0x5e   :  { %915 = vmatpush1.bf16.msra.mxu0 %v3702_v47  ;;  %v267_v47 = vunpack.c.l.s8.bf16 %v183_v44 }
  0x5f   :  { %916 = vmatprep.subr.bf16.mxu0 %v3784_v1 }
  0x60   :  { %1490 = vperm.xlu0 %3677, %v1392_v27   ;;  %v3716_v27 = vld [vmem:[%s4743_s5 + $0x28] sm:$0xff]  }
  0x61   :  { %676 = vmatmul.mubr.bf16.gmra.mrb[16].mxu0 %v243_v49  ;;  %820 = vmatmul.mubr.bf16.gmra.mrb[12].mxu1 %v315_v61  ;;  %v272_v49 = vunpack.c.h.s8.bf16 %v184_v34  ;;  %v339_v61 = vunpack.c.l.s8.bf16 %v219_v60  ;;  %v351_v34 = vunpack.c.h.s8.bf16 %v223_v21  ;;  %v1440_v21 = vld [vmem:[%s4741_s3 + $0x1c0] sm:$0xff] }
  0x62   :  { %683 = vmatprep.mubr.bf16.mxu0 %v248_v50  ;;  %917 = vmatpush1.bf16.msra.mxu0 %v3703_v51  ;;  %v335_v50 = vunpack.c.h.s8.bf16 %v215_v40  ;;  %v1401_v51 = vld [vmem:[%s4741_s3 + $0x88] sm:$0xff]  ;;  %v1419_v40 = vld [vmem:[%s4741_s3 + $0x118] sm:$0xff] }
  0x63   :  { %918 = vmatprep.subr.bf16.mxu0 %v3784_v1  ;;  %827 = vmatprep.mubr.bf16.mxu1 %v320_v2  ;;  %v187_v2 = vld [vmem:[%s4738_s0 + $0xc0] sm:$0xff] }
  0x64   :  { %1500 = vperm.xlu0 %3677, %v1394_v31   ;;  %v279_v18 = vunpack.c.h.s8.bf16 %v187_v2  ;;  %v1416_v31 = vld [vmem:[%s4741_s3 + $0x100] sm:$0xff] }
  0x66   :  { %919 = vmatpush1.bf16.msra.mxu0 %v3704_v53  ;;  %v220_v53 = vld [vmem:[%s4738_s0 + $0x1c8] sm:$0xff] }
  0x67   :  { %920 = vmatprep.subr.bf16.mxu0 %v3784_v1  ;;  %v340_v55 = vunpack.c.l.s8.bf16 %v220_v53 }
  0x68   :  { %1510 = vperm.xlu0 %3677, %v1396_v38   ;;  %v3718_v38 = vld [vmem:[%s4743_s5 + $0x38] sm:$0xff]  }
  0x69   :  { %684 = vmatmul.mubr.bf16.gmra.mrb[20].mxu0 %v247_v57  ;;  %828 = vmatmul.mubr.bf16.gmra.mrb[16].mxu1 %v319_v6  ;;  %v271_v57 = vunpack.c.h.s8.bf16 %v183_v44  ;;  %v275_v6 = vunpack.c.l.s8.bf16 %v187_v2  ;;  %v3719_v44 = vld [vmem:[%s4740_s2] sm:$0xff]   ;;  %v1431_v2 = vld [vmem:[%s4741_s3 + $0x178] sm:$0xff] }
  0x6a   :  { %691 = vmatprep.mubr.bf16.mxu0 %v252_v58  ;;  %921 = vmatpush1.bf16.msra.mxu0 %v3705_v59  ;;  %v1404_v58 = vld [vmem:[%s4741_s3 + $0xa0] sm:$0xff]  ;;  %v276_v59 = vunpack.c.l.s8.bf16 %v188_v54  ;;  %v3722_v54 = vld [vmem:[%s4740_s2 + $0x18] sm:$0xff]  }
  0x6b   :  { %922 = vmatprep.subr.bf16.mxu0 %v3784_v1  ;;  %835 = vmatprep.mubr.bf16.mxu1 %v324_v12  ;;  %v1410_v12 = vld [vmem:[%s4741_s3 + $0xd0] sm:$0xff] }
  0x6c   :  { %1520 = vperm.xlu0 %3677, %v1398_v43  }
  0x6e   :  { %923 = vmatpush1.bf16.msra.mxu0 %v3706_v63  ;;  %v1405_v63 = vld [vmem:[%s4741_s3 + $0xa8] sm:$0xff] }
  0x6f   :  { %924 = vmatprep.subr.bf16.mxu0 %v3784_v1 }
  0x70   :  { %1530 = vperm.xlu0 %3677, %v1400_v48   ;;  %v195_v48 = vld [vmem:[%s4738_s0 + $0x100] sm:$0xff] }
  0x71   :  { %692 = vmatmul.mubr.bf16.gmra.mrb[24].mxu0 %v251_v3  ;;  %836 = vmatmul.mubr.bf16.gmra.mrb[20].mxu1 %v323_v19  ;;  %v3712_v3 = vld [vmem:[%s4743_s5 + $0x8] sm:$0xff]   ;;  %v1412_v19 = vld [vmem:[%s4741_s3 + $0xe0] sm:$0xff] }
  0x72   :  { %699 = vmatprep.mubr.bf16.mxu0 %v256_v4  ;;  %925 = vmatpush1.bf16.msra.mxu0 %v3707_v5  ;;  %v344_v4 = vunpack.c.h.s8.bf16 %v220_v53  ;;  %v1407_v5 = vld [vmem:[%s4741_s3 + $0xb8] sm:$0xff]  ;;  %v3721_v53 = vld [vmem:[%s4740_s2 + $0x10] sm:$0xff]  }
  0x73   :  { %926 = vmatprep.subr.bf16.mxu0 %v3784_v1  ;;  %843 = vmatprep.mubr.bf16.mxu1 %v328_v24  ;;  %v1413_v24 = vld [vmem:[%s4741_s3 + $0xe8] sm:$0xff] }
  0x74   :  { %1540 = vperm.xlu0 %3677, %v1402_v52   ;;  %3318 = vmatprep.subr.bf16.mxu1 %v3712_v3 }
  0x75   :  { %3319 = vmatpush3.bf16.msra.mxu1 %v3712_v3  ;;  %v299_v3 = vunpack.c.l.s8.bf16 %v3954_v32  ;;  %v1433_v32 = vld [vmem:[%s4741_s3 + $0x188] sm:$0xff] }
  0x76   :  { %927 = vmatpush1.bf16.msra.mxu0 %v3708_v9  ;;  %v343_v9 = vunpack.c.h.s8.bf16 %v219_v60  ;;  %3320 = vmatprep.subr.bf16.mxu1 %v3713_v10  ;;  %v300_v60 = vunpack.c.l.s8.bf16 %v3949_v30  ;;  %v1430_v30 = vld [vmem:[%s4741_s3 + $0x170] sm:$0xff] }
  0x77   :  { %928 = vmatprep.subr.bf16.mxu0 %v3784_v1 }
  0x78   :  { %1550 = vperm.xlu0 %3677, %v1404_v58   ;;  %v295_v58 = vunpack.c.h.s8.bf16 %v195_v48 }
  0x79   :  { %700 = vmatmul.mubr.bf16.gmra.mrb[28].mxu0 %v255_v14  ;;  %844 = vmatmul.mubr.bf16.gmra.mrb[24].mxu1 %v327_v29  ;;  %v192_v14 = vld [vmem:[%s4738_s0 + $0xe8] sm:$0xff]  ;;  %v1415_v29 = vld [vmem:[%s4741_s3 + $0xf8] sm:$0xff] }
  0x7a   :  { %707 = vmatprep.mubr.bf16.mxu0 %v260_v16  ;;  %929 = vmatpush1.bf16.msra.mxu0 %v3709_v17  ;;  %v1411_v16 = vld [vmem:[%s4741_s3 + $0xd8] sm:$0xff]  ;;  %v348_v17 = vunpack.c.l.s8.bf16 %v224_v15  ;;  %v284_v20 = vunpack.c.l.s8.bf16 %v192_v14  ;;  %v288_v33 = vunpack.c.h.s8.bf16 %v192_v14  ;;  %v3727_v14 = vld [vmem:[%s4740_s2 + $0x40] sm:$0xff]  }
  0x7b   :  { %930 = vmatprep.subr.bf16.mxu0 %v3784_v1  ;;  %v1393_v1 = vld [vmem:[%s4741_s3 + $0x48] sm:$0xff]  ;;  %851 = vmatprep.mubr.bf16.mxu1 %v332_v35  ;;  %v3717_v35 = vld [vmem:[%s4743_s5 + $0x30] sm:$0xff]  }
  0x7c   :  { %1495 = vperm.xlu1 %3678, %v1393_v1   ;;  %1560 = vperm.xlu0 %3677, %v1406_v0   ;;  %v166_v0 = vld [vmem:[%s4738_s0 + $0x18] sm:$0xff] }
  0x7d   :  { %3321 = vmatpush3.bf16.msra.mxu1 %v3713_v10  ;;  %v1435_v10 = vld [vmem:[%s4741_s3 + $0x198] sm:$0xff] }
  0x7e   :  { %931 = vmatpush1.bf16.msra.mxu0 %v3710_v23  ;;  %3322 = vmatprep.subr.bf16.mxu1 %v3714_v13  ;;  %v3715_v23 = vld [vmem:[%s4743_s5 + $0x20] sm:$0xff]  }
  0x80   :  { %1505 = vperm.xlu1 %3678, %v1395_v36   ;;  %1570 = vperm.xlu0 %3677, %v1408_v7   ;;  %v1417_v36 = vld [vmem:[%s4741_s3 + $0x108] sm:$0xff]  ;;  %v3726_v7 = vld [vmem:[%s4740_s2 + $0x38] sm:$0xff]  }
  0x81   :  { %708 = vmatmul.mubr.bf16.gmra.mrb[32].mxu0 %v259_v26  ;;  %852 = vmatmul.mubr.bf16.gmra.mrb[28].mxu1 %v331_v41  ;;  %v191_v26 = vld [vmem:[%s4738_s0 + $0xe0] sm:$0xff] }
  0x82   :  { %715 = vmatprep.mubr.bf16.mxu0 %v264_v28  ;;  %859 = vmatprep.mubr.bf16.mxu1 %v336_v45  ;;  %v352_v28 = vunpack.c.h.s8.bf16 %v224_v15  ;;  %v283_v1 = vunpack.c.l.s8.bf16 %v191_v26  ;;  %v287_v41 = vunpack.c.h.s8.bf16 %v191_v26  ;;  %v3720_v45 = vld [vmem:[%s4740_s2 + $0x8] sm:$0xff]   ;;  %v1442_v26 = vld [vmem:[%s4741_s3 + $0x1d0] sm:$0xff] }
  0x83   :  { %3323 = vmatpush3.bf16.msra.mxu1 %v3714_v13  ;;  %v234_v13 = vunpack.c.h.s8.bf16 %v166_v0  ;;  %v3728_v15 = vld [vmem:[%s4740_s2 + $0x48] sm:$0xff]  }
  0x84   :  { %1515 = vperm.xlu1 %3678, %v1397_v42   ;;  %1580 = vperm.xlu0 %3677, %v1410_v12   ;;  %v1420_v42 = vld [vmem:[%s4741_s3 + $0x120] sm:$0xff] }
  0x85   :  { %3324 = vmatprep.subr.bf16.mxu1 %v3715_v23  ;;  %v1436_v12 = vld [vmem:[%s4741_s3 + $0x1a0] sm:$0xff] }
  0x87   :  { %3325 = vmatpush3.bf16.msra.mxu1 %v3715_v23  ;;  %v3729_v23 = vld [vmem:[%s4740_s2 + $0x50] sm:$0xff]  }
  0x88   :  { %1525 = vperm.xlu1 %3678, %v1399_v46   ;;  %1590 = vperm.xlu0 %3677, %v1412_v19   ;;  %v1421_v46 = vld [vmem:[%s4741_s3 + $0x128] sm:$0xff]  ;;  %v1439_v19 = vld [vmem:[%s4741_s3 + $0x1b8] sm:$0xff] }
  0x89   :  { %716 = vmatmul.mubr.bf16.gmra.mrb[36].mxu0 %v263_v37  ;;  %860 = vmatmul.mubr.bf16.gmra.mrb[32].mxu1 %v335_v50  ;;  %v1418_v37 = vld [vmem:[%s4741_s3 + $0x110] sm:$0xff]  ;;  %v291_v50 = vunpack.c.l.s8.bf16 %v195_v48  ;;  %v178_v48 = vld [vmem:[%s4738_s0 + $0x78] sm:$0xff] }
  0x8a   :  { %723 = vmatprep.mubr.bf16.mxu0 %v268_v39  ;;  %867 = vmatprep.mubr.bf16.mxu1 %v340_v55  ;;  %v196_v39 = vld [vmem:[%s4738_s0 + $0x108] sm:$0xff] }
  0x8b   :  { %3326 = vmatprep.subr.bf16.mxu1 %v3716_v27  ;;  %v292_v43 = vunpack.c.l.s8.bf16 %v196_v39  ;;  %v296_v52 = vunpack.c.h.s8.bf16 %v196_v39  ;;  %v1425_v55 = vld [vmem:[%s4741_s3 + $0x148] sm:$0xff] }
  0x8c   :  { %1535 = vperm.xlu1 %3678, %v1401_v51   ;;  %1600 = vperm.xlu0 %3677, %v1414_v25   ;;  %v1424_v51 = vld [vmem:[%s4741_s3 + $0x140] sm:$0xff]  ;;  %v1441_v25 = vld [vmem:[%s4741_s3 + $0x1c8] sm:$0xff] }
  0x8d   :  { %3327 = vmatpush3.bf16.msra.mxu1 %v3716_v27  ;;  %v169_v27 = vld [vmem:[%s4738_s0 + $0x30] sm:$0xff] }
  0x8e   :  { %3328 = vmatprep.subr.bf16.mxu1 %v3717_v35  ;;  %v241_v39 = vunpack.c.h.s8.bf16 %v169_v27 }
  0x90   :  { %1545 = vperm.xlu1 %3678, %v1403_v56   ;;  %1610 = vperm.xlu0 %3677, %v1416_v31   ;;  %v1426_v56 = vld [vmem:[%s4741_s3 + $0x150] sm:$0xff] }
  0x91   :  { %724 = vmatmul.mubr.bf16.gmra.mrb[40].mxu0 %v267_v47  ;;  %868 = vmatmul.mubr.bf16.gmra.mrb[36].mxu1 %v339_v61  ;;  %v1422_v47 = vld [vmem:[%s4741_s3 + $0x130] sm:$0xff]  ;;  %v3723_v61 = vld [vmem:[%s4740_s2 + $0x20] sm:$0xff]  }
  0x92   :  { %731 = vmatprep.mubr.bf16.mxu0 %v272_v49  ;;  %875 = vmatprep.mubr.bf16.mxu1 %v344_v4  ;;  %v1423_v49 = vld [vmem:[%s4741_s3 + $0x138] sm:$0xff]  ;;  %v1432_v4 = vld [vmem:[%s4741_s3 + $0x180] sm:$0xff] }
  0x93   :  { %3329 = vmatpush3.bf16.msra.mxu1 %v3717_v35  ;;  %v1445_v35 = vld [vmem:[%s4741_s3 + $0x1e8] sm:$0xff] }
  0x94   :  { %1555 = vperm.xlu1 %3678, %v1405_v63   ;;  %1620 = vperm.xlu0 %3677, %v1418_v37   ;;  %v1429_v63 = vld [vmem:[%s4741_s3 + $0x168] sm:$0xff]  ;;  %v174_v37 = vld [vmem:[%s4738_s0 + $0x58] sm:$0xff] }
  0x95   :  { %3330 = vmatprep.subr.bf16.mxu1 %v3718_v38 }
  0x97   :  { %3331 = vmatpush3.bf16.msra.mxu1 %v3718_v38  ;;  %v1447_v38 = vld [vmem:[%s4741_s3 + $0x1f8] sm:$0xff] }
  0x98   :  { %1565 = vperm.xlu1 %3678, %v1407_v5   ;;  %1630 = vperm.xlu0 %3677, %v1420_v42   ;;  %v230_v5 = vunpack.c.l.s8.bf16 %v166_v0  ;;  %v3734_v42 = vld [vmem:[%s4740_s2 + $0x78] sm:$0xff]  }
  0x99   :  { %732 = vmatmul.mubr.bf16.gmra.mrb[44].mxu0 %v271_v57  ;;  %876 = vmatmul.mubr.bf16.gmra.mrb[40].mxu1 %v343_v9  ;;  %v1427_v57 = vld [vmem:[%s4741_s3 + $0x158] sm:$0xff]  ;;  %v165_v9 = vld [vmem:[%s4738_s0 + $0x10] sm:$0xff] }
  0x9a   :  { %739 = vmatprep.mubr.bf16.mxu0 %v276_v59  ;;  %883 = vmatprep.mubr.bf16.mxu1 %v348_v17  ;;  %v1428_v59 = vld [vmem:[%s4741_s3 + $0x160] sm:$0xff]  ;;  %v1438_v17 = vld [vmem:[%s4741_s3 + $0x1b0] sm:$0xff] }
  0x9c   :  { %1575 = vperm.xlu1 %3678, %v1409_v11   ;;  %1640 = vperm.xlu0 %3677, %v1422_v47   ;;  %v229_v11 = vunpack.c.l.s8.bf16 %v165_v9  ;;  %v3736_v47 = vld [vmem:[%s4740_s2 + $0x88] sm:$0xff]  }
  0xa0   :  { %1585 = vperm.xlu1 %3678, %v1411_v16   ;;  %1650 = vperm.xlu0 %3677, %v1424_v51   ;;  %v1437_v16 = vld [vmem:[%s4741_s3 + $0x1a8] sm:$0xff]  ;;  %v3737_v51 = vld [vmem:[%s4740_s2 + $0x90] sm:$0xff]  }
  0xa1   :  { %740 = vmatmul.mubr.bf16.gmra.mrb[48].mxu0 %v275_v6  ;;  %884 = vmatmul.mubr.bf16.gmra.mrb[44].mxu1 %v347_v22  ;;  %v3725_v6 = vld [vmem:[%s4740_s2 + $0x30] sm:$0xff]  }
  0xa2   :  { %747 = vmatprep.mubr.bf16.mxu0 %v280_v8  ;;  %891 = vmatprep.mubr.bf16.mxu1 %v352_v28  ;;  %v1434_v8 = vld [vmem:[%s4741_s3 + $0x190] sm:$0xff]  ;;  %v1443_v28 = vld [vmem:[%s4741_s3 + $0x1d8] sm:$0xff] }
  0xa4   :  { %1595 = vperm.xlu1 %3678, %v1413_v24   ;;  %1660 = vperm.xlu0 %3677, %v1426_v56   ;;  %v3730_v24 = vld [vmem:[%s4740_s2 + $0x58] sm:$0xff]   ;;  %v3739_v56 = vld [vmem:[%s4740_s2 + $0xa0] sm:$0xff]  }
  0xa8   :  { %1605 = vperm.xlu1 %3678, %v1415_v29   ;;  %1670 = vperm.xlu0 %3677, %v1428_v59   ;;  %v237_v29 = vunpack.c.l.s8.bf16 %v169_v27  ;;  %v3758_v27 = vld [vmem:[%s4742_s4 + $0x38] sm:$0xff]  }
  0xa9   :  { %748 = vmatmul.mubr.bf16.gmra.mrb[52].mxu0 %v279_v18  ;;  %892 = vmatmul.mubr.bf16.gmra.mrb[48].mxu1 %v351_v34  ;;  %v170_v18 = vld [vmem:[%s4738_s0 + $0x38] sm:$0xff]  ;;  %v3732_v34 = vld [vmem:[%s4740_s2 + $0x68] sm:$0xff]  }
  0xaa   :  { %755 = vmatprep.mubr.bf16.mxu0 %v284_v20  ;;  %3332 = vmatprep.mubr.bf16.mxu1 %v3719_v44  ;;  %v233_v20 = vunpack.c.h.s8.bf16 %v165_v9  ;;  %v238_v22 = vunpack.c.l.s8.bf16 %v170_v18  ;;  %v242_v31 = vunpack.c.h.s8.bf16 %v170_v18  ;;  %v3748_v9 = vld [vmem:[%s4740_s2 + $0xd8] sm:$0xff]  }
  0xab   :  { %v190_v18 = vld [vmem:[%s4738_s0 + $0xd8] sm:$0xff] }
  0xac   :  { %1615 = vperm.xlu1 %3678, %v1417_v36   ;;  %1680 = vperm.xlu0 %3677, %v1430_v30   ;;  %v1446_v36 = vld [vmem:[%s4741_s3 + $0x1f0] sm:$0xff] }
  0xb0   :  { %1625 = vperm.xlu1 %3678, %v1419_v40   ;;  %1690 = vperm.xlu0 %3677, %v1432_v4   ;;  %v246_v40 = vunpack.c.l.s8.bf16 %v174_v37  ;;  %v3745_v4 = vld [vmem:[%s4742_s4] sm:$0xff]  }
  0xb1   :  { %756 = vmatmul.mubr.bf16.gmra.mrb[56].mxu0 %v283_v1  ;;  %3333 = vmatmul.mubr.bf16.vlgmr.msra.gmra.mrb[52].mxu1 %v3720_v45  ;;  %v1444_v1 = vld [vmem:[%s4741_s3 + $0x1e0] sm:$0xff]  ;;  %v250_v45 = vunpack.c.h.s8.bf16 %v174_v37 }
  0xb2   :  { %763 = vmatprep.mubr.bf16.mxu0 %v288_v33  ;;  %3336 = vmatprep.mubr.bf16.mxu1 %v3721_v53  ;;  %v3731_v33 = vld [vmem:[%s4740_s2 + $0x60] sm:$0xff]   ;;  %v177_v53 = vld [vmem:[%s4738_s0 + $0x70] sm:$0xff] }
  0xb3   :  { %v257_v59 = vunpack.c.h.s8.bf16 %v177_v53  ;;  %3396 = vmatprep.subr.bf16.mxu1 %v3745_v4 }
  0xb4   :  { %1635 = vperm.xlu1 %3678, %v1421_v46   ;;  %1700 = vperm.xlu0 %3677, %v1434_v8   ;;  %v3735_v46 = vld [vmem:[%s4740_s2 + $0x80] sm:$0xff]   ;;  %v3747_v8 = vld [vmem:[%s4740_s2 + $0xd0] sm:$0xff]  }
  0xb5   :  { %3397 = vmatpush3.bf16.msra.mxu1 %v3745_v4 }
  0xb8   :  { %1645 = vperm.xlu1 %3678, %v1423_v49   ;;  %1710 = vperm.xlu0 %3677, %v1436_v12   ;;  %v3750_v12 = vld [vmem:[%s4742_s4 + $0x18] sm:$0xff]  }
  0xb9   :  { %764 = vmatmul.mubr.bf16.gmra.mrb[60].mxu0 %v287_v41  ;;  %3337 = vmatmul.mubr.bf16.gmra.mrb[56].mxu1 %v3722_v54  ;;  %v3733_v41 = vld [vmem:[%s4740_s2 + $0x70] sm:$0xff]   ;;  %v253_v54 = vunpack.c.l.s8.bf16 %v177_v53 }
  0xba   :  { %771 = vmatprep.mubr.bf16.mxu0 %v292_v43  ;;  %3340 = vmatprep.mubr.bf16.mxu1 %v3723_v61  ;;  %v173_v43 = vld [vmem:[%s4738_s0 + $0x50] sm:$0xff] }
  0xbb   :  { %v245_v44 = vunpack.c.l.s8.bf16 %v173_v43  ;;  %v249_v49 = vunpack.c.h.s8.bf16 %v173_v43  ;;  %v3741_v61 = vld [vmem:[%s4740_s2 + $0xb0] sm:$0xff]  }
  0xbc   :  { %1655 = vperm.xlu1 %3678, %v1425_v55   ;;  %1720 = vperm.xlu0 %3677, %v1438_v17   ;;  %v258_v55 = vunpack.c.h.s8.bf16 %v178_v48  ;;  %v3753_v17 = vld [vmem:[%s4742_s4 + $0x20] sm:$0xff]  }
  0xc0   :  { %1665 = vperm.xlu1 %3678, %v1427_v57   ;;  %1730 = vperm.xlu0 %3677, %v1440_v21   ;;  %v3740_v57 = vld [vmem:[%s4740_s2 + $0xa8] sm:$0xff]   ;;  %v278_v21 = vunpack.c.l.s8.bf16 %v190_v18 }
  0xc1   :  { %772 = vmatmul.mubr.bf16.gmra.mrb[64].mxu0 %v291_v50  ;;  %3341 = vmatmul.mubr.bf16.gmra.mrb[60].mxu1 %v3724_v62  ;;  %v254_v50 = vunpack.c.l.s8.bf16 %v178_v48  ;;  %v3742_v62 = vld [vmem:[%s4740_s2 + $0xb8] sm:$0xff]   ;;  %v201_v48 = vld [vmem:[%s4738_s0 + $0x130] sm:$0xff] }
  0xc2   :  { %779 = vmatprep.mubr.bf16.mxu0 %v296_v52  ;;  %3344 = vmatprep.mubr.bf16.mxu1 %v3725_v6  ;;  %v3738_v52 = vld [vmem:[%s4740_s2 + $0x98] sm:$0xff]  }
  0xc3   :  { %v186_v6 = vld [vmem:[%s4738_s0 + $0xb8] sm:$0xff] }
  0xc4   :  { %1675 = vperm.xlu1 %3678, %v1429_v63   ;;  %1740 = vperm.xlu0 %3677, %v1442_v26   ;;  %v181_v63 = vld [vmem:[%s4738_s0 + $0x90] sm:$0xff] }
  0xc5   :  { %v261_v30 = vunpack.c.l.s8.bf16 %v181_v63 }
  0xc8   :  { %1685 = vperm.xlu1 %3678, %v1431_v2   ;;  %1750 = vperm.xlu0 %3677, %v1444_v1   ;;  %v3743_v2 = vld [vmem:[%s4740_s2 + $0xc0] sm:$0xff]  }
  0xc9   :  { %780 = vmatmul.mubr.bf16.gmra.mrb[68].mxu0 %v295_v58  ;;  %3345 = vmatmul.mubr.bf16.gmra.mrb[64].mxu1 %v3726_v7  ;;  %v182_v58 = vld [vmem:[%s4738_s0 + $0x98] sm:$0xff]  ;;  %v265_v7 = vunpack.c.h.s8.bf16 %v181_v63 }
  0xca   :  { %787 = vmatprep.mubr.bf16.mxu0 %v300_v60  ;;  %3348 = vmatprep.mubr.bf16.mxu1 %v3727_v14  ;;  %v262_v60 = vunpack.c.l.s8.bf16 %v182_v58  ;;  %v266_v0 = vunpack.c.h.s8.bf16 %v182_v58  ;;  %v274_v14 = vunpack.c.h.s8.bf16 %v186_v6 }
  0xcc   :  { %1695 = vperm.xlu1 %3678, %v1433_v32   ;;  %1760 = vperm.xlu0 %3677, %v1446_v36   ;;  %v270_v32 = vunpack.c.l.s8.bf16 %v186_v6  ;;  %v198_v36 = vld [vmem:[%s4738_s0 + $0x118] sm:$0xff] }
  0xcd   :  { %v210_v6 = vld [vmem:[%s4738_s0 + $0x178] sm:$0xff] }
  0xd0   :  { %1705 = vperm.xlu1 %3678, %v1435_v10   ;;  %v3749_v10 = vld [vmem:[%s4742_s4 + $0x10] sm:$0xff]  }
  0xd1   :  { %788 = vmatmul.mubr.bf16.gmra.mrb[72].mxu0 %v299_v3  ;;  %3349 = vmatmul.mubr.bf16.gmra.mrb[68].mxu1 %v3728_v15  ;;  %v3744_v3 = vld [vmem:[%s4740_s2 + $0xc8] sm:$0xff]   ;;  %v3751_v15 = vld [vmem:[%s4740_s2 + $0xe0] sm:$0xff]  }
  0xd2   :  { %932 = vmatprep.mubr.bf16.mxu0 %v230_v5  ;;  %3352 = vmatprep.mubr.bf16.mxu1 %v3729_v23  ;;  %v3746_v5 = vld [vmem:[%s4742_s4 + $0x8] sm:$0xff]   ;;  %v3756_v23 = vld [vmem:[%s4740_s2 + $0xf8] sm:$0xff]  }
  0xd3   :  { %3398 = vmatprep.subr.bf16.mxu1 %v3746_v5 }
  0xd4   :  { %1715 = vperm.xlu1 %3678, %v1437_v16   ;;  %3399 = vmatpush3.bf16.msra.mxu1 %v3746_v5  ;;  %v3752_v16 = vld [vmem:[%s4740_s2 + $0xe8] sm:$0xff]  }
  0xd5   :  { %3400 = vmatprep.subr.bf16.mxu1 %v3749_v10 }
  0xd8   :  { %1725 = vperm.xlu1 %3678, %v1439_v19   ;;  %3401 = vmatpush3.bf16.msra.mxu1 %v3749_v10 }
  0xd9   :  { %933 = vmatmul.mubr.bf16.vlgmr.msra.gmra.mrb[0].mxu0 %v229_v11  ;;  %3353 = vmatmul.mubr.bf16.gmra.mrb[72].mxu1 %v3730_v24  ;;  %v185_v11 = vld [vmem:[%s4738_s0 + $0xb0] sm:$0xff] }
  0xda   :  { %940 = vmatprep.mubr.bf16.mxu0 %v234_v13  ;;  %3356 = vmatprep.mubr.bf16.mxu1 %v3731_v33  ;;  %v269_v13 = vunpack.c.l.s8.bf16 %v185_v11  ;;  %v273_v19 = vunpack.c.h.s8.bf16 %v185_v11  ;;  %v3757_v24 = vld [vmem:[%s4742_s4 + $0x30] sm:$0xff]  }
  0xdb   :  { %3402 = vmatprep.subr.bf16.mxu1 %v3750_v12  ;;  %v193_v33 = vld [vmem:[%s4738_s0 + $0xf0] sm:$0xff] }
  0xdc   :  { %1735 = vperm.xlu1 %3678, %v1441_v25   ;;  %3403 = vmatpush3.bf16.msra.mxu1 %v3750_v12  ;;  %v189_v25 = vld [vmem:[%s4738_s0 + $0xd0] sm:$0xff]  ;;  %v289_v37 = vunpack.c.h.s8.bf16 %v193_v33 }
  0xdd   :  { %3404 = vmatprep.subr.bf16.mxu1 %v3753_v17  ;;  %v277_v26 = vunpack.c.l.s8.bf16 %v189_v25  ;;  %v281_v1 = vunpack.c.h.s8.bf16 %v189_v25  ;;  %v209_v11 = vld [vmem:[%s4738_s0 + $0x170] sm:$0xff] }
  0xde   :  { %v213_v25 = vld [vmem:[%s4738_s0 + $0x190] sm:$0xff] }
  0xe0   :  { %1745 = vperm.xlu1 %3678, %v1443_v28   ;;  %3405 = vmatpush3.bf16.msra.mxu1 %v3753_v17  ;;  %v282_v28 = vunpack.c.h.s8.bf16 %v190_v18 }
  0xe1   :  { %941 = vmatmul.mubr.bf16.gmra.mrb[4].mxu0 %v233_v20  ;;  %3357 = vmatmul.mubr.bf16.gmra.mrb[76].mxu1 %v3732_v34  ;;  %v3754_v20 = vld [vmem:[%s4742_s4 + $0x28] sm:$0xff]   ;;  %v285_v34 = vunpack.c.l.s8.bf16 %v193_v33 }
  0xe2   :  { %948 = vmatprep.mubr.bf16.mxu0 %v238_v22  ;;  %3360 = vmatprep.mubr.bf16.mxu1 %v3733_v41  ;;  %v3755_v22 = vld [vmem:[%s4740_s2 + $0xf0] sm:$0xff]   ;;  %v298_v41 = vunpack.c.h.s8.bf16 %v198_v36 }
  0xe3   :  { %3406 = vmatprep.subr.bf16.mxu1 %v3754_v20 }
  0xe4   :  { %1755 = vperm.xlu1 %3678, %v1445_v35   ;;  %3407 = vmatpush3.bf16.msra.mxu1 %v3754_v20  ;;  %v321_v20 = vunpack.c.h.s8.bf16 %v209_v11 }
  0xe5   :  { %3408 = vmatprep.subr.bf16.mxu1 %v3757_v24 }
  0xe8   :  { %1765 = vperm.xlu1 %3678, %v1447_v38   ;;  %3409 = vmatpush3.bf16.msra.mxu1 %v3757_v24  ;;  %v294_v38 = vunpack.c.l.s8.bf16 %v198_v36 }
  0xe9   :  { %949 = vmatmul.mubr.bf16.gmra.mrb[8].mxu0 %v237_v29  ;;  %3361 = vmatmul.mubr.bf16.gmra.mrb[80].mxu1 %v3734_v42  ;;  %v194_v29 = vld [vmem:[%s4738_s0 + $0xf8] sm:$0xff] }
  0xea   :  { %956 = vmatprep.mubr.bf16.mxu0 %v242_v31  ;;  %3364 = vmatprep.mubr.bf16.mxu1 %v3735_v46  ;;  %v286_v31 = vunpack.c.l.s8.bf16 %v194_v29  ;;  %v290_v35 = vunpack.c.h.s8.bf16 %v194_v29  ;;  %v202_v42 = vld [vmem:[%s4738_s0 + $0x138] sm:$0xff] }
  0xeb   :  { %3410 = vmatprep.subr.bf16.mxu1 %v3758_v27 }
  0xec   :  { %3411 = vmatpush3.bf16.msra.mxu1 %v3758_v27  ;;  %v325_v27 = vunpack.c.l.s8.bf16 %v213_v25 }
  0xf1   :  { %957 = vmatmul.mubr.bf16.gmra.mrb[12].mxu0 %v241_v39  ;;  %3365 = vmatmul.mubr.bf16.gmra.mrb[84].mxu1 %v3736_v47  ;;  %v197_v39 = vld [vmem:[%s4738_s0 + $0x110] sm:$0xff] }
  0xf2   :  { %964 = vmatprep.mubr.bf16.mxu0 %v246_v40  ;;  %3368 = vmatprep.mubr.bf16.mxu1 %v3737_v51  ;;  %v293_v40 = vunpack.c.l.s8.bf16 %v197_v39  ;;  %v297_v43 = vunpack.c.h.s8.bf16 %v197_v39 }
  0xf9   :  { %965 = vmatmul.mubr.bf16.gmra.mrb[16].mxu0 %v245_v44  ;;  %3369 = vmatmul.mubr.bf16.gmra.mrb[88].mxu1 %v3738_v52  ;;  %v306_v52 = vunpack.c.h.s8.bf16 %v202_v42 }
  0xfa   :  { %972 = vmatprep.mubr.bf16.mxu0 %v250_v45  ;;  %3372 = vmatprep.mubr.bf16.mxu1 %v3739_v56  ;;  %v302_v45 = vunpack.c.l.s8.bf16 %v202_v42  ;;  %v206_v56 = vld [vmem:[%s4738_s0 + $0x158] sm:$0xff] }
 0x101   :  { %973 = vmatmul.mubr.bf16.gmra.mrb[20].mxu0 %v249_v49  ;;  %3373 = vmatmul.mubr.bf16.gmra.mrb[92].mxu1 %v3740_v57  ;;  %v305_v57 = vunpack.c.h.s8.bf16 %v201_v48 }
 0x102   :  { %980 = vmatprep.mubr.bf16.mxu0 %v254_v50  ;;  %3376 = vmatprep.mubr.bf16.mxu1 %v3741_v61  ;;  %v301_v50 = vunpack.c.l.s8.bf16 %v201_v48 }
 0x109   :  { %981 = vmatmul.mubr.bf16.gmra.mrb[24].mxu0 %v253_v54  ;;  %3377 = vmatmul.mubr.bf16.gmra.mrb[96].mxu1 %v3742_v62  ;;  %v205_v62 = vld [vmem:[%s4738_s0 + $0x150] sm:$0xff] }
 0x10a   :  { %988 = vmatprep.mubr.bf16.mxu0 %v258_v55  ;;  %3380 = vmatprep.mubr.bf16.mxu1 %v3743_v2  ;;  %v314_v2 = vunpack.c.h.s8.bf16 %v206_v56 }
 0x111   :  { %989 = vmatmul.mubr.bf16.gmra.mrb[28].mxu0 %v257_v59  ;;  %3381 = vmatmul.mubr.bf16.gmra.mrb[100].mxu1 %v3744_v3  ;;  %v310_v59 = vunpack.c.l.s8.bf16 %v206_v56 }
 0x112   :  { %996 = vmatprep.mubr.bf16.mxu0 %v262_v60  ;;  %3384 = vmatprep.mubr.bf16.mxu1 %v3747_v8  ;;  %v318_v8 = vunpack.c.l.s8.bf16 %v210_v6 }
 0x119   :  { %997 = vmatmul.mubr.bf16.gmra.mrb[32].mxu0 %v261_v30  ;;  %3385 = vmatmul.mubr.bf16.gmra.mrb[104].mxu1 %v3748_v9  ;;  %v309_v30 = vunpack.c.l.s8.bf16 %v205_v62 }
 0x11a   :  { %1004 = vmatprep.mubr.bf16.mxu0 %v266_v0  ;;  %3388 = vmatprep.mubr.bf16.mxu1 %v3751_v15  ;;  %v322_v15 = vunpack.c.h.s8.bf16 %v210_v6 }
 0x11c   :  { %v4479_v44 = vpop.f32.mrb[0].mxu1 }
 0x11d   :  { %v799_v46 = vpop.f32.mrb[1].mxu1 }
 0x11e   :  { %v4481_v47 = vpop.f32.mrb[2].mxu1 }
 0x11f   :  { %v802_v49 = vpop.f32.mrb[3].mxu1 }
 0x121   :  { %1005 = vmatmul.mubr.bf16.gmra.mrb[36].mxu0 %v265_v7  ;;  %3389 = vmatmul.mubr.bf16.gmra.mrb[108].mxu1 %v3752_v16  ;;  %v313_v7 = vunpack.c.h.s8.bf16 %v205_v62 }
 0x122   :  { %1012 = vmatprep.mubr.bf16.mxu0 %v270_v32  ;;  %3392 = vmatprep.mubr.bf16.mxu1 %v3755_v22 }
 0x124   :  { %v4486_v51 = vpop.f32.mrb[4].mxu1 }
 0x125   :  { %v807_v53 = vpop.f32.mrb[5].mxu1 }
 0x126   :  { %v4488_v54 = vpop.f32.mrb[6].mxu1  ;;  %v222_v53 = vld [vmem:[%s4738_s0 + $0x1d8] sm:$0xff] }
 0x127   :  { %v810_v55 = vpop.f32.mrb[7].mxu1 }
 0x129   :  { %1013 = vmatmul.mubr.bf16.gmra.mrb[40].mxu0 %v269_v13  ;;  %3393 = vmatmul.mubr.bf16.gmra.mrb[112].mxu1 %v3756_v23  ;;  %v317_v13 = vunpack.c.l.s8.bf16 %v209_v11 }
 0x12a   :  { %1020 = vmatprep.mubr.bf16.mxu0 %v274_v14 }
 0x12c   :  { %v4493_v58 = vpop.f32.mrb[8].mxu1 }
 0x12d   :  { %v815_v60 = vpop.f32.mrb[9].mxu1 }
 0x12e   :  { %v4495_v61 = vpop.f32.mrb[10].mxu1 }
 0x12f   :  { %v818_v63 = vpop.f32.mrb[11].mxu1 }
 0x130   :  { %v342_v63 = vunpack.c.l.s8.bf16 %v222_v53 }
 0x131   :  { %1021 = vmatmul.mubr.bf16.gmra.mrb[44].mxu0 %v273_v19  ;;  %v214_v19 = vld [vmem:[%s4738_s0 + $0x198] sm:$0xff] }
 0x132   :  { %1028 = vmatprep.mubr.bf16.mxu0 %v278_v21  ;;  %v326_v22 = vunpack.c.l.s8.bf16 %v214_v19  ;;  %v330_v29 = vunpack.c.h.s8.bf16 %v214_v19  ;;  %v346_v19 = vunpack.c.h.s8.bf16 %v222_v53 }
 0x134   :  { %v4500_v0 = vpop.f32.mrb[12].mxu1 }
 0x135   :  { %v823_v3 = vpop.f32.mrb[13].mxu1 }
 0x136   :  { %v4502_v4 = vpop.f32.mrb[14].mxu1 }
 0x137   :  { %v826_v5 = vpop.f32.mrb[15].mxu1 }
 0x139   :  { %1029 = vmatmul.mubr.bf16.gmra.mrb[48].mxu0 %v277_v26 }
 0x13a   :  { %1036 = vmatprep.mubr.bf16.mxu0 %v282_v28 }
 0x13c   :  { %v4507_v32 = vpop.f32.mrb[16].mxu1 }
 0x13d   :  { %v831_v9 = vpop.f32.mrb[17].mxu1 }
 0x13e   :  { %v4509_v10 = vpop.f32.mrb[18].mxu1 }
 0x13f   :  { %v834_v12 = vpop.f32.mrb[19].mxu1 }
 0x141   :  { %1037 = vmatmul.mubr.bf16.gmra.mrb[52].mxu0 %v281_v1 }
 0x142   :  { %1044 = vmatprep.mubr.bf16.mxu0 %v286_v31 }
 0x144   :  { %v4514_v14 = vpop.f32.mrb[20].mxu1 }
 0x145   :  { %v839_v16 = vpop.f32.mrb[21].mxu1 }
 0x146   :  { %v4516_v17 = vpop.f32.mrb[22].mxu1 }
 0x147   :  { %v842_v18 = vpop.f32.mrb[23].mxu1 }
 0x149   :  { %1045 = vmatmul.mubr.bf16.gmra.mrb[56].mxu0 %v285_v34  ;;  %v218_v34 = vld [vmem:[%s4738_s0 + $0x1b8] sm:$0xff] }
 0x14a   :  { %1052 = vmatprep.mubr.bf16.mxu0 %v290_v35  ;;  %v329_v35 = vunpack.c.h.s8.bf16 %v213_v25  ;;  %v338_v46 = vunpack.c.h.s8.bf16 %v218_v34 }
 0x14c   :  { %v4521_v21 = vpop.f32.mrb[24].mxu1 }
 0x14d   :  { %v847_v23 = vpop.f32.mrb[25].mxu1 }
 0x14e   :  { %v4523_v24 = vpop.f32.mrb[26].mxu1 }
 0x14f   :  { %v850_v26 = vpop.f32.mrb[27].mxu1 }
 0x151   :  { %1053 = vmatmul.mubr.bf16.gmra.mrb[60].mxu0 %v289_v37  ;;  %v334_v37 = vunpack.c.l.s8.bf16 %v218_v34 }
 0x152   :  { %1060 = vmatprep.mubr.bf16.mxu0 %v294_v38 }
 0x154   :  { %v4528_v28 = vpop.f32.mrb[28].mxu1 }
 0x155   :  { %v855_v1 = vpop.f32.mrb[29].mxu1 }
 0x156   :  { %v4530_v31 = vpop.f32.mrb[30].mxu1 }
 0x157   :  { %v858_v33 = vpop.f32.mrb[31].mxu1 }
 0x158   :  { %v226_v33 = vld [vmem:[%s4738_s0 + $0x1f8] sm:$0xff] }
 0x159   :  { %1061 = vmatmul.mubr.bf16.gmra.mrb[64].mxu0 %v293_v40  ;;  %v217_v40 = vld [vmem:[%s4738_s0 + $0x1b0] sm:$0xff] }
 0x15a   :  { %1068 = vmatprep.mubr.bf16.mxu0 %v298_v41  ;;  %v333_v42 = vunpack.c.l.s8.bf16 %v217_v40 }
 0x15c   :  { %v4535_v36 = vpop.f32.mrb[32].mxu1 }
 0x15d   :  { %v863_v38 = vpop.f32.mrb[33].mxu1 }
 0x15e   :  { %v4537_v39 = vpop.f32.mrb[34].mxu1 }
 0x15f   :  { %v866_v41 = vpop.f32.mrb[35].mxu1 }
 0x161   :  { %1069 = vmatmul.mubr.bf16.gmra.mrb[68].mxu0 %v297_v43 }
 0x162   :  { %1076 = vmatprep.mubr.bf16.mxu0 %v302_v45  ;;  %v1451_v45 = vpop.permute.xlu0 %1450 }
 0x164   :  { %v4542_v43 = vpop.f32.mrb[36].mxu1 }
 0x165   :  { %v871_v48 = vpop.f32.mrb[37].mxu1 }
 0x166   :  { %v4544_v49 = vpop.f32.mrb[38].mxu1  ;;  %v1456_v55 = vpop.permute.xlu0 %1455 }
 0x169   :  { %1077 = vmatmul.mubr.bf16.gmra.mrb[72].mxu0 %v301_v50  ;;  %v874_v50 = vpop.f32.mrb[39].mxu1 }
 0x16a   :  { %1084 = vmatprep.mubr.bf16.mxu0 %v306_v52  ;;  %v1461_v52 = vpop.permute.xlu1 %1460  ;;  %v1471_v1 = vpop.permute.xlu0 %1470 }
 0x16c   :  { %v4549_v60 = vpop.f32.mrb[40].mxu1 }
 0x16e   :  { %v1466_v11 = vpop.permute.xlu1 %1465 }
 0x171   :  { %1085 = vmatmul.mubr.bf16.gmra.mrb[76].mxu0 %v305_v57 }
 0x172   :  { %1092 = vmatprep.mubr.bf16.mxu0 %v310_v59  ;;  %v337_v59 = vunpack.c.h.s8.bf16 %v217_v40  ;;  %v1476_v34 = vpop.permute.xlu1 %1475 }
 0x179   :  { %1093 = vmatmul.mubr.bf16.gmra.mrb[80].mxu0 %v309_v30  ;;  %v879_v30 = vpop.f32.mrb[41].mxu1 }
 0x17a   :  { %1100 = vmatprep.mubr.bf16.mxu0 %v314_v2  ;;  %v1486_v30 = vpop.permute.xlu1 %1485 }
 0x181   :  { %1101 = vmatmul.mubr.bf16.gmra.mrb[84].mxu0 %v313_v7  ;;  %v4551_v7 = vpop.f32.mrb[42].mxu1 }
 0x182   :  { %1108 = vmatprep.mubr.bf16.mxu0 %v318_v8  ;;  %v221_v8 = vld [vmem:[%s4738_s0 + $0x1d0] sm:$0xff]  ;;  %v882_v9 = vpop.f32.mrb[43].mxu1 }
 0x183   :  { %v4556_v16 = vpop.f32.mrb[44].mxu1  ;;  %v345_v38 = vunpack.c.h.s8.bf16 %v221_v8 }
 0x189   :  { %1109 = vmatmul.mubr.bf16.gmra.mrb[88].mxu0 %v317_v13 }
 0x18a   :  { %1116 = vmatprep.mubr.bf16.mxu0 %v322_v15  ;;  %v341_v15 = vunpack.c.l.s8.bf16 %v221_v8 }
 0x191   :  { %1117 = vmatmul.mubr.bf16.gmra.mrb[92].mxu0 %v321_v20  ;;  %v887_v20 = vpop.f32.mrb[45].mxu1 }
 0x192   :  { %1124 = vmatprep.mubr.bf16.mxu0 %v326_v22 }
 0x199   :  { %1125 = vmatmul.mubr.bf16.gmra.mrb[96].mxu0 %v325_v27  ;;  %v4558_v27 = vpop.f32.mrb[46].mxu1 }
 0x19a   :  { %1132 = vmatprep.mubr.bf16.mxu0 %v330_v29  ;;  %v890_v29 = vpop.f32.mrb[47].mxu1 }
 0x19b   :  { %v4563_v40 = vpop.f32.mrb[48].mxu1 }
 0x1a1   :  { %1133 = vmatmul.mubr.bf16.gmra.mrb[100].mxu0 %v329_v35 }
 0x1a2   :  { %1140 = vmatprep.mubr.bf16.mxu0 %v334_v37 }
 0x1a9   :  { %1141 = vmatmul.mubr.bf16.gmra.mrb[104].mxu0 %v333_v42  ;;  %v350_v42 = vunpack.c.l.s8.bf16 %v226_v33 }
 0x1aa   :  { %1148 = vmatprep.mubr.bf16.mxu0 %v338_v46 }
 0x1ac   :  { %v934_v56 = vpop.f32.mrb[0].mxu0 }
 0x1ad   :  { %v936_v57 = vpop.f32.mrb[1].mxu0  ;;  %v1768_v2 = vmul.f32 %v1451_v45, %v934_v56  ;;  %v895_v45 = vpop.f32.mrb[49].mxu1 }
 0x1ae   :  { %v937_v62 = vpop.f32.mrb[2].mxu0  ;;  %v4565_v53 = vpop.f32.mrb[50].mxu1 }
 0x1af   :  { %v1769_v3 = vmul.f32 %v1456_v55, %v937_v62  ;;  %v939_v5 = vpop.f32.mrb[3].mxu0  ;;  %v225_v55 = vld [vmem:[%s4738_s0 + $0x1f0] sm:$0xff]  ;;  %v898_v56 = vpop.f32.mrb[51].mxu1 }
 0x1b1   :  { %v1832_v6 = vpack.c.bf16 %v1769_v3, %v1768_v2  ;;  %1149 = vmatmul.mubr.bf16.gmra.mrb[108].mxu0 %v337_v59  ;;  %v1481_v59 = vpop.permute.xlu0 %1480  ;;  %v354_v3 = vunpack.c.h.s8.bf16 %v226_v33 }
 0x1b2   :  { %1156 = vmatprep.mubr.bf16.mxu0 %v342_v63  ;;  %v349_v63 = vunpack.c.l.s8.bf16 %v225_v55 }
 0x1b3   :  { %3412 = vmatprep.mubr.bf16.mxu1 %v1832_v6 }
 0x1b4   :  { %v942_v12 = vpop.f32.mrb[4].mxu0 }
 0x1b5   :  { %v944_v13 = vpop.f32.mrb[5].mxu0  ;;  %v1770_v22 = vmul.f32 %v1461_v52, %v942_v12  ;;  %v1491_v12 = vpop.permute.xlu0 %1490 }
 0x1b6   :  { %v945_v18 = vpop.f32.mrb[6].mxu0 }
 0x1b7   :  { %v1771_v23 = vmul.f32 %v1466_v11, %v945_v18  ;;  %v947_v25 = vpop.f32.mrb[7].mxu0  ;;  %v1496_v18 = vpop.permute.xlu1 %1495 }
 0x1b9   :  { %v1833_v26 = vpack.c.bf16 %v1771_v23, %v1770_v22  ;;  %1157 = vmatmul.mubr.bf16.gmra.mrb[112].mxu0 %v341_v15  ;;  %v353_v15 = vunpack.c.h.s8.bf16 %v225_v55  ;;  %v1501_v29 = vpop.permute.xlu0 %1500 }
 0x1ba   :  { %1164 = vmatprep.mubr.bf16.mxu0 %v346_v19 }
 0x1bb   :  { %3413 = vmatmul.mubr.bf16.vlgmr.msra.gmra.mrb[52].mxu1 %v1833_v26  ;;  %v1506_v33 = vpop.permute.xlu1 %1505 }
 0x1bc   :  { %v950_v35 = vpop.f32.mrb[8].mxu0 }
 0x1bd   :  { %v952_v37 = vpop.f32.mrb[9].mxu0  ;;  %v1772_v46 = vmul.f32 %v1471_v1, %v950_v35  ;;  %v1511_v45 = vpop.permute.xlu0 %1510 }
 0x1be   :  { %v953_v41 = vpop.f32.mrb[10].mxu0 }
 0x1bf   :  { %v1773_v48 = vmul.f32 %v1476_v34, %v953_v41  ;;  %v955_v50 = vpop.f32.mrb[11].mxu0 }
 0x1c1   :  { %v1834_v52 = vpack.c.bf16 %v1773_v48, %v1772_v46  ;;  %1165 = vmatmul.mubr.bf16.gmra.mrb[116].mxu0 %v345_v38  ;;  %v1516_v48 = vpop.permute.xlu1 %1515 }
 0x1c2   :  { %1172 = vmatprep.mubr.bf16.mxu0 %v350_v42 }
 0x1c3   :  { %3416 = vmatprep.mubr.bf16.mxu1 %v1834_v52 }
 0x1c4   :  { %v958_v57 = vpop.f32.mrb[12].mxu0 }
 0x1c5   :  { %v960_v62 = vpop.f32.mrb[13].mxu0  ;;  %v1774_v5 = vmul.f32 %v1481_v59, %v958_v57 }
 0x1c6   :  { %v961_v2 = vpop.f32.mrb[14].mxu0  ;;  %v1521_v62 = vpop.permute.xlu0 %1520 }
 0x1c7   :  { %v1775_v6 = vmul.f32 %v1486_v30, %v961_v2  ;;  %v963_v8 = vpop.f32.mrb[15].mxu0  ;;  %v1526_v30 = vpop.permute.xlu1 %1525 }
 0x1c9   :  { %v1835_v9 = vpack.c.bf16 %v1775_v6, %v1774_v5  ;;  %1173 = vmatmul.mubr.bf16.gmra.mrb[120].mxu0 %v349_v63 }
 0x1ca   :  { %1180 = vmatprep.mubr.bf16.mxu0 %v354_v3 }
 0x1cb   :  { %3417 = vmatmul.mubr.bf16.gmra.mrb[56].mxu1 %v1835_v9 }
 0x1cc   :  { %v966_v11 = vpop.f32.mrb[16].mxu0 }
 0x1cd   :  { %v968_v13 = vpop.f32.mrb[17].mxu0  ;;  %v1776_v20 = vmul.f32 %v1491_v12, %v966_v11  ;;  %v1531_v11 = vpop.permute.xlu0 %1530 }
 0x1ce   :  { %v969_v19 = vpop.f32.mrb[18].mxu0  ;;  %v1536_v13 = vpop.permute.xlu1 %1535 }
 0x1cf   :  { %v1777_v22 = vmul.f32 %v1496_v18, %v969_v19  ;;  %v971_v23 = vpop.f32.mrb[19].mxu0 }
 0x1d1   :  { %v1836_v25 = vpack.c.bf16 %v1777_v22, %v1776_v20  ;;  %1181 = vmatmul.mubr.bf16.gmra.mrb[124].mxu0 %v353_v15 }
 0x1d3   :  { %3420 = vmatprep.mubr.bf16.mxu1 %v1836_v25  ;;  %v1541_v25 = vpop.permute.xlu0 %1540 }
 0x1d4   :  { %v974_v26 = vpop.f32.mrb[20].mxu0 }
 0x1d5   :  { %v976_v1 = vpop.f32.mrb[21].mxu0  ;;  %v1778_v35 = vmul.f32 %v1501_v29, %v974_v26  ;;  %v1546_v29 = vpop.permute.xlu1 %1545 }
 0x1d6   :  { %v977_v34 = vpop.f32.mrb[22].mxu0 }
 0x1d7   :  { %v1779_v37 = vmul.f32 %v1506_v33, %v977_v34  ;;  %v979_v38 = vpop.f32.mrb[23].mxu0 }
 0x1d9   :  { %v1837_v41 = vpack.c.bf16 %v1779_v37, %v1778_v35 }
 0x1db   :  { %3421 = vmatmul.mubr.bf16.gmra.mrb[60].mxu1 %v1837_v41  ;;  %v1551_v41 = vpop.permute.xlu0 %1550 }
 0x1dc   :  { %v982_v42 = vpop.f32.mrb[24].mxu0 }
 0x1dd   :  { %v984_v46 = vpop.f32.mrb[25].mxu0  ;;  %v1780_v52 = vmul.f32 %v1511_v45, %v982_v42  ;;  %v1556_v45 = vpop.permute.xlu1 %1555 }
 0x1de   :  { %v985_v50 = vpop.f32.mrb[26].mxu0 }
 0x1df   :  { %v1781_v55 = vmul.f32 %v1516_v48, %v985_v50  ;;  %v987_v56 = vpop.f32.mrb[27].mxu0 }
 0x1e1   :  { %v1838_v57 = vpack.c.bf16 %v1781_v55, %v1780_v52 }
 0x1e3   :  { %3424 = vmatprep.mubr.bf16.mxu1 %v1838_v57  ;;  %v1561_v57 = vpop.permute.xlu0 %1560 }
 0x1e4   :  { %v990_v59 = vpop.f32.mrb[28].mxu0 }
 0x1e5   :  { %v992_v63 = vpop.f32.mrb[29].mxu0  ;;  %v1782_v3 = vmul.f32 %v1521_v62, %v990_v59  ;;  %v1566_v62 = vpop.permute.xlu1 %1565 }
 0x1e6   :  { %v993_v2 = vpop.f32.mrb[30].mxu0 }
 0x1e7   :  { %v1783_v5 = vmul.f32 %v1526_v30, %v993_v2  ;;  %v995_v6 = vpop.f32.mrb[31].mxu0 }
 0x1e9   :  { %v1839_v8 = vpack.c.bf16 %v1783_v5, %v1782_v3 }
 0x1eb   :  { %3425 = vmatmul.mubr.bf16.gmra.mrb[64].mxu1 %v1839_v8  ;;  %v1571_v8 = vpop.permute.xlu0 %1570 }
 0x1ec   :  { %v998_v9 = vpop.f32.mrb[32].mxu0 }
 0x1ed   :  { %v1000_v12 = vpop.f32.mrb[33].mxu0  ;;  %v1784_v18 = vmul.f32 %v1531_v11, %v998_v9  ;;  %v1576_v11 = vpop.permute.xlu1 %1575 }
 0x1ee   :  { %v1001_v15 = vpop.f32.mrb[34].mxu0 }
 0x1ef   :  { %v1785_v19 = vmul.f32 %v1536_v13, %v1001_v15  ;;  %v1003_v20 = vpop.f32.mrb[35].mxu0 }
 0x1f1   :  { %v1840_v22 = vpack.c.bf16 %v1785_v19, %v1784_v18 }
 0x1f3   :  { %3428 = vmatprep.mubr.bf16.mxu1 %v1840_v22  ;;  %v1581_v22 = vpop.permute.xlu0 %1580 }
 0x1f4   :  { %v1006_v23 = vpop.f32.mrb[36].mxu0 }
 0x1f5   :  { %v1008_v26 = vpop.f32.mrb[37].mxu0  ;;  %v1786_v33 = vmul.f32 %v1541_v25, %v1006_v23  ;;  %v1586_v25 = vpop.permute.xlu1 %1585 }
 0x1f6   :  { %v1009_v1 = vpop.f32.mrb[38].mxu0 }
 0x1f7   :  { %v1787_v34 = vmul.f32 %v1546_v29, %v1009_v1  ;;  %v1011_v35 = vpop.f32.mrb[39].mxu0 }
 0x1f9   :  { %v1841_v37 = vpack.c.bf16 %v1787_v34, %v1786_v33 }
 0x1fb   :  { %3429 = vmatmul.mubr.bf16.gmra.mrb[68].mxu1 %v1841_v37  ;;  %v1591_v37 = vpop.permute.xlu0 %1590 }
 0x1fc   :  { %v1014_v38 = vpop.f32.mrb[40].mxu0 }
 0x1fd   :  { %v1016_v42 = vpop.f32.mrb[41].mxu0  ;;  %v1788_v48 = vmul.f32 %v1551_v41, %v1014_v38  ;;  %v1596_v41 = vpop.permute.xlu1 %1595 }
 0x1fe   :  { %v1017_v46 = vpop.f32.mrb[42].mxu0 }
 0x1ff   :  { %v1789_v50 = vmul.f32 %v1556_v45, %v1017_v46  ;;  %v1019_v52 = vpop.f32.mrb[43].mxu0 }
 0x201   :  { %v1842_v55 = vpack.c.bf16 %v1789_v50, %v1788_v48 }
 0x203   :  { %3432 = vmatprep.mubr.bf16.mxu1 %v1842_v55  ;;  %v1601_v55 = vpop.permute.xlu0 %1600 }
 0x204   :  { %v1022_v56 = vpop.f32.mrb[44].mxu0 }
 0x205   :  { %v1024_v59 = vpop.f32.mrb[45].mxu0  ;;  %v1790_v30 = vmul.f32 %v1561_v57, %v1022_v56  ;;  %v1606_v57 = vpop.permute.xlu1 %1605 }
 0x206   :  { %v1025_v63 = vpop.f32.mrb[46].mxu0 }
 0x207   :  { %v1791_v2 = vmul.f32 %v1566_v62, %v1025_v63  ;;  %v1027_v3 = vpop.f32.mrb[47].mxu0 }
 0x209   :  { %v1843_v5 = vpack.c.bf16 %v1791_v2, %v1790_v30 }
 0x20b   :  { %3433 = vmatmul.mubr.bf16.gmra.mrb[72].mxu1 %v1843_v5  ;;  %v1611_v5 = vpop.permute.xlu0 %1610 }
 0x20c   :  { %v1030_v6 = vpop.f32.mrb[48].mxu0 }
 0x20d   :  { %v1032_v9 = vpop.f32.mrb[49].mxu0  ;;  %v1792_v13 = vmul.f32 %v1571_v8, %v1030_v6  ;;  %v1616_v8 = vpop.permute.xlu1 %1615 }
 0x20e   :  { %v1033_v12 = vpop.f32.mrb[50].mxu0 }
 0x20f   :  { %v1793_v15 = vmul.f32 %v1576_v11, %v1033_v12  ;;  %v1035_v18 = vpop.f32.mrb[51].mxu0 }
 0x211   :  { %v1844_v19 = vpack.c.bf16 %v1793_v15, %v1792_v13 }
 0x213   :  { %3436 = vmatprep.mubr.bf16.mxu1 %v1844_v19  ;;  %v1621_v19 = vpop.permute.xlu0 %1620 }
 0x214   :  { %v1038_v20 = vpop.f32.mrb[52].mxu0 }
 0x215   :  { %v1040_v23 = vpop.f32.mrb[53].mxu0  ;;  %v1794_v29 = vmul.f32 %v1581_v22, %v1038_v20  ;;  %v1626_v22 = vpop.permute.xlu1 %1625 }
 0x216   :  { %v1041_v26 = vpop.f32.mrb[54].mxu0 }
 0x217   :  { %v1795_v1 = vmul.f32 %v1586_v25, %v1041_v26  ;;  %v1043_v33 = vpop.f32.mrb[55].mxu0 }
 0x219   :  { %v1845_v34 = vpack.c.bf16 %v1795_v1, %v1794_v29 }
 0x21b   :  { %3437 = vmatmul.mubr.bf16.gmra.mrb[76].mxu1 %v1845_v34  ;;  %v1631_v34 = vpop.permute.xlu0 %1630 }
 0x21c   :  { %v1046_v35 = vpop.f32.mrb[56].mxu0 }
 0x21d   :  { %v1048_v38 = vpop.f32.mrb[57].mxu0  ;;  %v1796_v45 = vmul.f32 %v1591_v37, %v1046_v35  ;;  %v1636_v37 = vpop.permute.xlu1 %1635 }
 0x21e   :  { %v1049_v42 = vpop.f32.mrb[58].mxu0 }
 0x21f   :  { %v1797_v46 = vmul.f32 %v1596_v41, %v1049_v42  ;;  %v1051_v48 = vpop.f32.mrb[59].mxu0 }
 0x221   :  { %v1846_v50 = vpack.c.bf16 %v1797_v46, %v1796_v45 }
 0x223   :  { %3440 = vmatprep.mubr.bf16.mxu1 %v1846_v50 }
 0x224   :  { %v1054_v52 = vpop.f32.mrb[60].mxu0 }
 0x225   :  { %v1056_v56 = vpop.f32.mrb[61].mxu0  ;;  %v1798_v62 = vmul.f32 %v1601_v55, %v1054_v52 }
 0x226   :  { %v1057_v59 = vpop.f32.mrb[62].mxu0 }
 0x227   :  { %v1799_v63 = vmul.f32 %v1606_v57, %v1057_v59  ;;  %v1059_v30 = vpop.f32.mrb[63].mxu0  ;;  %v1641_v59 = vpop.permute.xlu0 %1640 }
 0x229   :  { %v1847_v2 = vpack.c.bf16 %v1799_v63, %v1798_v62  ;;  %v1646_v62 = vpop.permute.xlu1 %1645 }
 0x22b   :  { %3441 = vmatmul.mubr.bf16.gmra.mrb[80].mxu1 %v1847_v2 }
 0x22c   :  { %v1062_v3 = vpop.f32.mrb[64].mxu0 }
 0x22d   :  { %v1064_v6 = vpop.f32.mrb[65].mxu0  ;;  %v1800_v11 = vmul.f32 %v1611_v5, %v1062_v3 }
 0x22e   :  { %v1065_v9 = vpop.f32.mrb[66].mxu0 }
 0x22f   :  { %v1801_v12 = vmul.f32 %v1616_v8, %v1065_v9  ;;  %v1067_v13 = vpop.f32.mrb[67].mxu0 }
 0x231   :  { %v1848_v15 = vpack.c.bf16 %v1801_v12, %v1800_v11  ;;  %v1656_v12 = vpop.permute.xlu1 %1655 }
 0x233   :  { %3444 = vmatprep.mubr.bf16.mxu1 %v1848_v15 }
 0x234   :  { %v1070_v18 = vpop.f32.mrb[68].mxu0 }
 0x235   :  { %v1072_v20 = vpop.f32.mrb[69].mxu0  ;;  %v1802_v25 = vmul.f32 %v1621_v19, %v1070_v18 }
 0x236   :  { %v1073_v23 = vpop.f32.mrb[70].mxu0 }
 0x237   :  { %v1803_v26 = vmul.f32 %v1626_v22, %v1073_v23  ;;  %v1075_v29 = vpop.f32.mrb[71].mxu0 }
 0x239   :  { %v1849_v1 = vpack.c.bf16 %v1803_v26, %v1802_v25  ;;  %v1666_v26 = vpop.permute.xlu1 %1665 }
 0x23b   :  { %3445 = vmatmul.mubr.bf16.gmra.mrb[84].mxu1 %v1849_v1 }
 0x23c   :  { %v1078_v33 = vpop.f32.mrb[72].mxu0 }
 0x23d   :  { %v1080_v35 = vpop.f32.mrb[73].mxu0  ;;  %v1804_v41 = vmul.f32 %v1631_v34, %v1078_v33 }
 0x23e   :  { %v1081_v38 = vpop.f32.mrb[74].mxu0 }
 0x23f   :  { %v1805_v42 = vmul.f32 %v1636_v37, %v1081_v38  ;;  %v1083_v45 = vpop.f32.mrb[75].mxu0 }
 0x241   :  { %v1850_v46 = vpack.c.bf16 %v1805_v42, %v1804_v41  ;;  %v1676_v42 = vpop.permute.xlu1 %1675 }
 0x243   :  { %3448 = vmatprep.mubr.bf16.mxu1 %v1850_v46 }
 0x244   :  { %v1086_v48 = vpop.f32.mrb[76].mxu0 }
 0x245   :  { %v1087_v50 = vadd.f32 %v1086_v48, %v4479_v44  ;;  %v1088_v52 = vpop.f32.mrb[77].mxu0  ;;  %v1651_v44 = vpop.permute.xlu0 %1650 }
 0x246   :  { %v1089_v55 = vpop.f32.mrb[78].mxu0 }
 0x247   :  { %v1090_v56 = vadd.f32 %v1089_v55, %v4481_v47  ;;  %v1091_v57 = vpop.f32.mrb[79].mxu0  ;;  %v1806_v63 = vmul.f32 %v1641_v59, %v1087_v50  ;;  %v1686_v59 = vpop.permute.xlu1 %1685 }
 0x249   :  { %v1807_v30 = vmul.f32 %v1646_v62, %v1090_v56  ;;  %v1661_v25 = vpop.permute.xlu0 %1660 }
 0x24b   :  { %v1851_v2 = vpack.c.bf16 %v1807_v30, %v1806_v63 }
 0x24c   :  { %v1094_v3 = vpop.f32.mrb[80].mxu0 }
 0x24d   :  { %v1095_v5 = vadd.f32 %v1094_v3, %v4486_v51  ;;  %v1096_v6 = vpop.f32.mrb[81].mxu0  ;;  %3449 = vmatmul.mubr.bf16.gmra.mrb[88].mxu1 %v1851_v2  ;;  %v1671_v41 = vpop.permute.xlu0 %1670 }
 0x24e   :  { %v1097_v8 = vpop.f32.mrb[82].mxu0 }
 0x24f   :  { %v1098_v9 = vadd.f32 %v1097_v8, %v4488_v54  ;;  %v1099_v11 = vpop.f32.mrb[83].mxu0  ;;  %v1808_v13 = vmul.f32 %v1651_v44, %v1095_v5 }
 0x251   :  { %v1809_v15 = vmul.f32 %v1656_v12, %v1098_v9  ;;  %v1681_v57 = vpop.permute.xlu0 %1680  ;;  %v1696_v9 = vpop.permute.xlu1 %1695 }
 0x253   :  { %v1852_v47 = vpack.c.bf16 %v1809_v15, %v1808_v13 }
 0x254   :  { %v1102_v18 = vpop.f32.mrb[84].mxu0 }
 0x255   :  { %v1103_v19 = vadd.f32 %v1102_v18, %v4493_v58  ;;  %v1104_v20 = vpop.f32.mrb[85].mxu0  ;;  %3452 = vmatprep.mubr.bf16.mxu1 %v1852_v47  ;;  %v1691_v8 = vpop.permute.xlu0 %1690 }
 0x256   :  { %v1105_v22 = vpop.f32.mrb[86].mxu0  ;;  %v1706_v20 = vpop.permute.xlu1 %1705 }
 0x257   :  { %v1106_v23 = vadd.f32 %v1105_v22, %v4495_v61  ;;  %v1107_v51 = vpop.f32.mrb[87].mxu0  ;;  %v1810_v29 = vmul.f32 %v1661_v25, %v1103_v19 }
 0x259   :  { %v1811_v1 = vmul.f32 %v1666_v26, %v1106_v23  ;;  %v1701_v19 = vpop.permute.xlu0 %1700 }
 0x25b   :  { %v1853_v54 = vpack.c.bf16 %v1811_v1, %v1810_v29 }
 0x25c   :  { %v1110_v33 = vpop.f32.mrb[88].mxu0 }
 0x25d   :  { %v1111_v34 = vadd.f32 %v1110_v33, %v4500_v0  ;;  %v1112_v35 = vpop.f32.mrb[89].mxu0  ;;  %3453 = vmatmul.mubr.bf16.gmra.mrb[92].mxu1 %v1853_v54  ;;  %v1711_v54 = vpop.permute.xlu0 %1710 }
 0x25e   :  { %v1113_v37 = vpop.f32.mrb[90].mxu0  ;;  %v1716_v33 = vpop.permute.xlu1 %1715 }
 0x25f   :  { %v1114_v38 = vadd.f32 %v1113_v37, %v4502_v4  ;;  %v1115_v58 = vpop.f32.mrb[91].mxu0  ;;  %v1812_v45 = vmul.f32 %v1671_v41, %v1111_v34 }
 0x261   :  { %v1813_v46 = vmul.f32 %v1676_v42, %v1114_v38  ;;  %v1721_v42 = vpop.permute.xlu0 %1720 }
 0x263   :  { %v1854_v61 = vpack.c.bf16 %v1813_v46, %v1812_v45  ;;  %v1726_v46 = vpop.permute.xlu1 %1725 }
 0x264   :  { %v1118_v48 = vpop.f32.mrb[92].mxu0 }
 0x265   :  { %v1119_v50 = vadd.f32 %v1118_v48, %v4507_v32  ;;  %v1120_v52 = vpop.f32.mrb[93].mxu0  ;;  %3456 = vmatprep.mubr.bf16.mxu1 %v1854_v61 }
 0x266   :  { %v1121_v55 = vpop.f32.mrb[94].mxu0  ;;  %v4591_v52 = vld [vmem:[%s4744_s6] ss:$0 sm:$0xff] }
 0x267   :  { %v1122_v56 = vadd.f32 %v1121_v55, %v4509_v10  ;;  %v1123_v0 = vpop.f32.mrb[95].mxu0  ;;  %v1814_v62 = vmul.f32 %v1681_v57, %v1119_v50  ;;  %v1731_v55 = vpop.permute.xlu0 %1730 }
 0x269   :  { %v1815_v63 = vmul.f32 %v1686_v59, %v1122_v56 }
 0x26b   :  { %v1855_v4 = vpack.c.bf16 %v1815_v63, %v1814_v62 }
 0x26c   :  { %v1126_v30 = vpop.f32.mrb[96].mxu0 }
 0x26d   :  { %v1127_v2 = vadd.f32 %v1126_v30, %v4514_v14  ;;  %v1128_v3 = vpop.f32.mrb[97].mxu0  ;;  %3457 = vmatmul.mubr.bf16.gmra.mrb[96].mxu1 %v1855_v4  ;;  %v1736_v4 = vpop.permute.xlu1 %1735 }
 0x26e   :  { %v1129_v5 = vpop.f32.mrb[98].mxu0 }
 0x26f   :  { %v1130_v6 = vadd.f32 %v1129_v5, %v4516_v17  ;;  %v1131_v32 = vpop.f32.mrb[99].mxu0  ;;  %v1816_v11 = vmul.f32 %v1691_v8, %v1127_v2 }
 0x271   :  { %v1817_v44 = vmul.f32 %v1696_v9, %v1130_v6 }
 0x273   :  { %v1856_v10 = vpack.c.bf16 %v1817_v44, %v1816_v11 }
 0x274   :  { %v1134_v12 = vpop.f32.mrb[100].mxu0 }
 0x275   :  { %v1135_v13 = vadd.f32 %v1134_v12, %v4521_v21  ;;  %v1136_v15 = vpop.f32.mrb[101].mxu0  ;;  %3460 = vmatprep.mubr.bf16.mxu1 %v1856_v10 }
 0x276   :  { %v1137_v47 = vpop.f32.mrb[102].mxu0 }
 0x277   :  { %v1138_v18 = vadd.f32 %v1137_v47, %v4523_v24  ;;  %v1139_v14 = vpop.f32.mrb[103].mxu0  ;;  %v1818_v22 = vmul.f32 %v1701_v19, %v1135_v13 }
 0x278   :  { %v1741_v14 = vpop.permute.xlu0 %1740 }
 0x279   :  { %v1819_v23 = vmul.f32 %v1706_v20, %v1138_v18 }
 0x27b   :  { %v1857_v17 = vpack.c.bf16 %v1819_v23, %v1818_v22  ;;  %v1746_v22 = vpop.permute.xlu1 %1745 }
 0x27c   :  { %v1142_v51 = vpop.f32.mrb[104].mxu0 }
 0x27d   :  { %v1143_v25 = vadd.f32 %v1142_v51, %v4528_v28  ;;  %v1144_v26 = vpop.f32.mrb[105].mxu0  ;;  %3461 = vmatmul.mubr.bf16.gmra.mrb[100].mxu1 %v1857_v17 }
 0x27e   :  { %v1145_v29 = vpop.f32.mrb[106].mxu0  ;;  %v1751_v26 = vpop.permute.xlu0 %1750 }
 0x27f   :  { %v1146_v1 = vadd.f32 %v1145_v29, %v4530_v31  ;;  %v1147_v21 = vpop.f32.mrb[107].mxu0  ;;  %v1820_v34 = vmul.f32 %v1711_v54, %v1143_v25 }
 0x281   :  { %v1821_v35 = vmul.f32 %v1716_v33, %v1146_v1 }
 0x283   :  { %v1858_v24 = vpack.c.bf16 %v1821_v35, %v1820_v34 }
 0x284   :  { %v1150_v37 = vpop.f32.mrb[108].mxu0 }
 0x285   :  { %v1151_v38 = vadd.f32 %v1150_v37, %v4535_v36  ;;  %v1152_v58 = vpop.f32.mrb[109].mxu0  ;;  %3464 = vmatprep.mubr.bf16.mxu1 %v1858_v24 }
 0x286   :  { %v1153_v41 = vpop.f32.mrb[110].mxu0 }
 0x287   :  { %v1154_v28 = vadd.f32 %v1153_v41, %v4537_v39  ;;  %v1155_v45 = vpop.f32.mrb[111].mxu0  ;;  %v1822_v61 = vmul.f32 %v1721_v42, %v1151_v38 }
 0x289   :  { %v1823_v48 = vmul.f32 %v1726_v46, %v1154_v28 }
 0x28b   :  { %v1859_v31 = vpack.c.bf16 %v1823_v48, %v1822_v61 }
 0x28c   :  { %v1158_v50 = vpop.f32.mrb[112].mxu0 }
 0x28d   :  { %v1159_v36 = vadd.f32 %v1158_v50, %v4542_v43  ;;  %v1160_v56 = vpop.f32.mrb[113].mxu0  ;;  %3465 = vmatmul.mubr.bf16.gmra.mrb[104].mxu1 %v1859_v31 }
 0x28e   :  { %v1161_v0 = vpop.f32.mrb[114].mxu0  ;;  %v3414_v57 = vpop.f32.mrb[52].mxu1 }
 0x28f   :  { %v1162_v39 = vadd.f32 %v1161_v0, %v4544_v49  ;;  %v2835_v59 = vadd.f32 %v3414_v57, %v4591_v52  ;;  %v1163_v62 = vpop.f32.mrb[115].mxu0  ;;  %v2571_v63 = vpop.f32.mrb[53].mxu1  ;;  %v1824_v3 = vmul.f32 %v1731_v55, %v1159_v36 }
 0x290   :  { %v2833_v30 = vadd.f32 %v4591_v52, %v2571_v63  ;;  %v3415_v2 = vpop.f32.mrb[54].mxu1 }
 0x291   :  { %v1825_v5 = vmul.f32 %v1736_v4, %v1162_v39  ;;  %v2836_v6 = vadd.f32 %v3415_v2, %v4591_v52  ;;  %v2574_v32 = vpop.f32.mrb[55].mxu1  ;;  %v2899_v8 = vmax.f32 %v2835_v59, 0.0  ;;  %v1761_v39 = vpop.permute.xlu0 %1760 }
 0x292   :  { %v2834_v43 = vadd.f32 %v4591_v52, %v2574_v32  ;;  %v2897_v44 = vmax.f32 %v2833_v30, 0.0 }
 0x293   :  { %v2900_v9 = vmax.f32 %v2836_v6, 0.0  ;;  %v1860_v11 = vpack.c.bf16 %v1825_v5, %v1824_v3 }
 0x294   :  { %v2898_v49 = vmax.f32 %v2834_v43, 0.0  ;;  %v1166_v10 = vpop.f32.mrb[116].mxu0 }
 0x295   :  { %v4599_v12 = vpack.c.bf16 %v2900_v9, %v2899_v8  ;;  %v1167_v13 = vadd.f32 %v1166_v10, %v4549_v60  ;;  %v1168_v15 = vpop.f32.mrb[117].mxu0  ;;  %3468 = vmatprep.mubr.bf16.mxu1 %v1860_v11 }
 0x296   :  { %v4602_v47 = vpack.c.bf16 %v2898_v49, %v2897_v44  ;;  %v1169_v18 = vpop.f32.mrb[118].mxu0 }
 0x297   :  { %v1170_v19 = vadd.f32 %v1169_v18, %v4551_v7  ;;  %v1171_v20 = vpop.f32.mrb[119].mxu0  ;;  %v1826_v23 = vmul.f32 %v1741_v14, %v1167_v13  ;;  %v1756_v7 = vpop.permute.xlu1 %1755 }
 0x299   :  { %v1827_v17 = vmul.f32 %v1746_v22, %v1170_v19 }
 0x29b   :  { %v1861_v51 = vpack.c.bf16 %v1827_v17, %v1826_v23  ;;  %v1766_v59 = vpop.permute.xlu1 %1765 }
 0x29c   :  { %v1174_v25 = vpop.f32.mrb[120].mxu0 }
 0x29d   :  { %v1175_v29 = vadd.f32 %v1174_v25, %v4556_v16  ;;  %v1176_v1 = vpop.f32.mrb[121].mxu0  ;;  %3469 = vmatmul.mubr.bf16.gmra.mrb[108].mxu1 %v1861_v51 }
 0x29e   :  { %v1177_v60 = vpop.f32.mrb[122].mxu0  ;;  %v3418_v21 = vpop.f32.mrb[56].mxu1 }
 0x29f   :  { %v1178_v54 = vadd.f32 %v1177_v60, %v4558_v27  ;;  %v2839_v33 = vadd.f32 %v3418_v21, %v4591_v52  ;;  %v1179_v34 = vpop.f32.mrb[123].mxu0  ;;  %v2587_v35 = vpop.f32.mrb[57].mxu1  ;;  %v1828_v38 = vmul.f32 %v1751_v26, %v1175_v29 }
 0x2a0   :  { %v2837_v24 = vadd.f32 %v4591_v52, %v2587_v35  ;;  %v3419_v37 = vpop.f32.mrb[58].mxu1  ;;  %v3785_v34 = vmov 1983009808  }
 0x2a1   :  { %v1829_v58 = vmul.f32 %v1756_v7, %v1178_v54  ;;  %v2840_v41 = vadd.f32 %v3419_v37, %v4591_v52  ;;  %v2590_v42 = vpop.f32.mrb[59].mxu1  ;;  %v2903_v28 = vmax.f32 %v2839_v33, 0.0  ;;  %v2997_v35 = vunpack.c.l.s4 %v3785_v34 }
 0x2a2   :  { %v2838_v16 = vadd.f32 %v4591_v52, %v2590_v42  ;;  %v2901_v61 = vmax.f32 %v2837_v24, 0.0  ;;  %v2999_v7 = vlaneseq }
 0x2a3   :  { %v2904_v45 = vmax.f32 %v2840_v41, 0.0  ;;  %v1862_v46 = vpack.c.bf16 %v1829_v58, %v1828_v38  ;;  %v2998_v58 = vunpack.c.0.s8 %v2997_v35 }
 0x2a4   :  { %v2902_v27 = vmax.f32 %v2838_v16, 0.0  ;;  %v1182_v48 = vpop.f32.mrb[124].mxu0  ;;  %v3000_v41 = vshrl.u32 %v2999_v7, 7 }
 0x2a5   :  { %v4611_v31 = vpack.c.bf16 %v2904_v45, %v2903_v28  ;;  %v1183_v50 = vadd.f32 %v1182_v48, %v4563_v40  ;;  %v1184_v55 = vpop.f32.mrb[125].mxu0  ;;  %3472 = vmatprep.mubr.bf16.mxu1 %v1862_v46 }
 0x2a6   :  { %v4614_v36 = vpack.c.bf16 %v2902_v27, %v2901_v61  ;;  %v1185_v56 = vpop.f32.mrb[126].mxu0  ;;  %v4637_v46 = vsub.s32 %v2998_v58, %v3000_v41  ;;  %v4642_v27 = vld [vmem:[%s4745_s7] sm:$0xff]  ;;  %s3786_s7 = smov [#allocation3]  }
 0x2a7   :  { %v1186_v0 = vadd.f32 %v1185_v56, %v4565_v53  ;;  %v1187_v57 = vpop.f32.mrb[127].mxu0  ;;  %v1830_v62 = vmul.f32 %v1761_v39, %v1183_v50  ;;  %s3103_s19 = sshll.u32 %s3786_s7, 4  ;;  %s3104_s19 = int_to_ptr.vmem [resolvable:$true] %s3103_s19 }
 0x2a8   :  { %v4646_v50 = vrot.slane %v4642_v27, %v4637_v46  ;;  %s3760_s20 = scalar_lea.vmem %s3104_s19, 64  ;;  %p3765_p1 = scmp.lt.s32.totalorder %s3104_s19, %s3104_s19 }
 0x2a9   :  { %v1831_v63 = vmul.f32 %v1766_v59, %v1186_v0  ;;  %p3761_p0 = scmp.ne.s32.totalorder %s3104_s19, %s3760_s20  ;;  %p3766_p2 = scmp.lt.s32.totalorder %s3760_s20, %s3760_s20 }
 0x2aa   :  { %v3010_v55 = vcombine.high %v4646_v50, %v4646_v50 }
 0x2ab   :  { %v1863_v4 = vpack.c.bf16 %v1831_v63, %v1830_v62  ;;  %p3767_p3 = por %p3766_p2, %p3765_p1 }
 0x2ad   :  { %3473 = vmatmul.mubr.bf16.gmra.mrb[112].mxu1 %v1863_v4  ;;  %p3768_p4 = pnand %p3767_p3, %p3761_p0 }
 0x2ae   :  { %v3422_v30 = vpop.f32.mrb[60].mxu1  ;;  %3048 = vmatprep.mubr.bf16.mxu1 %v3010_v55 }
 0x2af   :  { %v2843_v2 = vadd.f32 %v3422_v30, %v4591_v52  ;;  %v2603_v3 = vpop.f32.mrb[61].mxu1 }
 0x2b0   :  { %v2841_v40 = vadd.f32 %v4591_v52, %v2603_v3  ;;  %v3423_v5 = vpop.f32.mrb[62].mxu1 }
 0x2b1   :  { %v2844_v6 = vadd.f32 %v3423_v5, %v4591_v52  ;;  %v2606_v32 = vpop.f32.mrb[63].mxu1  ;;  %v2907_v53 = vmax.f32 %v2843_v2, 0.0 }
 0x2b2   :  { %v2842_v43 = vadd.f32 %v4591_v52, %v2606_v32  ;;  %v2905_v9 = vmax.f32 %v2841_v40, 0.0 }
 0x2b3   :  { %v2908_v8 = vmax.f32 %v2844_v6, 0.0 }
 0x2b4   :  { %v2906_v11 = vmax.f32 %v2842_v43, 0.0 }
 0x2b5   :  { %v4621_v44 = vpack.c.bf16 %v2908_v8, %v2907_v53 }
 0x2b6   :  { %v4623_v49 = vpack.c.bf16 %v2906_v11, %v2905_v9 }
 0x2be   :  { %v3426_v10 = vpop.f32.mrb[64].mxu1 }
 0x2bf   :  { %v2847_v13 = vadd.f32 %v3426_v10, %v4591_v52  ;;  %v2619_v15 = vpop.f32.mrb[65].mxu1 }
 0x2c0   :  { %v2845_v18 = vadd.f32 %v4591_v52, %v2619_v15  ;;  %v3427_v14 = vpop.f32.mrb[66].mxu1 }
 0x2c1   :  { %v2848_v19 = vadd.f32 %v3427_v14, %v4591_v52  ;;  %v2622_v20 = vpop.f32.mrb[67].mxu1  ;;  %v2911_v23 = vmax.f32 %v2847_v13, 0.0 }
 0x2c2   :  { %v2846_v22 = vadd.f32 %v4591_v52, %v2622_v20  ;;  %v2909_v51 = vmax.f32 %v2845_v18, 0.0 }
 0x2c3   :  { %v2912_v17 = vmax.f32 %v2848_v19, 0.0 }
 0x2c4   :  { %v2910_v25 = vmax.f32 %v2846_v22, 0.0 }
 0x2c5   :  { %v4629_v26 = vpack.c.bf16 %v2912_v17, %v2911_v23 }
 0x2c6   :  { %v4631_v29 = vpack.c.bf16 %v2910_v25, %v2909_v51 }
 0x2ce   :  { %v3430_v1 = vpop.f32.mrb[68].mxu1 }
 0x2cf   :  { %v2851_v60 = vadd.f32 %v3430_v1, %v4591_v52  ;;  %v2635_v21 = vpop.f32.mrb[69].mxu1 }
 0x2d0   :  { %v2849_v54 = vadd.f32 %v4591_v52, %v2635_v21  ;;  %v3431_v33 = vpop.f32.mrb[70].mxu1 }
 0x2d1   :  { %v2852_v24 = vadd.f32 %v3431_v33, %v4591_v52  ;;  %v2638_v37 = vpop.f32.mrb[71].mxu1  ;;  %v2915_v42 = vmax.f32 %v2851_v60, 0.0 }
 0x2d2   :  { %v2850_v38 = vadd.f32 %v4591_v52, %v2638_v37  ;;  %v2913_v28 = vmax.f32 %v2849_v54, 0.0 }
 0x2d3   :  { %v2916_v16 = vmax.f32 %v2852_v24, 0.0 }
 0x2d4   :  { %v2914_v45 = vmax.f32 %v2850_v38, 0.0 }
 0x2d5   :  { %v2970_v61 = vpack.c.bf16 %v2916_v16, %v2915_v42 }
 0x2d6   :  { %v2969_v48 = vpack.c.bf16 %v2914_v45, %v2913_v28 }
 0x2d8   :  { %3272 = vmatprep.subr.bf16.mxu1 %v2969_v48 }
 0x2d9   :  { %3273 = vmatpush3.bf16.msra.mxu1 %v4602_v47 }
 0x2da   :  { %3274 = vmatprep.subr.bf16.mxu1 %v2970_v61 }
 0x2dd   :  { %3275 = vmatpush3.bf16.msra.mxu1 %v4599_v12 }
 0x2de   :  { %v3434_v56 = vpop.f32.mrb[72].mxu1 }
 0x2df   :  { %v2855_v0 = vadd.f32 %v3434_v56, %v4591_v52  ;;  %v2651_v57 = vpop.f32.mrb[73].mxu1 }
 0x2e0   :  { %v2853_v39 = vadd.f32 %v4591_v52, %v2651_v57  ;;  %v3435_v59 = vpop.f32.mrb[74].mxu1 }
 0x2e1   :  { %v2856_v62 = vadd.f32 %v3435_v59, %v4591_v52  ;;  %v2654_v63 = vpop.f32.mrb[75].mxu1  ;;  %v2919_v30 = vmax.f32 %v2855_v0, 0.0 }
 0x2e2   :  { %v2854_v4 = vadd.f32 %v4591_v52, %v2654_v63  ;;  %v2917_v3 = vmax.f32 %v2853_v39, 0.0 }
 0x2e3   :  { %v2920_v2 = vmax.f32 %v2856_v62, 0.0 }
 0x2e4   :  { %v2918_v47 = vmax.f32 %v2854_v4, 0.0 }
 0x2e5   :  { %v2972_v40 = vpack.c.bf16 %v2920_v2, %v2919_v30 }
 0x2e6   :  { %v2971_v5 = vpack.c.bf16 %v2918_v47, %v2917_v3 }
 0x2e8   :  { %3276 = vmatprep.subr.bf16.mxu1 %v2971_v5 }
 0x2e9   :  { %3277 = vmatpush3.bf16.msra.mxu1 %v4614_v36 }
 0x2ea   :  { %3278 = vmatprep.subr.bf16.mxu1 %v2972_v40 }
 0x2ed   :  { %3279 = vmatpush3.bf16.msra.mxu1 %v4611_v31 }
 0x2ee   :  { %v3438_v12 = vpop.f32.mrb[76].mxu1 }
 0x2ef   :  { %v2859_v6 = vadd.f32 %v3438_v12, %v4591_v52  ;;  %v2667_v32 = vpop.f32.mrb[77].mxu1 }
 0x2f0   :  { %v2857_v43 = vadd.f32 %v4591_v52, %v2667_v32  ;;  %v3439_v53 = vpop.f32.mrb[78].mxu1 }
 0x2f1   :  { %v2860_v8 = vadd.f32 %v3439_v53, %v4591_v52  ;;  %v2670_v9 = vpop.f32.mrb[79].mxu1  ;;  %v2923_v10 = vmax.f32 %v2859_v6, 0.0 }
 0x2f2   :  { %v2858_v11 = vadd.f32 %v4591_v52, %v2670_v9  ;;  %v2921_v15 = vmax.f32 %v2857_v43, 0.0 }
 0x2f3   :  { %v2924_v13 = vmax.f32 %v2860_v8, 0.0 }
 0x2f4   :  { %v2922_v18 = vmax.f32 %v2858_v11, 0.0 }
 0x2f5   :  { %v2974_v36 = vpack.c.bf16 %v2924_v13, %v2923_v10 }
 0x2f6   :  { %v2973_v14 = vpack.c.bf16 %v2922_v18, %v2921_v15 }
 0x2f8   :  { %3280 = vmatprep.subr.bf16.mxu1 %v2973_v14 }
 0x2f9   :  { %3281 = vmatpush3.bf16.msra.mxu1 %v4623_v49 }
 0x2fa   :  { %3282 = vmatprep.subr.bf16.mxu1 %v2974_v36 }
 0x2fd   :  { %3283 = vmatpush3.bf16.msra.mxu1 %v4621_v44  ;;  %v2995_v44 = vcombine.high %v4642_v27, %v4642_v27 }
 0x2fe   :  { %v3442_v31 = vpop.f32.mrb[80].mxu1 }
 0x2ff   :  { %v2863_v19 = vadd.f32 %v3442_v31, %v4591_v52  ;;  %v2683_v20 = vpop.f32.mrb[81].mxu1  ;;  %v4673_v34 = vrot.slane %v2995_v44, %v4637_v46 }
 0x300   :  { %v2861_v22 = vadd.f32 %v4591_v52, %v2683_v20  ;;  %v3443_v23 = vpop.f32.mrb[82].mxu1 }
 0x301   :  { %v2864_v17 = vadd.f32 %v3443_v23, %v4591_v52  ;;  %v2686_v51 = vpop.f32.mrb[83].mxu1  ;;  %v2927_v1 = vmax.f32 %v2863_v19, 0.0  ;;  %v3011_v37 = vcombine.high %v4673_v34, %v4673_v34 }
 0x302   :  { %v2862_v25 = vadd.f32 %v4591_v52, %v2686_v51  ;;  %v2925_v21 = vmax.f32 %v2861_v22, 0.0 }
 0x303   :  { %v2928_v60 = vmax.f32 %v2864_v17, 0.0 }
 0x304   :  { %v2926_v54 = vmax.f32 %v2862_v25, 0.0 }
 0x305   :  { %v2976_v49 = vpack.c.bf16 %v2928_v60, %v2927_v1 }
 0x306   :  { %v2975_v33 = vpack.c.bf16 %v2926_v54, %v2925_v21 }
 0x308   :  { %3284 = vmatprep.subr.bf16.mxu1 %v2975_v33 }
 0x309   :  { %3285 = vmatpush3.bf16.msra.mxu1 %v4631_v29 }
 0x30a   :  { %3286 = vmatprep.subr.bf16.mxu1 %v2976_v49 }
 0x30d   :  { %3287 = vmatpush3.bf16.msra.mxu1 %v4629_v26 }
 0x30e   :  { %v3446_v35 = vpop.f32.mrb[84].mxu1 }
 0x30f   :  { %v2867_v7 = vadd.f32 %v3446_v35, %v4591_v52  ;;  %v2699_v24 = vpop.f32.mrb[85].mxu1 }
 0x310   :  { %v2865_v38 = vadd.f32 %v4591_v52, %v2699_v24  ;;  %v3447_v58 = vpop.f32.mrb[86].mxu1  ;;  %3049 = vmatmul.mubr.bf16.vlgmr.msra.gmra.mrb[116].mxu1 %v4646_v50 }
 0x311   :  { %v2868_v29 = vadd.f32 %v3447_v58, %v4591_v52  ;;  %v2702_v41 = vpop.f32.mrb[87].mxu1  ;;  %3088 = vmatprep.mubr.bf16.mxu1 %v3011_v37  ;;  %v2931_v42 = vmax.f32 %v2867_v7, 0.0 }
 0x312   :  { %v2866_v26 = vadd.f32 %v4591_v52, %v2702_v41  ;;  %v2929_v28 = vmax.f32 %v2865_v38, 0.0 }
 0x313   :  { %v2932_v16 = vmax.f32 %v2868_v29, 0.0 }
 0x314   :  { %v2930_v45 = vmax.f32 %v2866_v26, 0.0 }
 0x315   :  { %v2978_v46 = vpack.c.bf16 %v2932_v16, %v2931_v42 }
 0x316   :  { %v2977_v61 = vpack.c.bf16 %v2930_v45, %v2929_v28 }
 0x320   :  { %v3450_v27 = vpop.f32.mrb[88].mxu1 }
 0x321   :  { %v2871_v48 = vadd.f32 %v3450_v27, %v4591_v52  ;;  %v2715_v55 = vpop.f32.mrb[89].mxu1 }
 0x322   :  { %v2869_v56 = vadd.f32 %v4591_v52, %v2715_v55  ;;  %v3451_v0 = vpop.f32.mrb[90].mxu1 }
 0x323   :  { %v2872_v50 = vadd.f32 %v3451_v0, %v4591_v52  ;;  %v2718_v57 = vpop.f32.mrb[91].mxu1  ;;  %v2935_v59 = vmax.f32 %v2871_v48, 0.0 }
 0x324   :  { %v2870_v39 = vadd.f32 %v4591_v52, %v2718_v57  ;;  %v2933_v63 = vmax.f32 %v2869_v56, 0.0 }
 0x325   :  { %v2936_v62 = vmax.f32 %v2872_v50, 0.0 }
 0x326   :  { %v2934_v4 = vmax.f32 %v2870_v39, 0.0 }
 0x327   :  { %v4686_v30 = vpack.c.bf16 %v2936_v62, %v2935_v59 }
 0x328   :  { %v2979_v2 = vpack.c.bf16 %v2934_v4, %v2933_v63 }
 0x330   :  { %v3454_v3 = vpop.f32.mrb[92].mxu1 }
 0x331   :  { %v2875_v47 = vadd.f32 %v3454_v3, %v4591_v52  ;;  %v2731_v40 = vpop.f32.mrb[93].mxu1 }
 0x332   :  { %v2873_v5 = vadd.f32 %v4591_v52, %v2731_v40  ;;  %v3455_v12 = vpop.f32.mrb[94].mxu1 }
 0x333   :  { %v2876_v6 = vadd.f32 %v3455_v12, %v4591_v52  ;;  %v2734_v32 = vpop.f32.mrb[95].mxu1  ;;  %v2939_v53 = vmax.f32 %v2875_v47, 0.0 }
 0x334   :  { %v2874_v43 = vadd.f32 %v4591_v52, %v2734_v32  ;;  %v2937_v9 = vmax.f32 %v2873_v5, 0.0 }
 0x335   :  { %v2940_v8 = vmax.f32 %v2876_v6, 0.0 }
 0x336   :  { %v2938_v11 = vmax.f32 %v2874_v43, 0.0 }
 0x337   :  { %v4692_v10 = vpack.c.bf16 %v2940_v8, %v2939_v53 }
 0x338   :  { %v4694_v13 = vpack.c.bf16 %v2938_v11, %v2937_v9 }
 0x340   :  { %v3458_v15 = vpop.f32.mrb[96].mxu1 }
 0x341   :  { %v2879_v18 = vadd.f32 %v3458_v15, %v4591_v52  ;;  %v2747_v36 = vpop.f32.mrb[97].mxu1 }
 0x342   :  { %v2877_v14 = vadd.f32 %v4591_v52, %v2747_v36  ;;  %v3459_v31 = vpop.f32.mrb[98].mxu1 }
 0x343   :  { %v2880_v19 = vadd.f32 %v3459_v31, %v4591_v52  ;;  %v2750_v20 = vpop.f32.mrb[99].mxu1  ;;  %v2943_v23 = vmax.f32 %v2879_v18, 0.0 }
 0x344   :  { %v2878_v22 = vadd.f32 %v4591_v52, %v2750_v20  ;;  %v2941_v51 = vmax.f32 %v2877_v14, 0.0 }
 0x345   :  { %v2944_v17 = vmax.f32 %v2880_v19, 0.0 }
 0x346   :  { %v2942_v25 = vmax.f32 %v2878_v22, 0.0 }
 0x347   :  { %v4700_v1 = vpack.c.bf16 %v2944_v17, %v2943_v23 }
 0x348   :  { %v4702_v60 = vpack.c.bf16 %v2942_v25, %v2941_v51 }
 0x350   :  { %v3462_v21 = vpop.f32.mrb[100].mxu1 }
 0x351   :  { %v2883_v54 = vadd.f32 %v3462_v21, %v4591_v52  ;;  %v2763_v49 = vpop.f32.mrb[101].mxu1 }
 0x352   :  { %v2881_v33 = vadd.f32 %v4591_v52, %v2763_v49  ;;  %v3463_v44 = vpop.f32.mrb[102].mxu1 }
 0x353   :  { %v2884_v35 = vadd.f32 %v3463_v44, %v4591_v52  ;;  %v2766_v7 = vpop.f32.mrb[103].mxu1  ;;  %v2947_v37 = vmax.f32 %v2883_v54, 0.0 }
 0x354   :  { %v2882_v24 = vadd.f32 %v4591_v52, %v2766_v7  ;;  %v2945_v58 = vmax.f32 %v2881_v33, 0.0 }
 0x355   :  { %v2948_v38 = vmax.f32 %v2884_v35, 0.0 }
 0x356   :  { %v2946_v29 = vmax.f32 %v2882_v24, 0.0 }
 0x357   :  { %v2986_v41 = vpack.c.bf16 %v2948_v38, %v2947_v37 }
 0x358   :  { %v2985_v26 = vpack.c.bf16 %v2946_v29, %v2945_v58 }
 0x35a   :  { %3294 = vmatprep.subr.bf16.mxu1 %v2985_v26 }
 0x35b   :  { %3295 = vmatpush3.bf16.msra.mxu1 %v2977_v61 }
 0x35c   :  { %3296 = vmatprep.subr.bf16.mxu1 %v2986_v41 }
 0x35f   :  { %3297 = vmatpush3.bf16.msra.mxu1 %v2978_v46 }
 0x360   :  { %v3466_v42 = vpop.f32.mrb[104].mxu1 }
 0x361   :  { %v2887_v16 = vadd.f32 %v3466_v42, %v4591_v52  ;;  %v2779_v28 = vpop.f32.mrb[105].mxu1 }
 0x362   :  { %v2885_v45 = vadd.f32 %v4591_v52, %v2779_v28  ;;  %v3467_v27 = vpop.f32.mrb[106].mxu1 }
 0x363   :  { %v2888_v48 = vadd.f32 %v3467_v27, %v4591_v52  ;;  %v2782_v55 = vpop.f32.mrb[107].mxu1  ;;  %v2951_v0 = vmax.f32 %v2887_v16, 0.0 }
 0x364   :  { %v2886_v56 = vadd.f32 %v4591_v52, %v2782_v55  ;;  %v2949_v57 = vmax.f32 %v2885_v45, 0.0 }
 0x365   :  { %v2952_v50 = vmax.f32 %v2888_v48, 0.0 }
 0x366   :  { %v2950_v39 = vmax.f32 %v2886_v56, 0.0 }
 0x367   :  { %v2988_v59 = vpack.c.bf16 %v2952_v50, %v2951_v0 }
 0x368   :  { %v2987_v61 = vpack.c.bf16 %v2950_v39, %v2949_v57 }
 0x36a   :  { %3298 = vmatprep.subr.bf16.mxu1 %v2987_v61 }
 0x36b   :  { %3299 = vmatpush3.bf16.msra.mxu1 %v2979_v2 }
 0x36c   :  { %3300 = vmatprep.subr.bf16.mxu1 %v2988_v59 }
 0x36f   :  { %3301 = vmatpush3.bf16.msra.mxu1 %v4686_v30 }
 0x370   :  { %v3470_v46 = vpop.f32.mrb[108].mxu1 }
 0x371   :  { %v2891_v62 = vadd.f32 %v3470_v46, %v4591_v52  ;;  %v2795_v63 = vpop.f32.mrb[109].mxu1 }
 0x372   :  { %v2889_v4 = vadd.f32 %v4591_v52, %v2795_v63  ;;  %v3471_v3 = vpop.f32.mrb[110].mxu1 }
 0x373   :  { %v2892_v47 = vadd.f32 %v3471_v3, %v4591_v52  ;;  %v2798_v40 = vpop.f32.mrb[111].mxu1  ;;  %v2955_v12 = vmax.f32 %v2891_v62, 0.0 }
 0x374   :  { %v2890_v5 = vadd.f32 %v4591_v52, %v2798_v40  ;;  %v2953_v32 = vmax.f32 %v2889_v4, 0.0 }
 0x375   :  { %v2956_v6 = vmax.f32 %v2892_v47, 0.0 }
 0x376   :  { %v2954_v43 = vmax.f32 %v2890_v5, 0.0 }
 0x377   :  { %v2990_v2 = vpack.c.bf16 %v2956_v6, %v2955_v12 }
 0x378   :  { %v2989_v53 = vpack.c.bf16 %v2954_v43, %v2953_v32 }
 0x37a   :  { %3302 = vmatprep.subr.bf16.mxu1 %v2989_v53 }
 0x37b   :  { %3303 = vmatpush3.bf16.msra.mxu1 %v4694_v13 }
 0x37c   :  { %3304 = vmatprep.subr.bf16.mxu1 %v2990_v2 }
 0x37f   :  { %3305 = vmatpush3.bf16.msra.mxu1 %v4692_v10 }
 0x380   :  { %v3474_v30 = vpop.f32.mrb[112].mxu1 }
 0x381   :  { %v2895_v8 = vadd.f32 %v3474_v30, %v4591_v52  ;;  %v2811_v9 = vpop.f32.mrb[113].mxu1 }
 0x382   :  { %v2893_v11 = vadd.f32 %v4591_v52, %v2811_v9  ;;  %v3475_v15 = vpop.f32.mrb[114].mxu1 }
 0x383   :  { %v2896_v18 = vadd.f32 %v3475_v15, %v4591_v52  ;;  %v2814_v36 = vpop.f32.mrb[115].mxu1  ;;  %v2959_v31 = vmax.f32 %v2895_v8, 0.0 }
 0x384   :  { %v2894_v14 = vadd.f32 %v4591_v52, %v2814_v36  ;;  %v2957_v20 = vmax.f32 %v2893_v11, 0.0 }
 0x385   :  { %v2960_v19 = vmax.f32 %v2896_v18, 0.0 }
 0x386   :  { %v2958_v22 = vmax.f32 %v2894_v14, 0.0 }
 0x387   :  { %v2992_v13 = vpack.c.bf16 %v2960_v19, %v2959_v31 }
 0x388   :  { %v2991_v23 = vpack.c.bf16 %v2958_v22, %v2957_v20 }
 0x38a   :  { %3306 = vmatprep.subr.bf16.mxu1 %v2991_v23 }
 0x38b   :  { %3307 = vmatpush3.bf16.msra.mxu1 %v4702_v60 }
 0x38c   :  { %3308 = vmatprep.subr.bf16.mxu1 %v2992_v13 }
 0x38f   :  { %3309 = vmatpush3.bf16.msra.mxu1 %v4700_v1 }
 0x392   :  { %3089 = vmatmul.mubr.bf16.vlgmr.msra.gmra.mrb[120].mxu1 %v4673_v34 }
 0x3e3   :  { %v3288_v10 = vpop.f32.mrb[116].mxu1 }
 0x3e4   :  { %v3289_v17 = vpop.f32.mrb[117].mxu1 }
 0x3e5   :  { %v3290_v51 = vadd.f32 %v3289_v17, %v3288_v10  ;;  %v3291_v25 = vpop.f32.mrb[118].mxu1 }
 0x3e6   :  { %v3292_v21 = vpop.f32.mrb[119].mxu1 }
 0x465   :  { %v3310_v52 = vpop.f32.mrb[120].mxu1 }
 0x466   :  { %v3311_v54 = vpop.f32.mrb[121].mxu1 }
 0x467   :  { %v3312_v49 = vadd.f32 %v3311_v54, %v3310_v52  ;;  %v3313_v33 = vpop.f32.mrb[122].mxu1 }
 0x468   :  { %v3314_v44 = vpop.f32.mrb[123].mxu1 }
 0x469   :  { %v3091_v35 = vadd.f32 %v3312_v49, %v3290_v51 }
 0x46b   :  { %3096 = vst [vmem:[#allocation3] sm:$0xf] %v3091_v35 }
 0x46c   :  { %3771 = shalt.err (!%p3768_p4)
}
 0x46d   :  { %s3772_s22 = scalar_lea.hbm %s4746_s8, 64 }
 0x46e   :  { %p3773_p5 = scmp.ne.s32.totalorder %s4746_s8, %s3772_s22  ;;  %p3776_p6 = scmp.lt.u32.totalorder %s3772_s22, %s4746_s8 }
 0x470   :  { %p3778_p7 = pnand %p3776_p6, %p3773_p5 }
 0x472   :  { %3781 = shalt.err (!%p3778_p7)
}
 0x473   :  { %3106 = dma.vmem_to_hbm [thread:$0]  %s3104_s19, 64, %s4746_s8, [#allocation4]  }
 0x474   :  { %3782 = dma.done.wait [#allocation4], 64  }
 0x475   :  { %3783 = vsyncadd [#allocation4], 4294967232 }
 0x476   :  { %3110 = vsyncpa [#allocation4], 1 }

</bundles_post_ra>
